<compile_context>
chip_gen: v7x
topology: tpu7x:2x2x1
jax: 0.10.0
libtpu: 0.0.40
codegen_flags: <defaults>
</compile_context>

<pallas_src>
import jax
import jax.numpy as jnp
from jax import lax
from jax.experimental import pallas as pl
from jax.experimental.pallas import tpu as pltpu


# ----------------------------------------------------------------------------
# Fused kernel: conv1+ReLU -> conv2+ReLU -> bilinear x2 -> concat with `top`.
# One batch element per grid step.
# ----------------------------------------------------------------------------
def up_fused_kernel(x_ref, top_ref, w1_ref, b1_ref, w2_ref, b2_ref, bmat_ref,
                    o_ref, pad1, col1, pad2, col2):
    # x_ref   : (1, H*W, Cin)        input, channels-last, spatial flattened
    # top_ref : (1, Ctop, Ho*Wo)     skip tensor, NCHW with spatial flattened
    # w1_ref  : (9*Cin, Cout)        im2col weights, tap-major / channel-minor
    # b1_ref  : (1, Cout)
    # w2_ref  : (9*Cout, Cout)
    # b2_ref  : (1, Cout)
    # bmat_ref: (H*W, Ho*Wo)         kron(A_h, A_w)^T bilinear interp matrix
    # o_ref   : (1, Cout+Ctop, Ho*Wo)
    # pad1/2  : VMEM zero-halo scratch (H+2, W+2, C)
    # col1/2  : VMEM im2col patch matrices (H*W, 9*C)
    cin = pad1.shape[2]
    cout = pad2.shape[2]
    h, w = pad1.shape[0] - 2, pad1.shape[1] - 2
    hw = h * w

    # ---- conv1: in-kernel zero pad -> im2col -> single MXU matmul -> bias/ReLU
    pad1[...] = jnp.zeros(pad1.shape, pad1.dtype)
    pad1[1:h + 1, 1:w + 1, :] = x_ref[0].reshape(h, w, cin).astype(jnp.float32)
    for kh in range(3):                       # build (H*W, 9*Cin) patch matrix
        for kw in range(3):
            t = kh * 3 + kw
            col1[:, t * cin:(t + 1) * cin] = (
                pad1[kh:kh + h, kw:kw + w, :].reshape(hw, cin))
    y1 = jnp.dot(col1[...], w1_ref[...], preferred_element_type=jnp.float32)
    y1 = jnp.maximum(y1 + b1_ref[...], 0.0)   # (H*W, Cout)

    # ---- conv2: same, reading the conv1 activation kept in VMEM ----
    pad2[...] = jnp.zeros(pad2.shape, pad2.dtype)
    pad2[1:h + 1, 1:w + 1, :] = y1.reshape(h, w, cout)
    for kh in range(3):
        for kw in range(3):
            t = kh * 3 + kw
            col2[:, t * cout:(t + 1) * cout] = (
                pad2[kh:kh + h, kw:kw + w, :].reshape(hw, cout))
    y2 = jnp.dot(col2[...], w2_ref[...], preferred_element_type=jnp.float32)
    y2 = jnp.maximum(y2 + b2_ref[...], 0.0)   # (H*W, Cout)

    # ---- bilinear x2 upsample (align_corners=True) as one lane-dense matmul --
    # (Cout, H*W) @ (H*W, Ho*Wo) -> (Cout, Ho*Wo): output spatial on lanes.
    up = jnp.dot(y2.T, bmat_ref[...], preferred_element_type=jnp.float32)

    # ---- fused channel concat [up, top]; lane-dense NCHW-flat store ----
    o_ref[0, :cout, :] = up.astype(o_ref.dtype)
    o_ref[0, cout:, :] = top_ref[0]


# ----------------------------------------------------------------------------
# Bilinear (align_corners=True) 1-D interpolation matrix.
# ----------------------------------------------------------------------------
def _interp_matrix(l_in, l_out, dtype=jnp.float32):
    if l_in == 1:
        return jnp.ones((l_out, 1), dtype)
    src = jnp.arange(l_out, dtype=jnp.float32) * ((l_in - 1) / (l_out - 1))
    i0 = jnp.clip(jnp.floor(src).astype(jnp.int32), 0, l_in - 1)
    i1 = jnp.minimum(i0 + 1, l_in - 1)
    t = src - i0.astype(jnp.float32)
    rows = jnp.arange(l_out)
    a = jnp.zeros((l_out, l_in), dtype)
    a = a.at[rows, i0].add(1.0 - t)
    a = a.at[rows, i1].add(t)
    return a


# ----------------------------------------------------------------------------
# Public wrapper: NCHW in / NCHW out, matching the PyTorch `Up` module.
# ----------------------------------------------------------------------------
def up_forward(x, top, params, scale_factor=2):
    (w1, b1), (w2, b2) = params
    n, cin, h, w = x.shape
    cout = w1.shape[0]
    ho, wo = h * scale_factor, w * scale_factor
    ctop = top.shape[1]
    assert top.shape == (n, ctop, ho, wo), top.shape
    ctot = cout + ctop
    hw, howo = h * w, ho * wo

    # Layout prep (cheap, one-time): flattened-spatial views + tiny input
    # transpose; weights reordered to im2col (9*Cin, Cout) matrices.
    x_cl = jnp.transpose(x, (0, 2, 3, 1)).reshape(n, hw, cin)
    top_f = top.reshape(n, ctop, howo)
    w1m = jnp.transpose(w1, (2, 3, 1, 0)).reshape(9 * cin, cout)
    w2m = jnp.transpose(w2, (2, 3, 1, 0)).reshape(9 * cout, cout)
    b1m = b1.reshape(1, cout)
    b2m = b2.reshape(1, cout)
    # Separable bilinear weights folded into one (H*W, Ho*Wo) matrix.
    bmat_t = jnp.kron(_interp_matrix(h, ho), _interp_matrix(w, wo)).T

    out_flat = pl.pallas_call(
        up_fused_kernel,
        out_shape=jax.ShapeDtypeStruct((n, ctot, howo), x.dtype),
        grid_spec=pltpu.PrefetchScalarGridSpec(
            num_scalar_prefetch=0,
            grid=(n,),
            in_specs=[
                pl.BlockSpec((1, hw, cin), lambda i: (i, 0, 0)),
                pl.BlockSpec((1, ctop, howo), lambda i: (i, 0, 0)),
                pl.BlockSpec((9 * cin, cout), lambda i: (0, 0)),
                pl.BlockSpec((1, cout), lambda i: (0, 0)),
                pl.BlockSpec((9 * cout, cout), lambda i: (0, 0)),
                pl.BlockSpec((1, cout), lambda i: (0, 0)),
                pl.BlockSpec((hw, howo), lambda i: (0, 0)),
            ],
            out_specs=pl.BlockSpec((1, ctot, howo), lambda i: (i, 0, 0)),
            scratch_shapes=[
                pltpu.VMEM((h + 2, w + 2, cin), jnp.float32),
                pltpu.VMEM((hw, 9 * cin), jnp.float32),
                pltpu.VMEM((h + 2, w + 2, cout), jnp.float32),
                pltpu.VMEM((hw, 9 * cout), jnp.float32),
            ],
        ),
        compiler_params=pltpu.CompilerParams(
            dimension_semantics=("parallel",),
        ),
    )(x_cl, top_f, w1m, b1m, w2m, b2m, bmat_t)
    return out_flat.reshape(n, ctot, ho, wo)


# ----------------------------------------------------------------------------
# Pure-JAX reference (independent path: XLA convs + gather/lerp upsample).
# ----------------------------------------------------------------------------
def _upsample_bilinear_ac_ref(x, scale):
    n, c, h, w = x.shape
    ho, wo = h * scale, w * scale

    def idx(l_in, l_out):
        src = jnp.arange(l_out, dtype=jnp.float32) * ((l_in - 1) / (l_out - 1))
        i0 = jnp.clip(jnp.floor(src).astype(jnp.int32), 0, l_in - 1)
        i1 = jnp.minimum(i0 + 1, l_in - 1)
        return i0, i1, src - i0.astype(jnp.float32)

    h0, h1, th = idx(h, ho)
    w0, w1, tw = idx(w, wo)
    xh = x[:, :, h0, :] * (1.0 - th)[:, None] + x[:, :, h1, :] * th[:, None]
    return xh[:, :, :, w0] * (1.0 - tw) + xh[:, :, :, w1] * tw


def up_reference(x, top, params, scale_factor=2):
    (w1, b1), (w2, b2) = params

    def conv_relu(z, w, b):
        y = lax.conv_general_dilated(
            z, w, window_strides=(1, 1), padding=((1, 1), (1, 1)),
            dimension_numbers=("NCHW", "OIHW", "NCHW"))
        return jnp.maximum(y + b[None, :, None, None], 0.0)

    y = conv_relu(conv_relu(x, w1, b1), w2, b2)
    y = _upsample_bilinear_ac_ref(y, scale_factor)
    return jnp.concatenate([y, top], axis=1)


if __name__ == "__main__":
    key = jax.random.PRNGKey(0)
    kx, kt, kw1, kb1, kw2, kb2 = jax.random.split(key, 6)

    N, ic, oc, H, W = 2, 4, 8, 16, 16
    ctop, scale = 4, 2

    x = jax.random.normal(kx, (N, ic, H, W), jnp.float32)
    top = jax.random.normal(kt, (N, ctop, H * scale, W * scale), jnp.float32)

    s1 = 1.0 / (ic * 9) ** 0.5
    s2 = 1.0 / (oc * 9) ** 0.5
    w1 = s1 * jax.random.normal(kw1, (oc, ic, 3, 3), jnp.float32)
    b1 = s1 * jax.random.normal(kb1, (oc,), jnp.float32)
    w2 = s2 * jax.random.normal(kw2, (oc, oc, 3, 3), jnp.float32)
    b2 = s2 * jax.random.normal(kb2, (oc,), jnp.float32)
    params = ((w1, b1), (w2, b2))

    out = jax.block_until_ready(up_forward(x, top, params, scale_factor=scale))
    ref = jax.block_until_ready(up_reference(x, top, params, scale_factor=scale))

    assert out.shape == (N, oc + ctop, H * scale, W * scale), out.shape
    assert out.dtype == jnp.float32
    max_err = float(jnp.max(jnp.abs(out - ref)))
    assert jnp.allclose(out, ref, atol=1e-3, rtol=1e-3), max_err
    print("KERNEL_OK")
</pallas_src>

<mosaic_0001>
module attributes {stable_mosaic.version = 11 : i64} {
  func.func @up_fused_kernel(%arg0: i32, %arg1: memref<1x256x4xf32, #tpu.memory_space<vmem>>, %arg2: memref<1x4x1024xf32, #tpu.memory_space<vmem>>, %arg3: memref<36x8xf32, #tpu.memory_space<vmem>>, %arg4: memref<1x8xf32, #tpu.memory_space<vmem>>, %arg5: memref<72x8xf32, #tpu.memory_space<vmem>>, %arg6: memref<1x8xf32, #tpu.memory_space<vmem>>, %arg7: memref<256x1024xf32, #tpu.memory_space<vmem>>, %arg8: memref<1x12x1024xf32, #tpu.memory_space<vmem>>, %arg9: memref<18x18x4xf32, #tpu.memory_space<vmem>>, %arg10: memref<256x36xf32, #tpu.memory_space<vmem>>, %arg11: memref<18x18x8xf32, #tpu.memory_space<vmem>>, %arg12: memref<256x72xf32, #tpu.memory_space<vmem>>) attributes {dimension_semantics = [#tpu.dimension_semantics<parallel>], iteration_bounds = array<i64: 2>, scalar_prefetch = 0 : i64, scratch_operands = 4 : i64, tpu.core_type = #tpu.core_type<tc>, window_params = [{transform_indices = @transform_0, window_bounds = array<i64: 1, 256, 4>}, {transform_indices = @transform_1, window_bounds = array<i64: 1, 4, 1024>}, {pipeline_mode = #tpu.pipeline_mode<synchronous>, transform_indices = @transform_2, window_bounds = array<i64: 36, 8>}, {pipeline_mode = #tpu.pipeline_mode<synchronous>, transform_indices = @transform_3, window_bounds = array<i64: 1, 8>}, {pipeline_mode = #tpu.pipeline_mode<synchronous>, transform_indices = @transform_4, window_bounds = array<i64: 72, 8>}, {pipeline_mode = #tpu.pipeline_mode<synchronous>, transform_indices = @transform_5, window_bounds = array<i64: 1, 8>}, {pipeline_mode = #tpu.pipeline_mode<synchronous>, transform_indices = @transform_6, window_bounds = array<i64: 256, 1024>}, {transform_indices = @transform_7, window_bounds = array<i64: 1, 12, 1024>}]} {
    %cst = arith.constant 0.000000e+00 : f32
    %0 = vector.broadcast %cst : f32 to vector<18x18x4xf32>
    %c0 = arith.constant 0 : index
    %c0_0 = arith.constant 0 : index
    %c0_1 = arith.constant 0 : index
    %1 = vector.load %arg9[%c0, %c0_0, %c0_1] : memref<18x18x4xf32, #tpu.memory_space<vmem>>, vector<18x18x4xf32>
    tpu.vector_store %arg9[%c0, %c0_0, %c0_1], %0 {strides = array<i32>} : memref<18x18x4xf32, #tpu.memory_space<vmem>>, vector<18x18x4xf32>,
    %c0_2 = arith.constant 0 : index
    %c0_3 = arith.constant 0 : index
    %c0_4 = arith.constant 0 : index
    %2 = vector.load %arg1[%c0_2, %c0_3, %c0_4] : memref<1x256x4xf32, #tpu.memory_space<vmem>>, vector<1x256x4xf32>
    %3 = vector.shape_cast %2 : vector<1x256x4xf32> to vector<256x4xf32>
    %4 = vector.shape_cast %3 : vector<256x4xf32> to vector<16x16x4xf32>
    %c1 = arith.constant 1 : index
    %c1_5 = arith.constant 1 : index
    %c0_6 = arith.constant 0 : index
    %5 = vector.load %arg9[%c1, %c1_5, %c0_6] : memref<18x18x4xf32, #tpu.memory_space<vmem>>, vector<16x16x4xf32>
    tpu.vector_store %arg9[%c1, %c1_5, %c0_6], %4 {strides = array<i32>} : memref<18x18x4xf32, #tpu.memory_space<vmem>>, vector<16x16x4xf32>,
    %c0_7 = arith.constant 0 : index
    %c0_8 = arith.constant 0 : index
    %c0_9 = arith.constant 0 : index
    %6 = vector.load %arg9[%c0_7, %c0_8, %c0_9] : memref<18x18x4xf32, #tpu.memory_space<vmem>>, vector<16x16x4xf32>
    %7 = vector.shape_cast %6 : vector<16x16x4xf32> to vector<256x4xf32>
    %c0_10 = arith.constant 0 : index
    %c0_11 = arith.constant 0 : index
    %8 = vector.load %arg10[%c0_10, %c0_11] : memref<256x36xf32, #tpu.memory_space<vmem>>, vector<256x4xf32>
    tpu.vector_store %arg10[%c0_10, %c0_11], %7 {strides = array<i32>} : memref<256x36xf32, #tpu.memory_space<vmem>>, vector<256x4xf32>,
    %c0_12 = arith.constant 0 : index
    %c1_13 = arith.constant 1 : index
    %c0_14 = arith.constant 0 : index
    %9 = vector.load %arg9[%c0_12, %c1_13, %c0_14] : memref<18x18x4xf32, #tpu.memory_space<vmem>>, vector<16x16x4xf32>
    %10 = vector.shape_cast %9 : vector<16x16x4xf32> to vector<256x4xf32>
    %c0_15 = arith.constant 0 : index
    %c4 = arith.constant 4 : index
    %11 = vector.load %arg10[%c0_15, %c4] : memref<256x36xf32, #tpu.memory_space<vmem>>, vector<256x4xf32>
    tpu.vector_store %arg10[%c0_15, %c4], %10 {strides = array<i32>} : memref<256x36xf32, #tpu.memory_space<vmem>>, vector<256x4xf32>,
    %c0_16 = arith.constant 0 : index
    %c2 = arith.constant 2 : index
    %c0_17 = arith.constant 0 : index
    %12 = vector.load %arg9[%c0_16, %c2, %c0_17] : memref<18x18x4xf32, #tpu.memory_space<vmem>>, vector<16x16x4xf32>
    %13 = vector.shape_cast %12 : vector<16x16x4xf32> to vector<256x4xf32>
    %c0_18 = arith.constant 0 : index
    %c8 = arith.constant 8 : index
    %14 = vector.load %arg10[%c0_18, %c8] : memref<256x36xf32, #tpu.memory_space<vmem>>, vector<256x4xf32>
    tpu.vector_store %arg10[%c0_18, %c8], %13 {strides = array<i32>} : memref<256x36xf32, #tpu.memory_space<vmem>>, vector<256x4xf32>,
    %c1_19 = arith.constant 1 : index
    %c0_20 = arith.constant 0 : index
    %c0_21 = arith.constant 0 : index
    %15 = vector.load %arg9[%c1_19, %c0_20, %c0_21] : memref<18x18x4xf32, #tpu.memory_space<vmem>>, vector<16x16x4xf32>
    %16 = vector.shape_cast %15 : vector<16x16x4xf32> to vector<256x4xf32>
    %c0_22 = arith.constant 0 : index
    %c12 = arith.constant 12 : index
    %17 = vector.load %arg10[%c0_22, %c12] : memref<256x36xf32, #tpu.memory_space<vmem>>, vector<256x4xf32>
    tpu.vector_store %arg10[%c0_22, %c12], %16 {strides = array<i32>} : memref<256x36xf32, #tpu.memory_space<vmem>>, vector<256x4xf32>,
    %c1_23 = arith.constant 1 : index
    %c1_24 = arith.constant 1 : index
    %c0_25 = arith.constant 0 : index
    %18 = vector.load %arg9[%c1_23, %c1_24, %c0_25] : memref<18x18x4xf32, #tpu.memory_space<vmem>>, vector<16x16x4xf32>
    %19 = vector.shape_cast %18 : vector<16x16x4xf32> to vector<256x4xf32>
    %c0_26 = arith.constant 0 : index
    %c16 = arith.constant 16 : index
    %20 = vector.load %arg10[%c0_26, %c16] : memref<256x36xf32, #tpu.memory_space<vmem>>, vector<256x4xf32>
    tpu.vector_store %arg10[%c0_26, %c16], %19 {strides = array<i32>} : memref<256x36xf32, #tpu.memory_space<vmem>>, vector<256x4xf32>,
    %c1_27 = arith.constant 1 : index
    %c2_28 = arith.constant 2 : index
    %c0_29 = arith.constant 0 : index
    %21 = vector.load %arg9[%c1_27, %c2_28, %c0_29] : memref<18x18x4xf32, #tpu.memory_space<vmem>>, vector<16x16x4xf32>
    %22 = vector.shape_cast %21 : vector<16x16x4xf32> to vector<256x4xf32>
    %c0_30 = arith.constant 0 : index
    %c20 = arith.constant 20 : index
    %23 = vector.load %arg10[%c0_30, %c20] : memref<256x36xf32, #tpu.memory_space<vmem>>, vector<256x4xf32>
    tpu.vector_store %arg10[%c0_30, %c20], %22 {strides = array<i32>} : memref<256x36xf32, #tpu.memory_space<vmem>>, vector<256x4xf32>,
    %c2_31 = arith.constant 2 : index
    %c0_32 = arith.constant 0 : index
    %c0_33 = arith.constant 0 : index
    %24 = vector.load %arg9[%c2_31, %c0_32, %c0_33] : memref<18x18x4xf32, #tpu.memory_space<vmem>>, vector<16x16x4xf32>
    %25 = vector.shape_cast %24 : vector<16x16x4xf32> to vector<256x4xf32>
    %c0_34 = arith.constant 0 : index
    %c24 = arith.constant 24 : index
    %26 = vector.load %arg10[%c0_34, %c24] : memref<256x36xf32, #tpu.memory_space<vmem>>, vector<256x4xf32>
    tpu.vector_store %arg10[%c0_34, %c24], %25 {strides = array<i32>} : memref<256x36xf32, #tpu.memory_space<vmem>>, vector<256x4xf32>,
    %c2_35 = arith.constant 2 : index
    %c1_36 = arith.constant 1 : index
    %c0_37 = arith.constant 0 : index
    %27 = vector.load %arg9[%c2_35, %c1_36, %c0_37] : memref<18x18x4xf32, #tpu.memory_space<vmem>>, vector<16x16x4xf32>
    %28 = vector.shape_cast %27 : vector<16x16x4xf32> to vector<256x4xf32>
    %c0_38 = arith.constant 0 : index
    %c28 = arith.constant 28 : index
    %29 = vector.load %arg10[%c0_38, %c28] : memref<256x36xf32, #tpu.memory_space<vmem>>, vector<256x4xf32>
    tpu.vector_store %arg10[%c0_38, %c28], %28 {strides = array<i32>} : memref<256x36xf32, #tpu.memory_space<vmem>>, vector<256x4xf32>,
    %c2_39 = arith.constant 2 : index
    %c2_40 = arith.constant 2 : index
    %c0_41 = arith.constant 0 : index
    %30 = vector.load %arg9[%c2_39, %c2_40, %c0_41] : memref<18x18x4xf32, #tpu.memory_space<vmem>>, vector<16x16x4xf32>
    %31 = vector.shape_cast %30 : vector<16x16x4xf32> to vector<256x4xf32>
    %c0_42 = arith.constant 0 : index
    %c32 = arith.constant 32 : index
    %32 = vector.load %arg10[%c0_42, %c32] : memref<256x36xf32, #tpu.memory_space<vmem>>, vector<256x4xf32>
    tpu.vector_store %arg10[%c0_42, %c32], %31 {strides = array<i32>} : memref<256x36xf32, #tpu.memory_space<vmem>>, vector<256x4xf32>,
    %c0_43 = arith.constant 0 : index
    %c0_44 = arith.constant 0 : index
    %33 = vector.load %arg10[%c0_43, %c0_44] : memref<256x36xf32, #tpu.memory_space<vmem>>, vector<256x36xf32>
    %c0_45 = arith.constant 0 : index
    %c0_46 = arith.constant 0 : index
    %34 = vector.load %arg3[%c0_45, %c0_46] : memref<36x8xf32, #tpu.memory_space<vmem>>, vector<36x8xf32>
    %cst_47 = arith.constant dense<0.000000e+00> : vector<256x8xf32>
    %35 = tpu.matmul %33, %34, %cst_47 {dimension_numbers = #tpu.dot_dimension_numbers<[1], [0], [0], [1], [0, 0, 1, 1], [], []>} : vector<256x36xf32>, vector<36x8xf32>, vector<256x8xf32> -> vector<256x8xf32>
    %c0_48 = arith.constant 0 : index
    %c0_49 = arith.constant 0 : index
    %36 = vector.load %arg4[%c0_48, %c0_49] : memref<1x8xf32, #tpu.memory_space<vmem>>, vector<1x8xf32>
    %37 = vector.broadcast %36 : vector<1x8xf32> to vector<256x8xf32>
    %38 = arith.addf %35, %37 : vector<256x8xf32>
    %cst_50 = arith.constant 0.000000e+00 : f32
    %39 = vector.broadcast %cst_50 : f32 to vector<256x8xf32>
    %40 = arith.maximumf %38, %39 : vector<256x8xf32>
    %cst_51 = arith.constant 0.000000e+00 : f32
    %41 = vector.broadcast %cst_51 : f32 to vector<18x18x8xf32>
    %c0_52 = arith.constant 0 : index
    %c0_53 = arith.constant 0 : index
    %c0_54 = arith.constant 0 : index
    %42 = vector.load %arg11[%c0_52, %c0_53, %c0_54] : memref<18x18x8xf32, #tpu.memory_space<vmem>>, vector<18x18x8xf32>
    tpu.vector_store %arg11[%c0_52, %c0_53, %c0_54], %41 {strides = array<i32>} : memref<18x18x8xf32, #tpu.memory_space<vmem>>, vector<18x18x8xf32>,
    %43 = vector.shape_cast %40 : vector<256x8xf32> to vector<16x16x8xf32>
    %c1_55 = arith.constant 1 : index
    %c1_56 = arith.constant 1 : index
    %c0_57 = arith.constant 0 : index
    %44 = vector.load %arg11[%c1_55, %c1_56, %c0_57] : memref<18x18x8xf32, #tpu.memory_space<vmem>>, vector<16x16x8xf32>
    tpu.vector_store %arg11[%c1_55, %c1_56, %c0_57], %43 {strides = array<i32>} : memref<18x18x8xf32, #tpu.memory_space<vmem>>, vector<16x16x8xf32>,
    %c0_58 = arith.constant 0 : index
    %c0_59 = arith.constant 0 : index
    %c0_60 = arith.constant 0 : index
    %45 = vector.load %arg11[%c0_58, %c0_59, %c0_60] : memref<18x18x8xf32, #tpu.memory_space<vmem>>, vector<16x16x8xf32>
    %46 = vector.shape_cast %45 : vector<16x16x8xf32> to vector<256x8xf32>
    %c0_61 = arith.constant 0 : index
    %c0_62 = arith.constant 0 : index
    %47 = vector.load %arg12[%c0_61, %c0_62] : memref<256x72xf32, #tpu.memory_space<vmem>>, vector<256x8xf32>
    tpu.vector_store %arg12[%c0_61, %c0_62], %46 {strides = array<i32>} : memref<256x72xf32, #tpu.memory_space<vmem>>, vector<256x8xf32>,
    %c0_63 = arith.constant 0 : index
    %c1_64 = arith.constant 1 : index
    %c0_65 = arith.constant 0 : index
    %48 = vector.load %arg11[%c0_63, %c1_64, %c0_65] : memref<18x18x8xf32, #tpu.memory_space<vmem>>, vector<16x16x8xf32>
    %49 = vector.shape_cast %48 : vector<16x16x8xf32> to vector<256x8xf32>
    %c0_66 = arith.constant 0 : index
    %c8_67 = arith.constant 8 : index
    %50 = vector.load %arg12[%c0_66, %c8_67] : memref<256x72xf32, #tpu.memory_space<vmem>>, vector<256x8xf32>
    tpu.vector_store %arg12[%c0_66, %c8_67], %49 {strides = array<i32>} : memref<256x72xf32, #tpu.memory_space<vmem>>, vector<256x8xf32>,
    %c0_68 = arith.constant 0 : index
    %c2_69 = arith.constant 2 : index
    %c0_70 = arith.constant 0 : index
    %51 = vector.load %arg11[%c0_68, %c2_69, %c0_70] : memref<18x18x8xf32, #tpu.memory_space<vmem>>, vector<16x16x8xf32>
    %52 = vector.shape_cast %51 : vector<16x16x8xf32> to vector<256x8xf32>
    %c0_71 = arith.constant 0 : index
    %c16_72 = arith.constant 16 : index
    %53 = vector.load %arg12[%c0_71, %c16_72] : memref<256x72xf32, #tpu.memory_space<vmem>>, vector<256x8xf32>
    tpu.vector_store %arg12[%c0_71, %c16_72], %52 {strides = array<i32>} : memref<256x72xf32, #tpu.memory_space<vmem>>, vector<256x8xf32>,
    %c1_73 = arith.constant 1 : index
    %c0_74 = arith.constant 0 : index
    %c0_75 = arith.constant 0 : index
    %54 = vector.load %arg11[%c1_73, %c0_74, %c0_75] : memref<18x18x8xf32, #tpu.memory_space<vmem>>, vector<16x16x8xf32>
    %55 = vector.shape_cast %54 : vector<16x16x8xf32> to vector<256x8xf32>
    %c0_76 = arith.constant 0 : index
    %c24_77 = arith.constant 24 : index
    %56 = vector.load %arg12[%c0_76, %c24_77] : memref<256x72xf32, #tpu.memory_space<vmem>>, vector<256x8xf32>
    tpu.vector_store %arg12[%c0_76, %c24_77], %55 {strides = array<i32>} : memref<256x72xf32, #tpu.memory_space<vmem>>, vector<256x8xf32>,
    %c1_78 = arith.constant 1 : index
    %c1_79 = arith.constant 1 : index
    %c0_80 = arith.constant 0 : index
    %57 = vector.load %arg11[%c1_78, %c1_79, %c0_80] : memref<18x18x8xf32, #tpu.memory_space<vmem>>, vector<16x16x8xf32>
    %58 = vector.shape_cast %57 : vector<16x16x8xf32> to vector<256x8xf32>
    %c0_81 = arith.constant 0 : index
    %c32_82 = arith.constant 32 : index
    %59 = vector.load %arg12[%c0_81, %c32_82] : memref<256x72xf32, #tpu.memory_space<vmem>>, vector<256x8xf32>
    tpu.vector_store %arg12[%c0_81, %c32_82], %58 {strides = array<i32>} : memref<256x72xf32, #tpu.memory_space<vmem>>, vector<256x8xf32>,
    %c1_83 = arith.constant 1 : index
    %c2_84 = arith.constant 2 : index
    %c0_85 = arith.constant 0 : index
    %60 = vector.load %arg11[%c1_83, %c2_84, %c0_85] : memref<18x18x8xf32, #tpu.memory_space<vmem>>, vector<16x16x8xf32>
    %61 = vector.shape_cast %60 : vector<16x16x8xf32> to vector<256x8xf32>
    %c0_86 = arith.constant 0 : index
    %c40 = arith.constant 40 : index
    %62 = vector.load %arg12[%c0_86, %c40] : memref<256x72xf32, #tpu.memory_space<vmem>>, vector<256x8xf32>
    tpu.vector_store %arg12[%c0_86, %c40], %61 {strides = array<i32>} : memref<256x72xf32, #tpu.memory_space<vmem>>, vector<256x8xf32>,
    %c2_87 = arith.constant 2 : index
    %c0_88 = arith.constant 0 : index
    %c0_89 = arith.constant 0 : index
    %63 = vector.load %arg11[%c2_87, %c0_88, %c0_89] : memref<18x18x8xf32, #tpu.memory_space<vmem>>, vector<16x16x8xf32>
    %64 = vector.shape_cast %63 : vector<16x16x8xf32> to vector<256x8xf32>
    %c0_90 = arith.constant 0 : index
    %c48 = arith.constant 48 : index
    %65 = vector.load %arg12[%c0_90, %c48] : memref<256x72xf32, #tpu.memory_space<vmem>>, vector<256x8xf32>
    tpu.vector_store %arg12[%c0_90, %c48], %64 {strides = array<i32>} : memref<256x72xf32, #tpu.memory_space<vmem>>, vector<256x8xf32>,
    %c2_91 = arith.constant 2 : index
    %c1_92 = arith.constant 1 : index
    %c0_93 = arith.constant 0 : index
    %66 = vector.load %arg11[%c2_91, %c1_92, %c0_93] : memref<18x18x8xf32, #tpu.memory_space<vmem>>, vector<16x16x8xf32>
    %67 = vector.shape_cast %66 : vector<16x16x8xf32> to vector<256x8xf32>
    %c0_94 = arith.constant 0 : index
    %c56 = arith.constant 56 : index
    %68 = vector.load %arg12[%c0_94, %c56] : memref<256x72xf32, #tpu.memory_space<vmem>>, vector<256x8xf32>
    tpu.vector_store %arg12[%c0_94, %c56], %67 {strides = array<i32>} : memref<256x72xf32, #tpu.memory_space<vmem>>, vector<256x8xf32>,
    %c2_95 = arith.constant 2 : index
    %c2_96 = arith.constant 2 : index
    %c0_97 = arith.constant 0 : index
    %69 = vector.load %arg11[%c2_95, %c2_96, %c0_97] : memref<18x18x8xf32, #tpu.memory_space<vmem>>, vector<16x16x8xf32>
    %70 = vector.shape_cast %69 : vector<16x16x8xf32> to vector<256x8xf32>
    %c0_98 = arith.constant 0 : index
    %c64 = arith.constant 64 : index
    %71 = vector.load %arg12[%c0_98, %c64] : memref<256x72xf32, #tpu.memory_space<vmem>>, vector<256x8xf32>
    tpu.vector_store %arg12[%c0_98, %c64], %70 {strides = array<i32>} : memref<256x72xf32, #tpu.memory_space<vmem>>, vector<256x8xf32>,
    %c0_99 = arith.constant 0 : index
    %c0_100 = arith.constant 0 : index
    %72 = vector.load %arg12[%c0_99, %c0_100] : memref<256x72xf32, #tpu.memory_space<vmem>>, vector<256x72xf32>
    %c0_101 = arith.constant 0 : index
    %c0_102 = arith.constant 0 : index
    %73 = vector.load %arg5[%c0_101, %c0_102] : memref<72x8xf32, #tpu.memory_space<vmem>>, vector<72x8xf32>
    %cst_103 = arith.constant dense<0.000000e+00> : vector<256x8xf32>
    %74 = tpu.matmul %72, %73, %cst_103 {dimension_numbers = #tpu.dot_dimension_numbers<[1], [0], [0], [1], [0, 0, 1, 1], [], []>} : vector<256x72xf32>, vector<72x8xf32>, vector<256x8xf32> -> vector<256x8xf32>
    %c0_104 = arith.constant 0 : index
    %c0_105 = arith.constant 0 : index
    %75 = vector.load %arg6[%c0_104, %c0_105] : memref<1x8xf32, #tpu.memory_space<vmem>>, vector<1x8xf32>
    %76 = vector.broadcast %75 : vector<1x8xf32> to vector<256x8xf32>
    %77 = arith.addf %74, %76 : vector<256x8xf32>
    %cst_106 = arith.constant 0.000000e+00 : f32
    %78 = vector.broadcast %cst_106 : f32 to vector<256x8xf32>
    %79 = arith.maximumf %77, %78 : vector<256x8xf32>
    %80 = tpu.transpose %79, [1, 0] : vector<256x8xf32> -> vector<8x256xf32>
    %c0_107 = arith.constant 0 : index
    %c0_108 = arith.constant 0 : index
    %81 = vector.load %arg7[%c0_107, %c0_108] : memref<256x1024xf32, #tpu.memory_space<vmem>>, vector<256x1024xf32>
    %cst_109 = arith.constant dense<0.000000e+00> : vector<8x1024xf32>
    %82 = tpu.matmul %80, %81, %cst_109 {dimension_numbers = #tpu.dot_dimension_numbers<[1], [0], [0], [1], [0, 0, 1, 1], [], []>} : vector<8x256xf32>, vector<256x1024xf32>, vector<8x1024xf32> -> vector<8x1024xf32>
    %c0_110 = arith.constant 0 : index
    %c0_111 = arith.constant 0 : index
    %c0_112 = arith.constant 0 : index
    %83 = vector.load %arg8[%c0_110, %c0_111, %c0_112] : memref<1x12x1024xf32, #tpu.memory_space<vmem>>, vector<1x8x1024xf32>
    %84 = vector.shape_cast %83 : vector<1x8x1024xf32> to vector<8x1024xf32>
    %85 = vector.shape_cast %82 : vector<8x1024xf32> to vector<1x8x1024xf32>
    tpu.vector_store %arg8[%c0_110, %c0_111, %c0_112], %85 {strides = array<i32>} : memref<1x12x1024xf32, #tpu.memory_space<vmem>>, vector<1x8x1024xf32>,
    %c0_113 = arith.constant 0 : index
    %c0_114 = arith.constant 0 : index
    %c0_115 = arith.constant 0 : index
    %86 = vector.load %arg2[%c0_113, %c0_114, %c0_115] : memref<1x4x1024xf32, #tpu.memory_space<vmem>>, vector<1x4x1024xf32>
    %87 = vector.shape_cast %86 : vector<1x4x1024xf32> to vector<4x1024xf32>
    %c0_116 = arith.constant 0 : index
    %c8_117 = arith.constant 8 : index
    %c0_118 = arith.constant 0 : index
    %88 = vector.load %arg8[%c0_116, %c8_117, %c0_118] : memref<1x12x1024xf32, #tpu.memory_space<vmem>>, vector<1x4x1024xf32>
    %89 = vector.shape_cast %88 : vector<1x4x1024xf32> to vector<4x1024xf32>
    %90 = vector.shape_cast %87 : vector<4x1024xf32> to vector<1x4x1024xf32>
    tpu.vector_store %arg8[%c0_116, %c8_117, %c0_118], %90 {strides = array<i32>} : memref<1x12x1024xf32, #tpu.memory_space<vmem>>, vector<1x4x1024xf32>,
    return
  }
  func.func @transform_0(%arg0: i32) -> (i32, i32, i32) {
    %c0_i32 = arith.constant 0 : i32
    %c0_i32_0 = arith.constant 0 : i32
    %c0_i32_1 = arith.constant 0 : i32
    return %arg0, %c0_i32, %c0_i32_0 : i32, i32, i32
  }
  func.func @transform_1(%arg0: i32) -> (i32, i32, i32) {
    %c0_i32 = arith.constant 0 : i32
    %c0_i32_0 = arith.constant 0 : i32
    %c0_i32_1 = arith.constant 0 : i32
    return %arg0, %c0_i32, %c0_i32_0 : i32, i32, i32
  }
  func.func @transform_2(%arg0: i32) -> (i32, i32) {
    %c0_i32 = arith.constant 0 : i32
    %c0_i32_0 = arith.constant 0 : i32
    %c0_i32_1 = arith.constant 0 : i32
    return %c0_i32, %c0_i32_0 : i32, i32
  }
  func.func @transform_3(%arg0: i32) -> (i32, i32) {
    %c0_i32 = arith.constant 0 : i32
    %c0_i32_0 = arith.constant 0 : i32
    %c0_i32_1 = arith.constant 0 : i32
    return %c0_i32, %c0_i32_0 : i32, i32
  }
  func.func @transform_4(%arg0: i32) -> (i32, i32) {
    %c0_i32 = arith.constant 0 : i32
    %c0_i32_0 = arith.constant 0 : i32
    %c0_i32_1 = arith.constant 0 : i32
    return %c0_i32, %c0_i32_0 : i32, i32
  }
  func.func @transform_5(%arg0: i32) -> (i32, i32) {
    %c0_i32 = arith.constant 0 : i32
    %c0_i32_0 = arith.constant 0 : i32
    %c0_i32_1 = arith.constant 0 : i32
    return %c0_i32, %c0_i32_0 : i32, i32
  }
  func.func @transform_6(%arg0: i32) -> (i32, i32) {
    %c0_i32 = arith.constant 0 : i32
    %c0_i32_0 = arith.constant 0 : i32
    %c0_i32_1 = arith.constant 0 : i32
    return %c0_i32, %c0_i32_0 : i32, i32
  }
  func.func @transform_7(%arg0: i32) -> (i32, i32, i32) {
    %c0_i32 = arith.constant 0 : i32
    %c0_i32_0 = arith.constant 0 : i32
    %c0_i32_1 = arith.constant 0 : i32
    return %arg0, %c0_i32, %c0_i32_0 : i32, i32, i32
  }
}

</mosaic_0001>

<bundles_post_ra>
// kernel: tpu_custom_call.1
= control target key start
LH: loop header
LB: loop body
LE: loop exit
PB: predicated region body
PF: predicated region fallthrough
CT: control target
= control target key end

     0   :  { %12 = vsyncpa [#allocation7], 0  ;;  %s6000_s24 = smov 0   ;;  %s8110_s0 = inlined_call_operand.vmem [shape: f32[2,256,4], index: 0, kind: input, shape index: {}]   ;;  %s8111_s1 = inlined_call_operand.vmem [shape: f32[2,4,1024], index: 1, kind: input, shape index: {}]   ;;  %s8112_s2 = inlined_call_operand.vmem [shape: f32[36,8], index: 2, kind: input, shape index: {}]   ;;  %s8113_s3 = inlined_call_operand.vmem [shape: f32[1,8], index: 3, kind: input, shape index: {}]   ;;  %s8114_s4 = inlined_call_operand.vmem [shape: f32[72,8], index: 4, kind: input, shape index: {}]   ;;  %s8115_s5 = inlined_call_operand.vmem [shape: f32[1,8], index: 5, kind: input, shape index: {}]   ;;  %s8116_s6 = inlined_call_operand.hbm [shape: f32[256,1024], index: 6, kind: input, shape index: {}]   ;;  %s8117_s7 = inlined_call_operand.vmem [shape: f32[2,12,1024], index: 7, kind: output, shape index: {}]  }
   0x1 LB: > { %s6006_s25 = sadd.s32 4294967295, %s5942_s24   ;;  %p5263_p0 = scmp.ge.s32.totalorder %s5942_s24, 1  ;;  %s5942_s24 = sphi %s6000_s24, %s18_s24  }
   0x2   : > { %p206_p1 = scmp.lt.s32.totalorder %s5942_s24, 3  ;;  %s5944_s26 = smov [#allocation6]  }
   0x3   : > { %s230_s27 = sshll.u32 %s5944_s26, 4  ;;  %p8118_p3 = scmp.eq.s32.totalorder %s6006_s25, 0  ;;  %s231_s27 = int_to_ptr.vmem [resolvable:$true] %s230_s27 }
   0x4   : > { %p6010_p2 = pnand %p5263_p0, %p206_p1  ;;  %s5904_s9 = scalar_lea.hbm %s8116_s6, 32768 }
   0x5   : > { %p5905_p6 = scmp.ne.s32.totalorder %s8116_s6, %s5904_s9  ;;  %p5911_p10 = scmp.lt.u32.totalorder %s5904_s9, %s8116_s6 }
   0x6   : > { %s8122_s28 = scalar_select %p6010_p2, 1, 0 }
   0x7   : > { %p5832_p4 = pneg %p6010_p2 }
   0x9   : > { %p6019_p5 = pnand %p8118_p3, %p5832_p4 }
   0xb   : > { %p5906_p7 = pneg %p6019_p5 }
   0xd   : > { %p5907_p8 = pnand %p5906_p7, %p5905_p6 }
   0xf   : > { %p5908_p9 = pneg %p5907_p8 }
  0x11   : > { %p5913_p11 = pnand %p5911_p10, %p5908_p9 }
  0x13   : > { %5916 = shalt.err (!%p5913_p11)
}
  0x14   : > { %s5917_s14 = scalar_lea.vmem %s231_s27, 32768  ;;  %p5925_p1 = scmp.lt.s32.totalorder %s231_s27, %s231_s27 }
  0x15   : > { %p5918_p12 = scmp.ne.s32.totalorder %s231_s27, %s5917_s14  ;;  %p5926_p4 = scmp.lt.s32.totalorder %s5917_s14, %s5917_s14 }
  0x17   : > { %p5920_p13 = pnand %p5918_p12, %p5906_p7  ;;  %p5927_p3 = por %p5926_p4, %p5925_p1 }
  0x19   : > { %p5921_p0 = pneg %p5920_p13 }
  0x1b   : > { %p5928_p2 = pnand %p5927_p3, %p5921_p0 }
  0x1d   : > { %5931 = shalt.err (!%p5928_p2)
}
  0x1e   : > { %s5945_s15 = smov 1024   ;;  %s5946_s16 = smov 64  }
  0x1f   : > { %5835 = dma.hbm_to_vmem [thread:$0]  (!%p6019_p5), %s8116_s6, 32768, %s231_s27, [#allocation7], %s5945_s15, %s5945_s15, %s5946_s16  }
  0x20   : > { %p8124_p6 = scmp.ne.s32.totalorder %s8122_s28, 0 }
  0x21   : > { %p8125_p8 = scmp.eq.s32.totalorder (!%p8124_p6), %s6006_s25, 0 }
  0x22   : > { %262 = sbr.rel (%p8124_p6) target bundleno = 1792 (0x700), region = 48 }
  0x29   : > { %5937 = dma.done.wait (%p8125_p8), [#allocation7], 32768   ;;  %p8126_p7 = pmov %p8125_p8 }
  0x2a   : > { %vm314_vm0 = vcmask 31744   ;;  %vm317_vm1 = vcmask 25600   ;;  %v8120_v0 = vmov 0.0   ;;  %p299_p2 = scmp.lt.s32.totalorder %s6006_s25, 1  ;;  %s5948_s23 = smov 4   ;;  %vm659_vm2 = vcmask 64544  }
  0x2b   : > { %5939 = vsyncadd (%p8126_p7), [#allocation7], 4294934528  ;;  %315 = vst.msk [vmem:[#allocation2] sm:$0xff] %vm314_vm0, %v8120_v0  ;;  %s5949_s26 = smov 8   ;;  %s5950_s27 = smov 12   ;;  %vm2185_vm3 = vcmask 1043456  }
  0x2c   : > { %316 = vst.msk [vmem:[#allocation2 + $0x8] sm:$0xff] %vm314_vm0, %v8120_v0  ;;  %319 = vst.msk [vmem:[#allocation2 + $0x18] sm:$0xff] %vm314_vm0, %v8120_v0  ;;  %s8129_s25 = smov (!%p299_p2, %s6006_s25), 1  ;;  %s5951_s28 = smov 16   ;;  %vm852_vm4 = vcmask 97344   ;;  %vm1045_vm5 = vcmask 130144  }
  0x2d   : > { %320 = vst.msk [vmem:[#allocation2 + $0x20] sm:$0xff] %vm314_vm0, %v8120_v0  ;;  %322 = vst.msk [vmem:[#allocation2 + $0x30] sm:$0xff] %vm314_vm0, %v8120_v0  ;;  %s5343_s19 = sshll.u32 %s8129_s25, 8  ;;  %s5952_s29 = smov 20   ;;  %vm1238_vm6 = vcmask 162944   ;;  %vm1431_vm7 = vcmask 195744  }
  0x2e   : > { %323 = vst.msk [vmem:[#allocation2 + $0x38] sm:$0xff] %vm314_vm0, %v8120_v0  ;;  %325 = vst.msk [vmem:[#allocation2 + $0x48] sm:$0xff] %vm314_vm0, %v8120_v0  ;;  %s6161_s22 = scalar_lea.vmem %s8110_s0, %s5343_s19  ;;  %s5953_s30 = smov 24   ;;  %vm1625_vm8 = vcmask 228544   ;;  %vm1818_vm9 = vcmask 261344   ;;  %vm2011_vm10 = vcmask 294144  }
  0x2f   : > { %326 = vst.msk [vmem:[#allocation2 + $0x50] sm:$0xff] %vm314_vm0, %v8120_v0  ;;  %328 = vst.msk [vmem:[#allocation2 + $0x60] sm:$0xff] %vm314_vm0, %v8120_v0  ;;  %v370_v1 = vld [vmem:[%s6161_s22] sm:$0xff]  ;;  %v372_v2 = vld [vmem:[%s6161_s22 + $0x10] sm:$0xff]  ;;  %s5954_s16 = smov 28   ;;  %s5955_s17 = smov 32  }
  0x30   : > { %329 = vst.msk [vmem:[#allocation2 + $0x68] sm:$0xff] %vm314_vm0, %v8120_v0  ;;  %331 = vst.msk [vmem:[#allocation2 + $0x78] sm:$0xff] %vm314_vm0, %v8120_v0  ;;  %v371_v3 = vld [vmem:[%s6161_s22 + $0x8] sm:$0xff]  ;;  %v374_v6 = vld [vmem:[%s6161_s22 + $0x20] sm:$0xff]  ;;  %vm2088_vm11 = vcmask 293888   ;;  %vm2446_vm12 = vcmask 64512  }
  0x31   : > { %332 = vst.msk [vmem:[#allocation2 + $0x80] sm:$0xff] %vm314_vm0, %v8120_v0  ;;  %334 = vst.msk [vmem:[#allocation2 + $0x90] sm:$0xff] %vm314_vm0, %v8120_v0  ;;  %v373_v7 = vld [vmem:[%s6161_s22 + $0x18] sm:$0xff]  ;;  %v376_v8 = vld [vmem:[%s6161_s22 + $0x30] sm:$0xff]  ;;  %vm2449_vm13 = vcmask 58368   ;;  %s5957_s9 = smov 48  }
  0x32   : > { %335 = vst.msk [vmem:[#allocation2 + $0x98] sm:$0xff] %vm314_vm0, %v8120_v0  ;;  %337 = vst.msk [vmem:[#allocation2 + $0xa8] sm:$0xff] %vm314_vm0, %v8120_v0  ;;  %v375_v9 = vld [vmem:[%s6161_s22 + $0x28] sm:$0xff]  ;;  %v378_v10 = vld [vmem:[%s6161_s22 + $0x40] sm:$0xff]  ;;  %s5958_s19 = smov 56   ;;  %vm2759_vm14 = vcmask 130112  }
  0x33   : > { %338 = vst.msk [vmem:[#allocation2 + $0xb0] sm:$0xff] %vm314_vm0, %v8120_v0  ;;  %340 = vst.msk [vmem:[#allocation2 + $0xc0] sm:$0xff] %vm314_vm0, %v8120_v0  ;;  %v499_v4 = vld [vmem:[#allocation2 + $0x1] sm:$0xff]  ;;  %v377_v11 = vld [vmem:[%s6161_s22 + $0x38] sm:$0xff]  ;;  %vm2952_vm15 = vcmask 195712   ;;  %s5345_s13 = sshll.u32 %s8129_s25, 7 }
  0x34   : > { %341 = vst.msk [vmem:[#allocation2 + $0xc8] sm:$0xff] %vm314_vm0, %v8120_v0  ;;  %343 = vst.msk [vmem:[#allocation2 + $0xd8] sm:$0xff] %vm314_vm0, %v8120_v0  ;;  %563 = vrot.lane.b32.xlu0 %v499_v4, %s5948_s23  ;;  %v380_v12 = vld [vmem:[%s6161_s22 + $0x50] sm:$0xff]  ;;  %v379_v13 = vld [vmem:[%s6161_s22 + $0x48] sm:$0xff] }
  0x35   : > { %344 = vst.msk [vmem:[#allocation2 + $0xe0] sm:$0xff] %vm314_vm0, %v8120_v0  ;;  %346 = vst.msk [vmem:[#allocation2 + $0xf0] sm:$0xff] %vm314_vm0, %v8120_v0  ;;  %v382_v14 = vld [vmem:[%s6161_s22 + $0x60] sm:$0xff]  ;;  %v381_v15 = vld [vmem:[%s6161_s22 + $0x58] sm:$0xff] }
  0x36   : > { %347 = vst.msk [vmem:[#allocation2 + $0xf8] sm:$0xff] %vm314_vm0, %v8120_v0  ;;  %349 = vst.msk [vmem:[#allocation2 + $0x108] sm:$0xff] %vm314_vm0, %v8120_v0  ;;  %v384_v16 = vld [vmem:[%s6161_s22 + $0x70] sm:$0xff]  ;;  %v383_v17 = vld [vmem:[%s6161_s22 + $0x68] sm:$0xff] }
  0x37   : > { %350 = vst.msk [vmem:[#allocation2 + $0x110] sm:$0xff] %vm314_vm0, %v8120_v0  ;;  %352 = vst.msk [vmem:[#allocation2 + $0x120] sm:$0xff] %vm314_vm0, %v8120_v0  ;;  %v386_v18 = vld [vmem:[%s6161_s22 + $0x80] sm:$0xff]  ;;  %v385_v19 = vld [vmem:[%s6161_s22 + $0x78] sm:$0xff] }
  0x38   : > { %353 = vst.msk [vmem:[#allocation2 + $0x128] sm:$0xff] %vm314_vm0, %v8120_v0  ;;  %355 = vst.msk [vmem:[#allocation2 + $0x138] sm:$0xff] %vm314_vm0, %v8120_v0  ;;  %v388_v20 = vld [vmem:[%s6161_s22 + $0x90] sm:$0xff]  ;;  %v387_v21 = vld [vmem:[%s6161_s22 + $0x88] sm:$0xff] }
  0x39   : > { %356 = vst.msk [vmem:[#allocation2 + $0x140] sm:$0xff] %vm314_vm0, %v8120_v0  ;;  %358 = vst.msk [vmem:[#allocation2 + $0x150] sm:$0xff] %vm314_vm0, %v8120_v0  ;;  %v390_v22 = vld [vmem:[%s6161_s22 + $0xa0] sm:$0xff]  ;;  %v389_v23 = vld [vmem:[%s6161_s22 + $0x98] sm:$0xff] }
  0x3a   : > { %359 = vst.msk [vmem:[#allocation2 + $0x158] sm:$0xff] %vm314_vm0, %v8120_v0  ;;  %361 = vst.msk [vmem:[#allocation2 + $0x168] sm:$0xff] %vm314_vm0, %v8120_v0  ;;  %v392_v24 = vld [vmem:[%s6161_s22 + $0xb0] sm:$0xff]  ;;  %v391_v27 = vld [vmem:[%s6161_s22 + $0xa8] sm:$0xff] }
  0x3b   : > { %362 = vst.msk [vmem:[#allocation2 + $0x170] sm:$0xff] %vm314_vm0, %v8120_v0  ;;  %364 = vst.msk [vmem:[#allocation2 + $0x180] sm:$0xff] %vm314_vm0, %v8120_v0  ;;  %v394_v28 = vld [vmem:[%s6161_s22 + $0xc0] sm:$0xff]  ;;  %v393_v33 = vld [vmem:[%s6161_s22 + $0xb8] sm:$0xff] }
  0x3c   : > { %365 = vst.msk [vmem:[#allocation2 + $0x188] sm:$0xff] %vm314_vm0, %v8120_v0  ;;  %367 = vst.msk [vmem:[#allocation2 + $0x198] sm:$0xff] %vm314_vm0, %v8120_v0  ;;  %v396_v34 = vld [vmem:[%s6161_s22 + $0xd0] sm:$0xff]  ;;  %v395_v35 = vld [vmem:[%s6161_s22 + $0xc8] sm:$0xff] }
  0x3d   : > { %368 = vst.msk [vmem:[#allocation2 + $0x1a0] sm:$0xff] %vm314_vm0, %v8120_v0  ;;  %403 = vst.msk [vmem:[#allocation2 + $0x19] sm:$0xff] %vm314_vm0, %v370_v1  ;;  %v398_v36 = vld [vmem:[%s6161_s22 + $0xe0] sm:$0xff]  ;;  %v397_v38 = vld [vmem:[%s6161_s22 + $0xd8] sm:$0xff] }
  0x3e   : > { %318 = vst.msk [vmem:[#allocation2 + $0x10] sm:$0x3] %vm317_vm1, %v8120_v0  ;;  %321 = vst.msk [vmem:[#allocation2 + $0x28] sm:$0x3] %vm317_vm1, %v8120_v0  ;;  %v399_v39 = vld [vmem:[%s6161_s22 + $0xe8] sm:$0xff]  ;;  %v435_v45 = vld [vmem:[#allocation2] sm:$0xff] }
  0x3f   : > { %324 = vst.msk [vmem:[#allocation2 + $0x40] sm:$0x3] %vm317_vm1, %v8120_v0  ;;  %327 = vst.msk [vmem:[#allocation2 + $0x58] sm:$0x3] %vm317_vm1, %v8120_v0  ;;  %v436_v46 = vld [vmem:[#allocation2 + $0x8] sm:$0xff] }
  0x40   : > { %330 = vst.msk [vmem:[#allocation2 + $0x70] sm:$0x3] %vm317_vm1, %v8120_v0  ;;  %333 = vst.msk [vmem:[#allocation2 + $0x88] sm:$0x3] %vm317_vm1, %v8120_v0 }
  0x41   : > { %336 = vst.msk [vmem:[#allocation2 + $0xa0] sm:$0x3] %vm317_vm1, %v8120_v0  ;;  %339 = vst.msk [vmem:[#allocation2 + $0xb8] sm:$0x3] %vm317_vm1, %v8120_v0 }
  0x42   : > { %342 = vst.msk [vmem:[#allocation2 + $0xd0] sm:$0x3] %vm317_vm1, %v8120_v0  ;;  %345 = vst.msk [vmem:[#allocation2 + $0xe8] sm:$0x3] %vm317_vm1, %v8120_v0 }
  0x43   : > { %348 = vst.msk [vmem:[#allocation2 + $0x100] sm:$0x3] %vm317_vm1, %v8120_v0  ;;  %351 = vst.msk [vmem:[#allocation2 + $0x118] sm:$0x3] %vm317_vm1, %v8120_v0 }
  0x44   : > { %354 = vst.msk [vmem:[#allocation2 + $0x130] sm:$0x3] %vm317_vm1, %v8120_v0  ;;  %357 = vst.msk [vmem:[#allocation2 + $0x148] sm:$0x3] %vm317_vm1, %v8120_v0  ;;  %v6206_v25 = vld [vmem:[#allocation2 + $0x19] sm:$0xff] }
  0x45   : > { %360 = vst.msk [vmem:[#allocation2 + $0x160] sm:$0x3] %vm317_vm1, %v8120_v0  ;;  %363 = vst.msk [vmem:[#allocation2 + $0x178] sm:$0x3] %vm317_vm1, %v8120_v0  ;;  %v500_v5 = vld [vmem:[#allocation2 + $0x9] sm:$0xff]  ;;  %567 = vrot.lane.b32.xlu1 %v6206_v25, %s5948_s23  ;;  %v6277_v48 = vld [vmem:[#allocation2 + $0x18] sm:$0xff] }
  0x46   : > { %366 = vst.msk [vmem:[#allocation2 + $0x190] sm:$0x3] %vm317_vm1, %v8120_v0  ;;  %369 = vst.msk [vmem:[#allocation2 + $0x1a8] sm:$0x3] %vm317_vm1, %v8120_v0  ;;  %565 = vrot.lane.b32.xlu0 %v500_v5, %s5948_s23  ;;  %vm3338_vm1 = vcmask 326912  }
  0x47   : > { %405 = vst.msk [vmem:[#allocation2 + $0x31] sm:$0xff] %vm314_vm0, %v372_v2  ;;  %404 = vst.msk [vmem:[#allocation2 + $0x21] sm:$0xff] %vm314_vm0, %v371_v3 }
  0x48   : > { %407 = vst.msk [vmem:[#allocation2 + $0x49] sm:$0xff] %vm314_vm0, %v374_v6  ;;  %406 = vst.msk [vmem:[#allocation2 + $0x39] sm:$0xff] %vm314_vm0, %v373_v7 }
  0x49   : > { %409 = vst.msk [vmem:[#allocation2 + $0x61] sm:$0xff] %vm314_vm0, %v376_v8  ;;  %408 = vst.msk [vmem:[#allocation2 + $0x51] sm:$0xff] %vm314_vm0, %v375_v9 }
  0x4a   : > { %411 = vst.msk [vmem:[#allocation2 + $0x79] sm:$0xff] %vm314_vm0, %v378_v10  ;;  %410 = vst.msk [vmem:[#allocation2 + $0x69] sm:$0xff] %vm314_vm0, %v377_v11 }
  0x4b   : > { %413 = vst.msk [vmem:[#allocation2 + $0x91] sm:$0xff] %vm314_vm0, %v380_v12  ;;  %412 = vst.msk [vmem:[#allocation2 + $0x81] sm:$0xff] %vm314_vm0, %v379_v13 }
  0x4c   : > { %415 = vst.msk [vmem:[#allocation2 + $0xa9] sm:$0xff] %vm314_vm0, %v382_v14  ;;  %414 = vst.msk [vmem:[#allocation2 + $0x99] sm:$0xff] %vm314_vm0, %v381_v15 }
  0x4d   : > { %417 = vst.msk [vmem:[#allocation2 + $0xc1] sm:$0xff] %vm314_vm0, %v384_v16  ;;  %416 = vst.msk [vmem:[#allocation2 + $0xb1] sm:$0xff] %vm314_vm0, %v383_v17 }
  0x4e   : > { %419 = vst.msk [vmem:[#allocation2 + $0xd9] sm:$0xff] %vm314_vm0, %v386_v18  ;;  %418 = vst.msk [vmem:[#allocation2 + $0xc9] sm:$0xff] %vm314_vm0, %v385_v19  ;;  %v6208_v26 = vld [vmem:[#allocation2 + $0x31] sm:$0xff]  ;;  %v6219_v29 = vld [vmem:[#allocation2 + $0x21] sm:$0xff] }
  0x4f   : > { %421 = vst.msk [vmem:[#allocation2 + $0xf1] sm:$0xff] %vm314_vm0, %v388_v20  ;;  %420 = vst.msk [vmem:[#allocation2 + $0xe1] sm:$0xff] %vm314_vm0, %v387_v21  ;;  %571 = vrot.lane.b32.xlu0 %v6208_v26, %s5948_s23  ;;  %v6223_v30 = vld [vmem:[#allocation2 + $0x49] sm:$0xff]  ;;  %569 = vrot.lane.b32.xlu1 %v6219_v29, %s5948_s23  ;;  %v6229_v31 = vld [vmem:[#allocation2 + $0x39] sm:$0xff] }
  0x50   : > { %423 = vst.msk [vmem:[#allocation2 + $0x109] sm:$0xff] %vm314_vm0, %v390_v22  ;;  %422 = vst.msk [vmem:[#allocation2 + $0xf9] sm:$0xff] %vm314_vm0, %v389_v23  ;;  %v6231_v32 = vld [vmem:[#allocation2 + $0x61] sm:$0xff]  ;;  %v6244_v37 = vld [vmem:[#allocation2 + $0x51] sm:$0xff] }
  0x51   : > { %425 = vst.msk [vmem:[#allocation2 + $0x121] sm:$0xff] %vm314_vm0, %v392_v24  ;;  %424 = vst.msk [vmem:[#allocation2 + $0x111] sm:$0xff] %vm314_vm0, %v391_v27  ;;  %v6249_v40 = vld [vmem:[#allocation2 + $0x79] sm:$0xff]  ;;  %v6257_v41 = vld [vmem:[#allocation2 + $0x69] sm:$0xff] }
  0x52   : > { %427 = vst.msk [vmem:[#allocation2 + $0x139] sm:$0xff] %vm314_vm0, %v394_v28  ;;  %426 = vst.msk [vmem:[#allocation2 + $0x129] sm:$0xff] %vm314_vm0, %v393_v33  ;;  %v6259_v42 = vld [vmem:[#allocation2 + $0x91] sm:$0xff]  ;;  %v6265_v43 = vld [vmem:[#allocation2 + $0x81] sm:$0xff] }
  0x53   : > { %575 = vrot.lane.b32.xlu0 %v6223_v30, %s5948_s23  ;;  %573 = vrot.lane.b32.xlu1 %v6229_v31, %s5948_s23  ;;  %429 = vst.msk [vmem:[#allocation2 + $0x151] sm:$0xff] %vm314_vm0, %v396_v34  ;;  %428 = vst.msk [vmem:[#allocation2 + $0x141] sm:$0xff] %vm314_vm0, %v395_v35  ;;  %v6267_v44 = vld [vmem:[#allocation2 + $0xa9] sm:$0xff]  ;;  %v6274_v47 = vld [vmem:[#allocation2 + $0x99] sm:$0xff] }
  0x54   : > { %431 = vst.msk [vmem:[#allocation2 + $0x169] sm:$0xff] %vm314_vm0, %v398_v36  ;;  %430 = vst.msk [vmem:[#allocation2 + $0x159] sm:$0xff] %vm314_vm0, %v397_v38  ;;  %v515_v49 = vld [vmem:[#allocation2 + $0xc1] sm:$0xff]  ;;  %v6281_v50 = vld [vmem:[#allocation2 + $0x30] sm:$0xff] }
  0x55   : > { %432 = vst.msk [vmem:[#allocation2 + $0x171] sm:$0xff] %vm314_vm0, %v399_v39  ;;  %467 = vst.msk [vmem:[#allocation3] sm:$0xff] %vm314_vm0, %v435_v45  ;;  %v6283_v51 = vld [vmem:[#allocation2 + $0xb1] sm:$0xff]  ;;  %v6287_v52 = vld [vmem:[#allocation2 + $0x20] sm:$0xff] }
  0x56   : > { %468 = vst.msk [vmem:[#allocation3 + $0x8] sm:$0xff] %vm314_vm0, %v436_v46  ;;  %469 = vst.msk [vmem:[#allocation3 + $0x10] sm:$0xff] %vm314_vm0, %v6277_v48  ;;  %v6289_v53 = vld [vmem:[#allocation2 + $0x48] sm:$0xff]  ;;  %v517_v54 = vld [vmem:[#allocation2 + $0xd9] sm:$0xff] }
  0x57   : > { %579 = vrot.lane.b32.xlu0 %v6231_v32, %s5948_s23  ;;  %577 = vrot.lane.b32.xlu1 %v6244_v37, %s5948_s23  ;;  %471 = vst.msk [vmem:[#allocation3 + $0x20] sm:$0xff] %vm314_vm0, %v6281_v50  ;;  %470 = vst.msk [vmem:[#allocation3 + $0x18] sm:$0xff] %vm314_vm0, %v6287_v52  ;;  %v6297_v55 = vld [vmem:[#allocation2 + $0x38] sm:$0xff]  ;;  %v6299_v56 = vld [vmem:[#allocation2 + $0x60] sm:$0xff] }
  0x58   : > { %473 = vst.msk [vmem:[#allocation3 + $0x30] sm:$0xff] %vm314_vm0, %v6289_v53  ;;  %472 = vst.msk [vmem:[#allocation3 + $0x28] sm:$0xff] %vm314_vm0, %v6297_v55  ;;  %v6306_v57 = vld [vmem:[#allocation2 + $0x50] sm:$0xff]  ;;  %v6308_v58 = vld [vmem:[#allocation2 + $0x78] sm:$0xff] }
  0x59   : > { %475 = vst.msk [vmem:[#allocation3 + $0x40] sm:$0xff] %vm314_vm0, %v6299_v56  ;;  %v6310_v59 = vld [vmem:[#allocation2 + $0x68] sm:$0xff]  ;;  %474 = vst.msk [vmem:[#allocation3 + $0x38] sm:$0xff] %vm314_vm0, %v6306_v57  ;;  %v6318_v60 = vld [vmem:[#allocation2 + $0x90] sm:$0xff] }
  0x5a   : > { %477 = vst.msk [vmem:[#allocation3 + $0x50] sm:$0xff] %vm314_vm0, %v6308_v58  ;;  %476 = vst.msk [vmem:[#allocation3 + $0x48] sm:$0xff] %vm314_vm0, %v6310_v59  ;;  %v6320_v61 = vld [vmem:[#allocation2 + $0x80] sm:$0xff]  ;;  %v6322_v62 = vld [vmem:[#allocation2 + $0xa8] sm:$0xff] }
  0x5b   : > { %583 = vrot.lane.b32.xlu0 %v6249_v40, %s5948_s23  ;;  %581 = vrot.lane.b32.xlu1 %v6257_v41, %s5948_s23  ;;  %v516_v63 = vld [vmem:[#allocation2 + $0xc9] sm:$0xff]  ;;  %479 = vst.msk [vmem:[#allocation3 + $0x60] sm:$0xff] %vm314_vm0, %v6318_v60  ;;  %478 = vst.msk [vmem:[#allocation3 + $0x58] sm:$0xff] %vm314_vm0, %v6320_v61  ;;  %v6330_v1 = vld [vmem:[#allocation2 + $0x98] sm:$0xff] }
  0x5c   : > { %481 = vst.msk [vmem:[#allocation3 + $0x70] sm:$0xff] %vm314_vm0, %v6322_v62  ;;  %v6332_v2 = vld [vmem:[#allocation2 + $0xc0] sm:$0xff]  ;;  %v6334_v3 = vld [vmem:[#allocation2 + $0xb0] sm:$0xff]  ;;  %480 = vst.msk [vmem:[#allocation3 + $0x68] sm:$0xff] %vm314_vm0, %v6330_v1 }
  0x5d   : > { %483 = vst.msk [vmem:[#allocation3 + $0x80] sm:$0xff] %vm314_vm0, %v6332_v2  ;;  %482 = vst.msk [vmem:[#allocation3 + $0x78] sm:$0xff] %vm314_vm0, %v6334_v3  ;;  %v6344_v4 = vld [vmem:[#allocation2 + $0xd8] sm:$0xff]  ;;  %v6346_v5 = vld [vmem:[#allocation2 + $0xc8] sm:$0xff] }
  0x5e   : > { %v6348_v6 = vld [vmem:[#allocation2 + $0xf0] sm:$0xff]  ;;  %485 = vst.msk [vmem:[#allocation3 + $0x90] sm:$0xff] %vm314_vm0, %v6344_v4  ;;  %484 = vst.msk [vmem:[#allocation3 + $0x88] sm:$0xff] %vm314_vm0, %v6346_v5  ;;  %v6357_v7 = vld [vmem:[#allocation2 + $0xe0] sm:$0xff] }
  0x5f   : > { %587 = vrot.lane.b32.xlu0 %v6259_v42, %s5948_s23  ;;  %585 = vrot.lane.b32.xlu1 %v6265_v43, %s5948_s23  ;;  %487 = vst.msk [vmem:[#allocation3 + $0xa0] sm:$0xff] %vm314_vm0, %v6348_v6  ;;  %v6359_v8 = vld [vmem:[#allocation2 + $0x108] sm:$0xff]  ;;  %v6361_v9 = vld [vmem:[#allocation2 + $0xf8] sm:$0xff]  ;;  %486 = vst.msk [vmem:[#allocation3 + $0x98] sm:$0xff] %vm314_vm0, %v6357_v7 }
  0x60   : > { %v519_v10 = vld [vmem:[#allocation2 + $0xf1] sm:$0xff]  ;;  %489 = vst.msk [vmem:[#allocation3 + $0xb0] sm:$0xff] %vm314_vm0, %v6359_v8  ;;  %488 = vst.msk [vmem:[#allocation3 + $0xa8] sm:$0xff] %vm314_vm0, %v6361_v9  ;;  %v6369_v11 = vld [vmem:[#allocation2 + $0x120] sm:$0xff] }
  0x61   : > { %v6371_v12 = vld [vmem:[#allocation2 + $0x110] sm:$0xff]  ;;  %491 = vst.msk [vmem:[#allocation3 + $0xc0] sm:$0xff] %vm314_vm0, %v6369_v11  ;;  %v461_v13 = vld [vmem:[#allocation2 + $0x138] sm:$0xff]  ;;  %v518_v14 = vld [vmem:[#allocation2 + $0xe1] sm:$0xff] }
  0x62   : > { %490 = vst.msk [vmem:[#allocation3 + $0xb8] sm:$0xff] %vm314_vm0, %v6371_v12  ;;  %493 = vst.msk [vmem:[#allocation3 + $0xd0] sm:$0xff] %vm314_vm0, %v461_v13  ;;  %v6380_v15 = vld [vmem:[#allocation2 + $0x128] sm:$0xff]  ;;  %v463_v17 = vld [vmem:[#allocation2 + $0x150] sm:$0xff] }
  0x63   : > { %591 = vrot.lane.b32.xlu0 %v6267_v44, %s5948_s23  ;;  %589 = vrot.lane.b32.xlu1 %v6274_v47, %s5948_s23  ;;  %v521_v16 = vld [vmem:[#allocation2 + $0x109] sm:$0xff]  ;;  %492 = vst.msk [vmem:[#allocation3 + $0xc8] sm:$0xff] %vm314_vm0, %v6380_v15  ;;  %495 = vst.msk [vmem:[#allocation3 + $0xe0] sm:$0xff] %vm314_vm0, %v463_v17  ;;  %v520_v18 = vld [vmem:[#allocation2 + $0xf9] sm:$0xff] }
  0x64   : > { %v462_v19 = vld [vmem:[#allocation2 + $0x140] sm:$0xff]  ;;  %v465_v21 = vld [vmem:[#allocation2 + $0x168] sm:$0xff]  ;;  %v522_v22 = vld [vmem:[#allocation2 + $0x111] sm:$0xff] }
  0x65   : > { %v523_v20 = vld [vmem:[#allocation2 + $0x121] sm:$0xff]  ;;  %494 = vst.msk [vmem:[#allocation3 + $0xd8] sm:$0xff] %vm314_vm0, %v462_v19  ;;  %497 = vst.msk [vmem:[#allocation3 + $0xf0] sm:$0xff] %vm314_vm0, %v465_v21  ;;  %v464_v23 = vld [vmem:[#allocation2 + $0x158] sm:$0xff] }
  0x66   : > { %v525_v24 = vld [vmem:[#allocation2 + $0x139] sm:$0xff]  ;;  %496 = vst.msk [vmem:[#allocation3 + $0xe8] sm:$0xff] %vm314_vm0, %v464_v23  ;;  %v524_v27 = vld [vmem:[#allocation2 + $0x129] sm:$0xff]  ;;  %v527_v33 = vld [vmem:[#allocation2 + $0x151] sm:$0xff] }
  0x67   : > { %595 = vrot.lane.b32.xlu0 %v515_v49, %s5948_s23  ;;  %593 = vrot.lane.b32.xlu1 %v6283_v51, %s5948_s23  ;;  %v466_v28 = vld [vmem:[#allocation2 + $0x170] sm:$0xff]  ;;  %v526_v34 = vld [vmem:[#allocation2 + $0x141] sm:$0xff]  ;;  %v528_v36 = vld [vmem:[#allocation2 + $0x159] sm:$0xff] }
  0x68   : > { %498 = vst.msk [vmem:[#allocation3 + $0xf8] sm:$0xff] %vm314_vm0, %v466_v28  ;;  %v529_v35 = vld [vmem:[#allocation2 + $0x169] sm:$0xff]  ;;  %v530_v39 = vld [vmem:[#allocation2 + $0x171] sm:$0xff]  ;;  %v6401_v45 = vld [vmem:[#allocation2 + $0x1a] sm:$0xff] }
  0x69   : > { %v692_v38 = vld [vmem:[#allocation2 + $0x2] sm:$0xff]  ;;  %v693_v46 = vld [vmem:[#allocation2 + $0xa] sm:$0xff]  ;;  %v6406_v49 = vld [vmem:[#allocation2 + $0x32] sm:$0xff] }
  0x6a   : > { %v6421_v13 = vld [vmem:[#allocation2 + $0x62] sm:$0xff]  ;;  %v6435_v17 = vld [vmem:[#allocation2 + $0x6a] sm:$0xff]  ;;  %v6451_v21 = vld [vmem:[#allocation2 + $0x9a] sm:$0xff] }
  0x6b   : > { %599 = vrot.lane.b32.xlu0 %v517_v54, %s5948_s23  ;;  %597 = vrot.lane.b32.xlu1 %v516_v63, %s5948_s23  ;;  %v6411_v54 = vld [vmem:[#allocation2 + $0x22] sm:$0xff]  ;;  %v6413_v63 = vld [vmem:[#allocation2 + $0x4a] sm:$0xff]  ;;  %v6459_v23 = vld [vmem:[#allocation2 + $0xb2] sm:$0xff] }
  0x6c   : > { %v6443_v19 = vld [vmem:[#allocation2 + $0x82] sm:$0xff]  ;;  %v712_v28 = vld [vmem:[#allocation2 + $0xf2] sm:$0xff] }
  0x6f   : > { %603 = vrot.lane.b32.xlu0 %v519_v10, %s5948_s23  ;;  %601 = vrot.lane.b32.xlu1 %v518_v14, %s5948_s23  ;;  %v6419_v10 = vld [vmem:[#allocation2 + $0x3a] sm:$0xff]  ;;  %v6427_v14 = vld [vmem:[#allocation2 + $0x52] sm:$0xff] }
  0x73   : > { %607 = vrot.lane.b32.xlu0 %v521_v16, %s5948_s23  ;;  %605 = vrot.lane.b32.xlu1 %v520_v18, %s5948_s23  ;;  %v6429_v16 = vld [vmem:[#allocation2 + $0x7a] sm:$0xff]  ;;  %v6437_v18 = vld [vmem:[#allocation2 + $0x92] sm:$0xff] }
  0x77   : > { %611 = vrot.lane.b32.xlu0 %v523_v20, %s5948_s23  ;;  %609 = vrot.lane.b32.xlu1 %v522_v22, %s5948_s23  ;;  %v6445_v20 = vld [vmem:[#allocation2 + $0xaa] sm:$0xff]  ;;  %v6453_v22 = vld [vmem:[#allocation2 + $0xc2] sm:$0xff] }
  0x7b   : > { %615 = vrot.lane.b32.xlu0 %v525_v24, %s5948_s23  ;;  %613 = vrot.lane.b32.xlu1 %v524_v27, %s5948_s23  ;;  %v710_v24 = vld [vmem:[#allocation2 + $0xda] sm:$0xff]  ;;  %v6464_v27 = vld [vmem:[#allocation2 + $0xca] sm:$0xff] }
  0x7f   : > { %619 = vrot.lane.b32.xlu0 %v527_v33, %s5948_s23  ;;  %617 = vrot.lane.b32.xlu1 %v526_v34, %s5948_s23  ;;  %v711_v33 = vld [vmem:[#allocation2 + $0xe2] sm:$0xff]  ;;  %v714_v34 = vld [vmem:[#allocation2 + $0x10a] sm:$0xff] }
  0x83   : > { %623 = vrot.lane.b32.xlu0 %v529_v35, %s5948_s23  ;;  %621 = vrot.lane.b32.xlu1 %v528_v36, %s5948_s23  ;;  %v713_v35 = vld [vmem:[#allocation2 + $0xfa] sm:$0xff]  ;;  %v716_v36 = vld [vmem:[#allocation2 + $0x122] sm:$0xff] }
  0x87   : > { %756 = vrot.lane.b32.xlu0 %v692_v38, %s5949_s26  ;;  %625 = vrot.lane.b32.xlu1 %v530_v39, %s5948_s23  ;;  %v715_v38 = vld [vmem:[#allocation2 + $0x112] sm:$0xff]  ;;  %v718_v39 = vld [vmem:[#allocation2 + $0x13a] sm:$0xff] }
  0x8b   : > { %760 = vrot.lane.b32.xlu0 %v6401_v45, %s5949_s26  ;;  %758 = vrot.lane.b32.xlu1 %v693_v46, %s5949_s26 }
  0x8f   : > { %764 = vrot.lane.b32.xlu0 %v6406_v49, %s5949_s26  ;;  %762 = vrot.lane.b32.xlu1 %v6411_v54, %s5949_s26 }
  0x93   : > { %768 = vrot.lane.b32.xlu0 %v6413_v63, %s5949_s26  ;;  %766 = vrot.lane.b32.xlu1 %v6419_v10, %s5949_s26 }
  0x97   : > { %772 = vrot.lane.b32.xlu0 %v6421_v13, %s5949_s26  ;;  %770 = vrot.lane.b32.xlu1 %v6427_v14, %s5949_s26 }
  0x9b   : > { %776 = vrot.lane.b32.xlu0 %v6429_v16, %s5949_s26  ;;  %774 = vrot.lane.b32.xlu1 %v6435_v17, %s5949_s26 }
  0x9f   : > { %780 = vrot.lane.b32.xlu0 %v6437_v18, %s5949_s26  ;;  %778 = vrot.lane.b32.xlu1 %v6443_v19, %s5949_s26 }
  0xa3   : > { %784 = vrot.lane.b32.xlu0 %v6445_v20, %s5949_s26  ;;  %782 = vrot.lane.b32.xlu1 %v6451_v21, %s5949_s26 }
  0xa6   : > { %v564_v46 = vpop.permute.xlu0 %563 }
  0xa7   : > { %788 = vrot.lane.b32.xlu0 %v6453_v22, %s5949_s26  ;;  %786 = vrot.lane.b32.xlu1 %v6459_v23, %s5949_s26  ;;  %660 = vst.msk [vmem:[#allocation3] sm:$0xff] %vm659_vm2, %v564_v46 }
  0xab   : > { %792 = vrot.lane.b32.xlu0 %v710_v24, %s5949_s26  ;;  %790 = vrot.lane.b32.xlu1 %v6464_v27, %s5949_s26  ;;  %v717_v24 = vld [vmem:[#allocation2 + $0x12a] sm:$0xff] }
  0xaf   : > { %796 = vrot.lane.b32.xlu0 %v712_v28, %s5949_s26  ;;  %794 = vrot.lane.b32.xlu1 %v711_v33, %s5949_s26  ;;  %v720_v28 = vld [vmem:[#allocation2 + $0x152] sm:$0xff] }
  0xb3   : > { %800 = vrot.lane.b32.xlu0 %v714_v34, %s5949_s26  ;;  %798 = vrot.lane.b32.xlu1 %v713_v35, %s5949_s26  ;;  %v719_v34 = vld [vmem:[#allocation2 + $0x142] sm:$0xff] }
  0xb7   : > { %804 = vrot.lane.b32.xlu0 %v716_v36, %s5949_s26  ;;  %802 = vrot.lane.b32.xlu1 %v715_v38, %s5949_s26  ;;  %v568_v35 = vpop.permute.xlu1 %567  ;;  %v722_v36 = vld [vmem:[#allocation2 + $0x16a] sm:$0xff]  ;;  %v721_v38 = vld [vmem:[#allocation2 + $0x15a] sm:$0xff] }
  0xb8   : > { %v566_v33 = vpop.permute.xlu0 %565  ;;  %662 = vst.msk [vmem:[#allocation3 + $0x10] sm:$0xff] %vm659_vm2, %v568_v35 }
  0xb9   : > { %661 = vst.msk [vmem:[#allocation3 + $0x8] sm:$0xff] %vm659_vm2, %v566_v33 }
  0xbb   : > { %808 = vrot.lane.b32.xlu0 %v718_v39, %s5949_s26  ;;  %806 = vrot.lane.b32.xlu1 %v717_v24, %s5949_s26  ;;  %v723_v24 = vld [vmem:[#allocation2 + $0x172] sm:$0xff] }
  0xbf   : > { %812 = vrot.lane.b32.xlu0 %v720_v28, %s5949_s26  ;;  %810 = vrot.lane.b32.xlu1 %v719_v34, %s5949_s26 }
  0xc1   : > { %v572_v0 = vpop.permute.xlu0 %571  ;;  %v570_v39 = vpop.permute.xlu1 %569 }
  0xc2   : > { %664 = vst.msk [vmem:[#allocation3 + $0x20] sm:$0xff] %vm659_vm2, %v572_v0  ;;  %663 = vst.msk [vmem:[#allocation3 + $0x18] sm:$0xff] %vm659_vm2, %v570_v39 }
  0xc3   : > { %816 = vrot.lane.b32.xlu0 %v722_v36, %s5949_s26  ;;  %814 = vrot.lane.b32.xlu1 %v721_v38, %s5949_s26 }
  0xc5   : > { %v576_v46 = vpop.permute.xlu0 %575  ;;  %v574_v28 = vpop.permute.xlu1 %573 }
  0xc6   : > { %666 = vst.msk [vmem:[#allocation3 + $0x30] sm:$0xff] %vm659_vm2, %v576_v46  ;;  %665 = vst.msk [vmem:[#allocation3 + $0x28] sm:$0xff] %vm659_vm2, %v574_v28 }
  0xc7   : > { %949 = vrot.lane.b32.xlu0 %v6277_v48, %s5950_s27  ;;  %818 = vrot.lane.b32.xlu1 %v723_v24, %s5949_s26 }
  0xc9   : > { %v580_v0 = vpop.permute.xlu0 %579  ;;  %v578_v33 = vpop.permute.xlu1 %577 }
  0xca   : > { %668 = vst.msk [vmem:[#allocation3 + $0x40] sm:$0xff] %vm659_vm2, %v580_v0  ;;  %667 = vst.msk [vmem:[#allocation3 + $0x38] sm:$0xff] %vm659_vm2, %v578_v33  ;;  %v2079_v33 = vld [vmem:[%s8112_s2 + $0x18] sm:$0xff] }
  0xcb   : > { %953 = vrot.lane.b32.xlu0 %v6281_v50, %s5950_s27  ;;  %951 = vrot.lane.b32.xlu1 %v6287_v52, %s5950_s27 }
  0xcd   : > { %v584_v34 = vpop.permute.xlu0 %583  ;;  %v582_v48 = vpop.permute.xlu1 %581 }
  0xce   : > { %670 = vst.msk [vmem:[#allocation3 + $0x50] sm:$0xff] %vm659_vm2, %v584_v34  ;;  %669 = vst.msk [vmem:[#allocation3 + $0x48] sm:$0xff] %vm659_vm2, %v582_v48 }
  0xcf   : > { %957 = vrot.lane.b32.xlu0 %v6289_v53, %s5950_s27  ;;  %955 = vrot.lane.b32.xlu1 %v6297_v55, %s5950_s27 }
  0xd1   : > { %v588_v35 = vpop.permute.xlu0 %587  ;;  %v586_v36 = vpop.permute.xlu1 %585 }
  0xd2   : > { %672 = vst.msk [vmem:[#allocation3 + $0x60] sm:$0xff] %vm659_vm2, %v588_v35  ;;  %671 = vst.msk [vmem:[#allocation3 + $0x58] sm:$0xff] %vm659_vm2, %v586_v36  ;;  %v2080_v36 = vld [vmem:[%s8112_s2 + $0x20] sm:$0xf] }
  0xd3   : > { %961 = vrot.lane.b32.xlu0 %v6299_v56, %s5950_s27  ;;  %959 = vrot.lane.b32.xlu1 %v6306_v57, %s5950_s27 }
  0xd5   : > { %v592_v38 = vpop.permute.xlu0 %591  ;;  %v590_v52 = vpop.permute.xlu1 %589 }
  0xd6   : > { %674 = vst.msk [vmem:[#allocation3 + $0x70] sm:$0xff] %vm659_vm2, %v592_v38  ;;  %673 = vst.msk [vmem:[#allocation3 + $0x68] sm:$0xff] %vm659_vm2, %v590_v52 }
  0xd7   : > { %1144 = vrot.lane.b32.xlu0 %v6219_v29, %s5951_s28  ;;  %1142 = vrot.lane.b32.xlu1 %v6206_v25, %s5951_s28  ;;  %v2076_v25 = vld [vmem:[%s8112_s2] sm:$0xff] }
  0xd9   : > { %v596_v39 = vpop.permute.xlu0 %595  ;;  %v594_v46 = vpop.permute.xlu1 %593 }
  0xda   : > { %676 = vst.msk [vmem:[#allocation3 + $0x80] sm:$0xff] %vm659_vm2, %v596_v39  ;;  %675 = vst.msk [vmem:[#allocation3 + $0x78] sm:$0xff] %vm659_vm2, %v594_v46 }
  0xdb   : > { %1337 = vrot.lane.b32.xlu0 %v6411_v54, %s5952_s29  ;;  %1335 = vrot.lane.b32.xlu1 %v6401_v45, %s5952_s29  ;;  %v2077_v54 = vld [vmem:[%s8112_s2 + $0x8] sm:$0xff]  ;;  %v2078_v45 = vld [vmem:[%s8112_s2 + $0x10] sm:$0xff] }
  0xdc   : > { %v5548_v0 = vpack.c.bf16 %v2077_v54, %v2076_v25  ;;  %v5552_v48 = vpack.c.bf16 %v2079_v33, %v2078_v45 }
  0xdd   : > { %v600_v24 = vpop.permute.xlu0 %599  ;;  %v598_v29 = vpop.permute.xlu1 %597 }
  0xde   : > { %678 = vst.msk [vmem:[#allocation3 + $0x90] sm:$0xff] %vm659_vm2, %v600_v24  ;;  %677 = vst.msk [vmem:[#allocation3 + $0x88] sm:$0xff] %vm659_vm2, %v598_v29  ;;  %5549 = vmatprep.subr.bf16.mxu0 %v5548_v0 }
  0xdf   : > { %1531 = vrot.lane.b32.xlu0 %v6297_v55, %s5953_s30  ;;  %1529 = vrot.lane.b32.xlu1 %v6281_v50, %s5953_s30 }
  0xe0   : > { %5551 = vmatpush3.bf16.msra.mxu0 %v5548_v0 }
  0xe1   : > { %v604_v28 = vpop.permute.xlu0 %603  ;;  %v602_v55 = vpop.permute.xlu1 %601  ;;  %5553 = vmatprep.subr.bf16.mxu0 %v5552_v48 }
  0xe2   : > { %680 = vst.msk [vmem:[#allocation3 + $0xa0] sm:$0xff] %vm659_vm2, %v604_v28  ;;  %679 = vst.msk [vmem:[#allocation3 + $0x98] sm:$0xff] %vm659_vm2, %v602_v55 }
  0xe3   : > { %1146 = vrot.lane.b32.xlu0 %v6208_v26, %s5951_s28  ;;  %1722 = vrot.lane.b32.xlu1 %v6208_v26, %s5954_s16 }
  0xe4   : > { %5555 = vmatpush3.bf16.msra.mxu0 %v5552_v48 }
  0xe5   : > { %v608_v34 = vpop.permute.xlu0 %607  ;;  %v606_v50 = vpop.permute.xlu1 %605  ;;  %5432 = vmatprep.subr.msk.mxu0 %vm2185_vm3, %v2080_v36 }
  0xe6   : > { %682 = vst.msk [vmem:[#allocation3 + $0xb0] sm:$0xff] %vm659_vm2, %v608_v34  ;;  %681 = vst.msk [vmem:[#allocation3 + $0xa8] sm:$0xff] %vm659_vm2, %v606_v50 }
  0xe7   : > { %1915 = vrot.lane.b32.xlu0 %v6406_v49, %s5955_s17  ;;  %1724 = vrot.lane.b32.xlu1 %v6229_v31, %s5954_s16 }
  0xe8   : > { %5433 = vmatpush3.msk.msra.mxu0 %vm2185_vm3, %v2080_v36  ;;  %vm3725_vm3 = vcmask 458112  }
  0xe9   : > { %v612_v35 = vpop.permute.xlu0 %611  ;;  %v610_v26 = vpop.permute.xlu1 %609 }
  0xea   : > { %684 = vst.msk [vmem:[#allocation3 + $0xc0] sm:$0xff] %vm659_vm2, %v612_v35  ;;  %683 = vst.msk [vmem:[#allocation3 + $0xb8] sm:$0xff] %vm659_vm2, %v610_v26 }
  0xeb   : > { %1339 = vrot.lane.b32.xlu0 %v6406_v49, %s5952_s29  ;;  %1148 = vrot.lane.b32.xlu1 %v6229_v31, %s5951_s28 }
  0xed   : > { %v616_v38 = vpop.permute.xlu0 %615  ;;  %v614_v52 = vpop.permute.xlu1 %613 }
  0xee   : > { %686 = vst.msk [vmem:[#allocation3 + $0xd0] sm:$0xff] %vm659_vm2, %v616_v38  ;;  %685 = vst.msk [vmem:[#allocation3 + $0xc8] sm:$0xff] %vm659_vm2, %v614_v52 }
  0xef   : > { %1341 = vrot.lane.b32.xlu0 %v6419_v10, %s5952_s29  ;;  %1917 = vrot.lane.b32.xlu1 %v6419_v10, %s5955_s17 }
  0xf1   : > { %v620_v39 = vpop.permute.xlu0 %619  ;;  %v618_v49 = vpop.permute.xlu1 %617 }
  0xf2   : > { %688 = vst.msk [vmem:[#allocation3 + $0xe0] sm:$0xff] %vm659_vm2, %v620_v39  ;;  %687 = vst.msk [vmem:[#allocation3 + $0xd8] sm:$0xff] %vm659_vm2, %v618_v49 }
  0xf3   : > { %1535 = vrot.lane.b32.xlu0 %v6306_v57, %s5953_s30  ;;  %1533 = vrot.lane.b32.xlu1 %v6289_v53, %s5953_s30 }
  0xf5   : > { %v624_v46 = vpop.permute.xlu0 %623  ;;  %v622_v31 = vpop.permute.xlu1 %621 }
  0xf6   : > { %690 = vst.msk [vmem:[#allocation3 + $0xf0] sm:$0xff] %vm659_vm2, %v624_v46  ;;  %689 = vst.msk [vmem:[#allocation3 + $0xe8] sm:$0xff] %vm659_vm2, %v622_v31 }
  0xf7   : > { %1150 = vrot.lane.b32.xlu0 %v6223_v30, %s5951_s28  ;;  %1726 = vrot.lane.b32.xlu1 %v6223_v30, %s5954_s16 }
  0xf9   : > { %v757_v10 = vpop.permute.xlu0 %756  ;;  %v626_v57 = vpop.permute.xlu1 %625 }
  0xfa   : > { %853 = vst.msk [vmem:[#allocation3] sm:$0xff] %vm852_vm4, %v757_v10 }
  0xfb   : > { %1919 = vrot.lane.b32.xlu0 %v6413_v63, %s5955_s17  ;;  %691 = vst.msk [vmem:[#allocation3 + $0xf8] sm:$0xff] %vm659_vm2, %v626_v57  ;;  %1728 = vrot.lane.b32.xlu1 %v6244_v37, %s5954_s16  ;;  %v1090_v57 = vld [vmem:[#allocation2 + $0xa9] sm:$0xff]  ;;  %vm3531_vm2 = vcmask 392512  }
  0xfd   : > { %v761_v53 = vpop.permute.xlu0 %760  ;;  %v759_v24 = vpop.permute.xlu1 %758 }
  0xfe   : > { %855 = vst.msk [vmem:[#allocation3 + $0x10] sm:$0xff] %vm852_vm4, %v761_v53  ;;  %854 = vst.msk [vmem:[#allocation3 + $0x8] sm:$0xff] %vm852_vm4, %v759_v24 }
  0xff   : > { %1343 = vrot.lane.b32.xlu0 %v6413_v63, %s5952_s29  ;;  %1152 = vrot.lane.b32.xlu1 %v6244_v37, %s5951_s28 }
 0x101   : > { %v765_v29 = vpop.permute.xlu0 %764  ;;  %v763_v30 = vpop.permute.xlu1 %762 }
 0x102   : > { %857 = vst.msk [vmem:[#allocation3 + $0x20] sm:$0xff] %vm852_vm4, %v765_v29  ;;  %856 = vst.msk [vmem:[#allocation3 + $0x18] sm:$0xff] %vm852_vm4, %v763_v30 }
 0x103   : > { %1345 = vrot.lane.b32.xlu0 %v6427_v14, %s5952_s29  ;;  %1921 = vrot.lane.b32.xlu1 %v6427_v14, %s5955_s17 }
 0x105   : > { %v769_v25 = vpop.permute.xlu0 %768  ;;  %v767_v63 = vpop.permute.xlu1 %766 }
 0x106   : > { %859 = vst.msk [vmem:[#allocation3 + $0x30] sm:$0xff] %vm852_vm4, %v769_v25  ;;  %858 = vst.msk [vmem:[#allocation3 + $0x28] sm:$0xff] %vm852_vm4, %v767_v63 }
 0x107   : > { %1539 = vrot.lane.b32.xlu0 %v6310_v59, %s5953_s30  ;;  %1537 = vrot.lane.b32.xlu1 %v6299_v56, %s5953_s30 }
 0x109   : > { %v773_v54 = vpop.permute.xlu0 %772  ;;  %v771_v37 = vpop.permute.xlu1 %770 }
 0x10a   : > { %861 = vst.msk [vmem:[#allocation3 + $0x40] sm:$0xff] %vm852_vm4, %v773_v54  ;;  %860 = vst.msk [vmem:[#allocation3 + $0x38] sm:$0xff] %vm852_vm4, %v771_v37  ;;  %v1670_v54 = vld [vmem:[#allocation2 + $0xc1] sm:$0xff] }
 0x10b   : > { %963 = vrot.lane.b32.xlu0 %v6310_v59, %s5950_s27  ;;  %1730 = vrot.lane.b32.xlu1 %v6231_v32, %s5954_s16 }
 0x10d   : > { %v777_v28 = vpop.permute.xlu0 %776  ;;  %v775_v14 = vpop.permute.xlu1 %774 }
 0x10e   : > { %863 = vst.msk [vmem:[#allocation3 + $0x50] sm:$0xff] %vm852_vm4, %v777_v28  ;;  %862 = vst.msk [vmem:[#allocation3 + $0x48] sm:$0xff] %vm852_vm4, %v775_v14  ;;  %v1671_v14 = vld [vmem:[#allocation2 + $0xc9] sm:$0xff] }
 0x10f   : > { %1732 = vrot.lane.b32.xlu0 %v6257_v41, %s5954_s16  ;;  %1154 = vrot.lane.b32.xlu1 %v6231_v32, %s5951_s28 }
 0x111   : > { %v781_v0 = vpop.permute.xlu0 %780  ;;  %v779_v56 = vpop.permute.xlu1 %778 }
 0x112   : > { %865 = vst.msk [vmem:[#allocation3 + $0x60] sm:$0xff] %vm852_vm4, %v781_v0  ;;  %864 = vst.msk [vmem:[#allocation3 + $0x58] sm:$0xff] %vm852_vm4, %v779_v56 }
 0x113   : > { %1156 = vrot.lane.b32.xlu0 %v6257_v41, %s5951_s28  ;;  %1923 = vrot.lane.b32.xlu1 %v6421_v13, %s5955_s17 }
 0x115   : > { %v785_v59 = vpop.permute.xlu0 %784  ;;  %v783_v55 = vpop.permute.xlu1 %782 }
 0x116   : > { %867 = vst.msk [vmem:[#allocation3 + $0x70] sm:$0xff] %vm852_vm4, %v785_v59  ;;  %866 = vst.msk [vmem:[#allocation3 + $0x68] sm:$0xff] %vm852_vm4, %v783_v55 }
 0x117   : > { %1925 = vrot.lane.b32.xlu0 %v6435_v17, %s5955_s17  ;;  %1347 = vrot.lane.b32.xlu1 %v6421_v13, %s5952_s29 }
 0x119   : > { %v789_v45 = vpop.permute.xlu0 %788  ;;  %v787_v32 = vpop.permute.xlu1 %786 }
 0x11a   : > { %869 = vst.msk [vmem:[#allocation3 + $0x80] sm:$0xff] %vm852_vm4, %v789_v45  ;;  %868 = vst.msk [vmem:[#allocation3 + $0x78] sm:$0xff] %vm852_vm4, %v787_v32 }
 0x11b   : > { %1541 = vrot.lane.b32.xlu0 %v6308_v58, %s5953_s30  ;;  %1349 = vrot.lane.b32.xlu1 %v6435_v17, %s5952_s29 }
 0x11d   : > { %v793_v41 = vpop.permute.xlu0 %792  ;;  %v791_v33 = vpop.permute.xlu1 %790 }
 0x11e   : > { %871 = vst.msk [vmem:[#allocation3 + $0x90] sm:$0xff] %vm852_vm4, %v793_v41  ;;  %870 = vst.msk [vmem:[#allocation3 + $0x88] sm:$0xff] %vm852_vm4, %v791_v33 }
 0x11f   : > { %1543 = vrot.lane.b32.xlu0 %v6320_v61, %s5953_s30  ;;  %965 = vrot.lane.b32.xlu1 %v6308_v58, %s5950_s27 }
 0x121   : > { %v797_v34 = vpop.permute.xlu0 %796  ;;  %v795_v13 = vpop.permute.xlu1 %794 }
 0x122   : > { %873 = vst.msk [vmem:[#allocation3 + $0xa0] sm:$0xff] %vm852_vm4, %v797_v34  ;;  %872 = vst.msk [vmem:[#allocation3 + $0x98] sm:$0xff] %vm852_vm4, %v795_v13  ;;  %v1672_v13 = vld [vmem:[#allocation2 + $0xd9] sm:$0xff] }
 0x123   : > { %967 = vrot.lane.b32.xlu0 %v6320_v61, %s5950_s27  ;;  %1734 = vrot.lane.b32.xlu1 %v6249_v40, %s5954_s16 }
 0x125   : > { %v801_v48 = vpop.permute.xlu0 %800  ;;  %v799_v17 = vpop.permute.xlu1 %798 }
 0x126   : > { %875 = vst.msk [vmem:[#allocation3 + $0xb0] sm:$0xff] %vm852_vm4, %v801_v48  ;;  %874 = vst.msk [vmem:[#allocation3 + $0xa8] sm:$0xff] %vm852_vm4, %v799_v17  ;;  %v1673_v48 = vld [vmem:[#allocation2 + $0xe1] sm:$0xff] }
 0x127   : > { %1736 = vrot.lane.b32.xlu0 %v6265_v43, %s5954_s16  ;;  %1158 = vrot.lane.b32.xlu1 %v6249_v40, %s5951_s28 }
 0x129   : > { %v805_v50 = vpop.permute.xlu0 %804  ;;  %v803_v58 = vpop.permute.xlu1 %802 }
 0x12a   : > { %877 = vst.msk [vmem:[#allocation3 + $0xc0] sm:$0xff] %vm852_vm4, %v805_v50  ;;  %876 = vst.msk [vmem:[#allocation3 + $0xb8] sm:$0xff] %vm852_vm4, %v803_v58 }
 0x12b   : > { %1160 = vrot.lane.b32.xlu0 %v6265_v43, %s5951_s28  ;;  %1927 = vrot.lane.b32.xlu1 %v6429_v16, %s5955_s17 }
 0x12d   : > { %v809_v61 = vpop.permute.xlu0 %808  ;;  %v807_v35 = vpop.permute.xlu1 %806 }
 0x12e   : > { %879 = vst.msk [vmem:[#allocation3 + $0xd0] sm:$0xff] %vm852_vm4, %v809_v61  ;;  %878 = vst.msk [vmem:[#allocation3 + $0xc8] sm:$0xff] %vm852_vm4, %v807_v35  ;;  %v1866_v61 = vld [vmem:[#allocation2 + $0xe2] sm:$0xff] }
 0x12f   : > { %1929 = vrot.lane.b32.xlu0 %v6443_v19, %s5955_s17  ;;  %1351 = vrot.lane.b32.xlu1 %v6429_v16, %s5952_s29 }
 0x131   : > { %v813_v36 = vpop.permute.xlu0 %812  ;;  %v811_v40 = vpop.permute.xlu1 %810 }
 0x132   : > { %881 = vst.msk [vmem:[#allocation3 + $0xe0] sm:$0xff] %vm852_vm4, %v813_v36  ;;  %880 = vst.msk [vmem:[#allocation3 + $0xd8] sm:$0xff] %vm852_vm4, %v811_v40 }
 0x133   : > { %1545 = vrot.lane.b32.xlu0 %v6318_v60, %s5953_s30  ;;  %1353 = vrot.lane.b32.xlu1 %v6443_v19, %s5952_s29 }
 0x135   : > { %v817_v43 = vpop.permute.xlu0 %816  ;;  %v815_v26 = vpop.permute.xlu1 %814 }
 0x136   : > { %883 = vst.msk [vmem:[#allocation3 + $0xf0] sm:$0xff] %vm852_vm4, %v817_v43  ;;  %882 = vst.msk [vmem:[#allocation3 + $0xe8] sm:$0xff] %vm852_vm4, %v815_v26 }
 0x137   : > { %1547 = vrot.lane.b32.xlu0 %v6330_v1, %s5953_s30  ;;  %969 = vrot.lane.b32.xlu1 %v6318_v60, %s5950_s27 }
 0x139   : > { %v950_v16 = vpop.permute.xlu0 %949  ;;  %v819_v38 = vpop.permute.xlu1 %818 }
 0x13a   : > { %1046 = vst.msk [vmem:[#allocation3] sm:$0xff] %vm1045_vm5, %v950_v16 }
 0x13b   : > { %971 = vrot.lane.b32.xlu0 %v6330_v1, %s5950_s27  ;;  %884 = vst.msk [vmem:[#allocation3 + $0xf8] sm:$0xff] %vm852_vm4, %v819_v38  ;;  %1738 = vrot.lane.b32.xlu1 %v6259_v42, %s5954_s16  ;;  %vm3918_vm4 = vcmask 523712  }
 0x13d   : > { %v954_v19 = vpop.permute.xlu0 %953  ;;  %v952_v52 = vpop.permute.xlu1 %951 }
 0x13e   : > { %1048 = vst.msk [vmem:[#allocation3 + $0x10] sm:$0xff] %vm1045_vm5, %v954_v19  ;;  %1047 = vst.msk [vmem:[#allocation3 + $0x8] sm:$0xff] %vm1045_vm5, %v952_v52 }
 0x13f   : > { %1740 = vrot.lane.b32.xlu0 %v6274_v47, %s5954_s16  ;;  %1162 = vrot.lane.b32.xlu1 %v6259_v42, %s5951_s28 }
 0x141   : > { %v958_v39 = vpop.permute.xlu0 %957  ;;  %v956_v60 = vpop.permute.xlu1 %955 }
 0x142   : > { %1050 = vst.msk [vmem:[#allocation3 + $0x20] sm:$0xff] %vm1045_vm5, %v958_v39  ;;  %1049 = vst.msk [vmem:[#allocation3 + $0x18] sm:$0xff] %vm1045_vm5, %v956_v60  ;;  %v400_v39 = vld [vmem:[%s6161_s22 + $0xf0] sm:$0xff] }
 0x143   : > { %1164 = vrot.lane.b32.xlu0 %v6274_v47, %s5951_s28  ;;  %1931 = vrot.lane.b32.xlu1 %v6437_v18, %s5955_s17  ;;  %v1674_v60 = vld [vmem:[#allocation2 + $0xf1] sm:$0xff]  ;;  %433 = vst.msk [vmem:[#allocation2 + $0x181] sm:$0xff] %vm314_vm0, %v400_v39 }
 0x145   : > { %v962_v1 = vpop.permute.xlu0 %961  ;;  %v960_v49 = vpop.permute.xlu1 %959 }
 0x146   : > { %1052 = vst.msk [vmem:[#allocation3 + $0x30] sm:$0xff] %vm1045_vm5, %v962_v1  ;;  %1051 = vst.msk [vmem:[#allocation3 + $0x28] sm:$0xff] %vm1045_vm5, %v960_v49  ;;  %v1675_v49 = vld [vmem:[#allocation2 + $0xf9] sm:$0xff] }
 0x147   : > { %1933 = vrot.lane.b32.xlu0 %v6451_v21, %s5955_s17  ;;  %1355 = vrot.lane.b32.xlu1 %v6437_v18, %s5952_s29 }
 0x149   : > { %v1145_v42 = vpop.permute.xlu0 %1144  ;;  %v1143_v47 = vpop.permute.xlu1 %1142 }
 0x14a   : > { %1240 = vst.msk [vmem:[#allocation3 + $0x8] sm:$0xff] %vm1238_vm6, %v1145_v42  ;;  %1239 = vst.msk [vmem:[#allocation3] sm:$0xff] %vm1238_vm6, %v1143_v47  ;;  %v401_v47 = vld [vmem:[%s6161_s22 + $0xf8] sm:$0xff]  ;;  %s5956_s22 = smov 40  }
 0x14b   : > { %1549 = vrot.lane.b32.xlu0 %v6322_v62, %s5953_s30  ;;  %1357 = vrot.lane.b32.xlu1 %v6451_v21, %s5952_s29  ;;  %434 = vst.msk [vmem:[#allocation2 + $0x189] sm:$0xff] %vm314_vm0, %v401_v47  ;;  %vm3145_vm0 = vcmask 261312  }
 0x14d   : > { %v1338_v46 = vpop.permute.xlu0 %1337  ;;  %v1336_v31 = vpop.permute.xlu1 %1335 }
 0x14e   : > { %1433 = vst.msk [vmem:[#allocation3 + $0x8] sm:$0xff] %vm1431_vm7, %v1338_v46  ;;  %1432 = vst.msk [vmem:[#allocation3] sm:$0xff] %vm1431_vm7, %v1336_v31  ;;  %v1867_v46 = vld [vmem:[#allocation2 + $0xf2] sm:$0xff] }
 0x14f   : > { %1551 = vrot.lane.b32.xlu0 %v6334_v3, %s5953_s30  ;;  %973 = vrot.lane.b32.xlu1 %v6322_v62, %s5950_s27 }
 0x151   : > { %v1532_v18 = vpop.permute.xlu0 %1531  ;;  %v1530_v10 = vpop.permute.xlu1 %1529 }
 0x152   : > { %1627 = vst.msk [vmem:[#allocation3 + $0x8] sm:$0xff] %vm1625_vm8, %v1532_v18  ;;  %1626 = vst.msk [vmem:[#allocation3] sm:$0xff] %vm1625_vm8, %v1530_v10  ;;  %v1868_v18 = vld [vmem:[#allocation2 + $0xfa] sm:$0xff] }
 0x153   : > { %975 = vrot.lane.b32.xlu0 %v6334_v3, %s5950_s27  ;;  %1742 = vrot.lane.b32.xlu1 %v6267_v44, %s5954_s16 }
 0x155   : > { %v1147_v21 = vpop.permute.xlu0 %1146  ;;  %v1723_v53 = vpop.permute.xlu1 %1722 }
 0x156   : > { %1241 = vst.msk [vmem:[#allocation3 + $0x10] sm:$0xff] %vm1238_vm6, %v1147_v21 }
 0x157   : > { %1744 = vrot.lane.b32.xlu0 %v6283_v51, %s5954_s16  ;;  %1819 = vst.msk [vmem:[#allocation3] sm:$0xff] %vm1818_vm9, %v1723_v53  ;;  %1166 = vrot.lane.b32.xlu1 %v1090_v57, %s5951_s28 }
 0x159   : > { %v1916_v62 = vpop.permute.xlu0 %1915  ;;  %v1725_v3 = vpop.permute.xlu1 %1724 }
 0x15a   : > { %2012 = vst.msk [vmem:[#allocation3] sm:$0xff] %vm2011_vm10, %v1916_v62 }
 0x15b   : > { %1168 = vrot.lane.b32.xlu0 %v6283_v51, %s5951_s28  ;;  %1820 = vst.msk [vmem:[#allocation3 + $0x8] sm:$0xff] %vm1818_vm9, %v1725_v3  ;;  %1935 = vrot.lane.b32.xlu1 %v6445_v20, %s5955_s17 }
 0x15d   : > { %v1340_v44 = vpop.permute.xlu0 %1339  ;;  %v1149_v24 = vpop.permute.xlu1 %1148 }
 0x15e   : > { %1434 = vst.msk [vmem:[#allocation3 + $0x10] sm:$0xff] %vm1431_vm7, %v1340_v44 }
 0x15f   : > { %1937 = vrot.lane.b32.xlu0 %v6459_v23, %s5955_s17  ;;  %1242 = vst.msk [vmem:[#allocation3 + $0x18] sm:$0xff] %vm1238_vm6, %v1149_v24  ;;  %1359 = vrot.lane.b32.xlu1 %v6445_v20, %s5952_s29 }
 0x161   : > { %v1342_v29 = vpop.permute.xlu0 %1341  ;;  %v2044_v30 = vld [vmem:[#allocation3] sm:$0xff]  ;;  %v1918_v51 = vpop.permute.xlu1 %1917 }
 0x162   : > { %1435 = vst.msk [vmem:[#allocation3 + $0x18] sm:$0xff] %vm1431_vm7, %v1342_v29  ;;  %5434 = vmatprep.mubr.msk.f32.mxu0 %vm2088_vm11, %v2044_v30  ;;  %v1676_v30 = vld [vmem:[#allocation2 + $0x109] sm:$0xff] }
 0x163   : > { %1553 = vrot.lane.b32.xlu0 %v6332_v2, %s5953_s30  ;;  %2013 = vst.msk [vmem:[#allocation3 + $0x8] sm:$0xff] %vm2011_vm10, %v1918_v51  ;;  %1361 = vrot.lane.b32.xlu1 %v6459_v23, %s5952_s29 }
 0x165   : > { %v1536_v25 = vpop.permute.xlu0 %1535  ;;  %v1534_v63 = vpop.permute.xlu1 %1533 }
 0x166   : > { %1629 = vst.msk [vmem:[#allocation3 + $0x18] sm:$0xff] %vm1625_vm8, %v1536_v25  ;;  %1628 = vst.msk [vmem:[#allocation3 + $0x10] sm:$0xff] %vm1625_vm8, %v1534_v63  ;;  %v1677_v25 = vld [vmem:[#allocation2 + $0x111] sm:$0xff] }
 0x167   : > { %1555 = vrot.lane.b32.xlu0 %v6346_v5, %s5953_s30  ;;  %977 = vrot.lane.b32.xlu1 %v6332_v2, %s5950_s27 }
 0x169   : > { %v1151_v20 = vpop.permute.xlu0 %1150  ;;  %v1727_v37 = vpop.permute.xlu1 %1726 }
 0x16a   : > { %1243 = vst.msk [vmem:[#allocation3 + $0x20] sm:$0xff] %vm1238_vm6, %v1151_v20  ;;  %v2045_v28 = vld [vmem:[#allocation3 + $0x8] sm:$0xff] }
 0x16b   : > { %979 = vrot.lane.b32.xlu0 %v6346_v5, %s5950_s27  ;;  %1821 = vst.msk [vmem:[#allocation3 + $0x10] sm:$0xff] %vm1818_vm9, %v1727_v37  ;;  %5435 = vmatmul.mubr.msk.f32.vlgmr.msra.gmra.mrb[0].mxu0 %vm2088_vm11, %v2045_v28  ;;  %v6855_v37 = vld [vmem:[#allocation2 + $0x112] sm:$0xff] }
 0x16c   : > { %1746 = vrot.lane.b32.xlu1 %v1670_v54, %s5954_s16 }
 0x16d   : > { %v1920_v23 = vpop.permute.xlu0 %1919  ;;  %v1729_v0 = vpop.permute.xlu1 %1728 }
 0x16e   : > { %2014 = vst.msk [vmem:[#allocation3 + $0x10] sm:$0xff] %vm2011_vm10, %v1920_v23 }
 0x16f   : > { %1748 = vrot.lane.b32.xlu0 %v1671_v14, %s5954_s16  ;;  %1822 = vst.msk [vmem:[#allocation3 + $0x18] sm:$0xff] %vm1818_vm9, %v1729_v0 }
 0x170   : > { %1170 = vrot.lane.b32.xlu1 %v1670_v54, %s5951_s28 }
 0x171   : > { %v1344_v2 = vpop.permute.xlu0 %1343  ;;  %v1153_v5 = vpop.permute.xlu1 %1152 }
 0x172   : > { %1436 = vst.msk [vmem:[#allocation3 + $0x20] sm:$0xff] %vm1431_vm7, %v1344_v2 }
 0x173   : > { %1172 = vrot.lane.b32.xlu0 %v1671_v14, %s5951_s28  ;;  %1244 = vst.msk [vmem:[#allocation3 + $0x28] sm:$0xff] %vm1238_vm6, %v1153_v5  ;;  %v8127_v14 = vmov 0.0  }
 0x174   : > { %1939 = vrot.lane.b32.xlu1 %v6453_v22, %s5955_s17  ;;  %2452 = vst.msk [vmem:[#allocation4 + $0x20] sm:$0xff] %vm2446_vm12, %v8127_v14  ;;  %2447 = vst.msk [vmem:[#allocation4] sm:$0xff] %vm2446_vm12, %v8127_v14 }
 0x175   : > { %v1346_v56 = vpop.permute.xlu0 %1345  ;;  %v2046_v59 = vld [vmem:[#allocation3 + $0x10] sm:$0xff]  ;;  %v1922_v55 = vpop.permute.xlu1 %1921  ;;  %2448 = vst.msk [vmem:[#allocation4 + $0x8] sm:$0xff] %vm2446_vm12, %v8127_v14  ;;  %2451 = vst.msk [vmem:[#allocation4 + $0x18] sm:$0xff] %vm2446_vm12, %v8127_v14 }
 0x176   : > { %1437 = vst.msk [vmem:[#allocation3 + $0x28] sm:$0xff] %vm1431_vm7, %v1346_v56  ;;  %5437 = vmatprep.mubr.msk.f32.mxu0 %vm2088_vm11, %v2046_v59 }
 0x177   : > { %1941 = vrot.lane.b32.xlu0 %v6464_v27, %s5955_s17  ;;  %2015 = vst.msk [vmem:[#allocation3 + $0x18] sm:$0xff] %vm2011_vm10, %v1922_v55 }
 0x178   : > { %1363 = vrot.lane.b32.xlu1 %v6453_v22, %s5952_s29  ;;  %2454 = vst.msk [vmem:[#allocation4 + $0x30] sm:$0xff] %vm2446_vm12, %v8127_v14  ;;  %2455 = vst.msk [vmem:[#allocation4 + $0x38] sm:$0xff] %vm2446_vm12, %v8127_v14 }
 0x179   : > { %v1540_v45 = vpop.permute.xlu0 %1539  ;;  %v1538_v32 = vpop.permute.xlu1 %1537  ;;  %2457 = vst.msk [vmem:[#allocation4 + $0x48] sm:$0xff] %vm2446_vm12, %v8127_v14  ;;  %2458 = vst.msk [vmem:[#allocation4 + $0x50] sm:$0xff] %vm2446_vm12, %v8127_v14 }
 0x17a   : > { %1631 = vst.msk [vmem:[#allocation3 + $0x28] sm:$0xff] %vm1625_vm8, %v1540_v45  ;;  %1630 = vst.msk [vmem:[#allocation3 + $0x20] sm:$0xff] %vm1625_vm8, %v1538_v32  ;;  %v1678_v32 = vld [vmem:[#allocation2 + $0x121] sm:$0xff] }
 0x17b   : > { %1557 = vrot.lane.b32.xlu0 %v6344_v4, %s5953_s30  ;;  %2460 = vst.msk [vmem:[#allocation4 + $0x60] sm:$0xff] %vm2446_vm12, %v8127_v14  ;;  %2461 = vst.msk [vmem:[#allocation4 + $0x68] sm:$0xff] %vm2446_vm12, %v8127_v14 }
 0x17c   : > { %1365 = vrot.lane.b32.xlu1 %v6464_v27, %s5952_s29  ;;  %2463 = vst.msk [vmem:[#allocation4 + $0x78] sm:$0xff] %vm2446_vm12, %v8127_v14  ;;  %2464 = vst.msk [vmem:[#allocation4 + $0x80] sm:$0xff] %vm2446_vm12, %v8127_v14 }
 0x17d   : > { %v964_v41 = vpop.permute.xlu0 %963  ;;  %v1731_v33 = vpop.permute.xlu1 %1730  ;;  %2466 = vst.msk [vmem:[#allocation4 + $0x90] sm:$0xff] %vm2446_vm12, %v8127_v14  ;;  %2467 = vst.msk [vmem:[#allocation4 + $0x98] sm:$0xff] %vm2446_vm12, %v8127_v14 }
 0x17e   : > { %1053 = vst.msk [vmem:[#allocation3 + $0x38] sm:$0xff] %vm1045_vm5, %v964_v41  ;;  %v2047_v34 = vld [vmem:[#allocation3 + $0x18] sm:$0xff] }
 0x17f   : > { %1559 = vrot.lane.b32.xlu0 %v6357_v7, %s5953_s30  ;;  %1823 = vst.msk [vmem:[#allocation3 + $0x20] sm:$0xff] %vm1818_vm9, %v1731_v33  ;;  %5438 = vmatmul.mubr.msk.f32.gmra.mrb[2].mxu0 %vm2088_vm11, %v2047_v34  ;;  %v1679_v33 = vld [vmem:[#allocation2 + $0x129] sm:$0xff] }
 0x180   : > { %981 = vrot.lane.b32.xlu1 %v6344_v4, %s5950_s27  ;;  %v1865_v4 = vld [vmem:[#allocation2 + $0xda] sm:$0xff]  ;;  %2469 = vst.msk [vmem:[#allocation4 + $0xa8] sm:$0xff] %vm2446_vm12, %v8127_v14  ;;  %2470 = vst.msk [vmem:[#allocation4 + $0xb0] sm:$0xff] %vm2446_vm12, %v8127_v14 }
 0x181   : > { %v1733_v22 = vpop.permute.xlu0 %1732  ;;  %v1155_v27 = vpop.permute.xlu1 %1154  ;;  %2472 = vst.msk [vmem:[#allocation4 + $0xc0] sm:$0xff] %vm2446_vm12, %v8127_v14  ;;  %2473 = vst.msk [vmem:[#allocation4 + $0xc8] sm:$0xff] %vm2446_vm12, %v8127_v14 }
 0x182   : > { %1824 = vst.msk [vmem:[#allocation3 + $0x28] sm:$0xff] %vm1818_vm9, %v1733_v22 }
 0x183   : > { %983 = vrot.lane.b32.xlu0 %v6357_v7, %s5950_s27  ;;  %1245 = vst.msk [vmem:[#allocation3 + $0x30] sm:$0xff] %vm1238_vm6, %v1155_v27  ;;  %v1872_v27 = vld [vmem:[#allocation2 + $0x12a] sm:$0xff] }
 0x184   : > { %1750 = vrot.lane.b32.xlu1 %v1672_v13, %s5954_s16  ;;  %2475 = vst.msk [vmem:[#allocation4 + $0xd8] sm:$0xff] %vm2446_vm12, %v8127_v14  ;;  %2476 = vst.msk [vmem:[#allocation4 + $0xe0] sm:$0xff] %vm2446_vm12, %v8127_v14 }
 0x185   : > { %v1157_v17 = vpop.permute.xlu0 %1156  ;;  %v1924_v50 = vpop.permute.xlu1 %1923  ;;  %2478 = vst.msk [vmem:[#allocation4 + $0xf0] sm:$0xff] %vm2446_vm12, %v8127_v14  ;;  %2479 = vst.msk [vmem:[#allocation4 + $0xf8] sm:$0xff] %vm2446_vm12, %v8127_v14 }
 0x186   : > { %1246 = vst.msk [vmem:[#allocation3 + $0x38] sm:$0xff] %vm1238_vm6, %v1157_v17 }
 0x187   : > { %1752 = vrot.lane.b32.xlu0 %v1673_v48, %s5954_s16  ;;  %2016 = vst.msk [vmem:[#allocation3 + $0x20] sm:$0xff] %vm2011_vm10, %v1924_v50 }
 0x188   : > { %1174 = vrot.lane.b32.xlu1 %v1672_v13, %s5951_s28  ;;  %2481 = vst.msk [vmem:[#allocation4 + $0x108] sm:$0xff] %vm2446_vm12, %v8127_v14  ;;  %2482 = vst.msk [vmem:[#allocation4 + $0x110] sm:$0xff] %vm2446_vm12, %v8127_v14 }
 0x189   : > { %v1926_v58 = vpop.permute.xlu0 %1925  ;;  %v1348_v7 = vpop.permute.xlu1 %1347  ;;  %2484 = vst.msk [vmem:[#allocation4 + $0x120] sm:$0xff] %vm2446_vm12, %v8127_v14  ;;  %2485 = vst.msk [vmem:[#allocation4 + $0x128] sm:$0xff] %vm2446_vm12, %v8127_v14 }
 0x18a   : > { %2017 = vst.msk [vmem:[#allocation3 + $0x28] sm:$0xff] %vm2011_vm10, %v1926_v58  ;;  %v1487_v58 = vld [vmem:[#allocation2 + $0x138] sm:$0xff] }
 0x18b   : > { %1176 = vrot.lane.b32.xlu0 %v1673_v48, %s5951_s28  ;;  %1438 = vst.msk [vmem:[#allocation3 + $0x30] sm:$0xff] %vm1431_vm7, %v1348_v7 }
 0x18c   : > { %1943 = vrot.lane.b32.xlu1 %v1865_v4, %s5955_s17  ;;  %2487 = vst.msk [vmem:[#allocation4 + $0x138] sm:$0xff] %vm2446_vm12, %v8127_v14  ;;  %2488 = vst.msk [vmem:[#allocation4 + $0x140] sm:$0xff] %vm2446_vm12, %v8127_v14 }
 0x18d   : > { %v1542_v35 = vpop.permute.xlu0 %1541  ;;  %v1350_v36 = vpop.permute.xlu1 %1349  ;;  %2490 = vst.msk [vmem:[#allocation4 + $0x150] sm:$0xff] %vm2446_vm12, %v8127_v14  ;;  %2491 = vst.msk [vmem:[#allocation4 + $0x158] sm:$0xff] %vm2446_vm12, %v8127_v14 }
 0x18e   : > { %1632 = vst.msk [vmem:[#allocation3 + $0x30] sm:$0xff] %vm1625_vm8, %v1542_v35  ;;  %v2048_v40 = vld [vmem:[#allocation3 + $0x20] sm:$0xff]  ;;  %v1488_v35 = vld [vmem:[#allocation2 + $0x140] sm:$0xff] }
 0x18f   : > { %1945 = vrot.lane.b32.xlu0 %v1866_v61, %s5955_s17  ;;  %1439 = vst.msk [vmem:[#allocation3 + $0x38] sm:$0xff] %vm1431_vm7, %v1350_v36  ;;  %5440 = vmatprep.mubr.msk.f32.mxu0 %vm2088_vm11, %v2048_v40 }
 0x190   : > { %1367 = vrot.lane.b32.xlu1 %v1865_v4, %s5952_s29  ;;  %2493 = vst.msk [vmem:[#allocation4 + $0x168] sm:$0xff] %vm2446_vm12, %v8127_v14  ;;  %2494 = vst.msk [vmem:[#allocation4 + $0x170] sm:$0xff] %vm2446_vm12, %v8127_v14 }
 0x191   : > { %v1544_v43 = vpop.permute.xlu0 %1543  ;;  %v2049_v26 = vld [vmem:[#allocation3 + $0x28] sm:$0xff]  ;;  %v966_v16 = vpop.permute.xlu1 %965  ;;  %2496 = vst.msk [vmem:[#allocation4 + $0x180] sm:$0xff] %vm2446_vm12, %v8127_v14  ;;  %2497 = vst.msk [vmem:[#allocation4 + $0x188] sm:$0xff] %vm2446_vm12, %v8127_v14 }
 0x192   : > { %1633 = vst.msk [vmem:[#allocation3 + $0x38] sm:$0xff] %vm1625_vm8, %v1544_v43  ;;  %5441 = vmatmul.mubr.msk.f32.gmra.mrb[4].mxu0 %vm2088_vm11, %v2049_v26  ;;  %v1680_v26 = vld [vmem:[#allocation2 + $0x139] sm:$0xff] }
 0x193   : > { %1561 = vrot.lane.b32.xlu0 %v6348_v6, %s5953_s30  ;;  %1054 = vst.msk [vmem:[#allocation3 + $0x40] sm:$0xff] %vm1045_vm5, %v966_v16 }
 0x194   : > { %1369 = vrot.lane.b32.xlu1 %v1866_v61, %s5952_s29  ;;  %2499 = vst.msk [vmem:[#allocation4 + $0x198] sm:$0xff] %vm2446_vm12, %v8127_v14  ;;  %2500 = vst.msk [vmem:[#allocation4 + $0x1a0] sm:$0xff] %vm2446_vm12, %v8127_v14 }
 0x195   : > { %v968_v38 = vpop.permute.xlu0 %967  ;;  %v1735_v19 = vpop.permute.xlu1 %1734  ;;  %2453 = vst.msk [vmem:[#allocation4 + $0x28] sm:$0x3] %vm2449_vm13, %v8127_v14  ;;  %2450 = vst.msk [vmem:[#allocation4 + $0x10] sm:$0x3] %vm2449_vm13, %v8127_v14 }
 0x196   : > { %1055 = vst.msk [vmem:[#allocation3 + $0x48] sm:$0xff] %vm1045_vm5, %v968_v38  ;;  %v1681_v38 = vld [vmem:[#allocation2 + $0x141] sm:$0xff] }
 0x197   : > { %1563 = vrot.lane.b32.xlu0 %v6361_v9, %s5953_s30  ;;  %1825 = vst.msk [vmem:[#allocation3 + $0x30] sm:$0xff] %vm1818_vm9, %v1735_v19 }
 0x198   : > { %985 = vrot.lane.b32.xlu1 %v6348_v6, %s5950_s27  ;;  %2456 = vst.msk [vmem:[#allocation4 + $0x40] sm:$0x3] %vm2449_vm13, %v8127_v14  ;;  %2459 = vst.msk [vmem:[#allocation4 + $0x58] sm:$0x3] %vm2449_vm13, %v8127_v14 }
 0x199   : > { %v1737_v52 = vpop.permute.xlu0 %1736  ;;  %v1159_v1 = vpop.permute.xlu1 %1158  ;;  %2462 = vst.msk [vmem:[#allocation4 + $0x70] sm:$0x3] %vm2449_vm13, %v8127_v14  ;;  %2465 = vst.msk [vmem:[#allocation4 + $0x88] sm:$0x3] %vm2449_vm13, %v8127_v14 }
 0x19a   : > { %1826 = vst.msk [vmem:[#allocation3 + $0x38] sm:$0xff] %vm1818_vm9, %v1737_v52 }
 0x19b   : > { %987 = vrot.lane.b32.xlu0 %v6361_v9, %s5950_s27  ;;  %1247 = vst.msk [vmem:[#allocation3 + $0x40] sm:$0xff] %vm1238_vm6, %v1159_v1 }
 0x19c   : > { %1754 = vrot.lane.b32.xlu1 %v1674_v60, %s5954_s16  ;;  %2468 = vst.msk [vmem:[#allocation4 + $0xa0] sm:$0x3] %vm2449_vm13, %v8127_v14  ;;  %2471 = vst.msk [vmem:[#allocation4 + $0xb8] sm:$0x3] %vm2449_vm13, %v8127_v14 }
 0x19d   : > { %v1161_v42 = vpop.permute.xlu0 %1160  ;;  %v1928_v6 = vpop.permute.xlu1 %1927  ;;  %2474 = vst.msk [vmem:[#allocation4 + $0xd0] sm:$0x3] %vm2449_vm13, %v8127_v14  ;;  %2477 = vst.msk [vmem:[#allocation4 + $0xe8] sm:$0x3] %vm2449_vm13, %v8127_v14 }
 0x19e   : > { %1248 = vst.msk [vmem:[#allocation3 + $0x48] sm:$0xff] %vm1238_vm6, %v1161_v42 }
 0x19f   : > { %1756 = vrot.lane.b32.xlu0 %v1675_v49, %s5954_s16  ;;  %2018 = vst.msk [vmem:[#allocation3 + $0x30] sm:$0xff] %vm2011_vm10, %v1928_v6 }
 0x1a0   : > { %1178 = vrot.lane.b32.xlu1 %v1674_v60, %s5951_s28  ;;  %2480 = vst.msk [vmem:[#allocation4 + $0x100] sm:$0x3] %vm2449_vm13, %v8127_v14  ;;  %2483 = vst.msk [vmem:[#allocation4 + $0x118] sm:$0x3] %vm2449_vm13, %v8127_v14  ;;  %v1873_v60 = vld [vmem:[#allocation2 + $0x13a] sm:$0xff] }
 0x1a1   : > { %v1930_v9 = vpop.permute.xlu0 %1929  ;;  %v1352_v31 = vpop.permute.xlu1 %1351  ;;  %2486 = vst.msk [vmem:[#allocation4 + $0x130] sm:$0x3] %vm2449_vm13, %v8127_v14  ;;  %2489 = vst.msk [vmem:[#allocation4 + $0x148] sm:$0x3] %vm2449_vm13, %v8127_v14 }
 0x1a2   : > { %2019 = vst.msk [vmem:[#allocation3 + $0x38] sm:$0xff] %vm2011_vm10, %v1930_v9  ;;  %v1489_v9 = vld [vmem:[#allocation2 + $0x150] sm:$0xff] }
 0x1a3   : > { %1180 = vrot.lane.b32.xlu0 %v1675_v49, %s5951_s28  ;;  %1440 = vst.msk [vmem:[#allocation3 + $0x40] sm:$0xff] %vm1431_vm7, %v1352_v31  ;;  %v1874_v49 = vld [vmem:[#allocation2 + $0x142] sm:$0xff] }
 0x1a4   : > { %1947 = vrot.lane.b32.xlu1 %v1867_v46, %s5955_s17  ;;  %2492 = vst.msk [vmem:[#allocation4 + $0x160] sm:$0x3] %vm2449_vm13, %v8127_v14  ;;  %2495 = vst.msk [vmem:[#allocation4 + $0x178] sm:$0x3] %vm2449_vm13, %v8127_v14 }
 0x1a5   : > { %v1546_v10 = vpop.permute.xlu0 %1545  ;;  %v1354_v21 = vpop.permute.xlu1 %1353  ;;  %2498 = vst.msk [vmem:[#allocation4 + $0x190] sm:$0x3] %vm2449_vm13, %v8127_v14  ;;  %2501 = vst.msk [vmem:[#allocation4 + $0x1a8] sm:$0x3] %vm2449_vm13, %v8127_v14 }
 0x1a6   : > { %1634 = vst.msk [vmem:[#allocation3 + $0x40] sm:$0xff] %vm1625_vm8, %v1546_v10  ;;  %v2050_v57 = vld [vmem:[#allocation3 + $0x30] sm:$0xff]  ;;  %v1490_v10 = vld [vmem:[#allocation2 + $0x158] sm:$0xff] }
 0x1a7   : > { %1949 = vrot.lane.b32.xlu0 %v1868_v18, %s5955_s17  ;;  %1441 = vst.msk [vmem:[#allocation3 + $0x48] sm:$0xff] %vm1431_vm7, %v1354_v21  ;;  %5443 = vmatprep.mubr.msk.f32.mxu0 %vm2088_vm11, %v2050_v57 }
 0x1a8   : > { %1371 = vrot.lane.b32.xlu1 %v1867_v46, %s5952_s29 }
 0x1a9   : > { %v1548_v53 = vpop.permute.xlu0 %1547  ;;  %v2051_v62 = vld [vmem:[#allocation3 + $0x38] sm:$0xff]  ;;  %v970_v3 = vpop.permute.xlu1 %969 }
 0x1aa   : > { %1635 = vst.msk [vmem:[#allocation3 + $0x48] sm:$0xff] %vm1625_vm8, %v1548_v53  ;;  %5444 = vmatmul.mubr.msk.f32.gmra.mrb[6].mxu0 %vm2088_vm11, %v2051_v62  ;;  %v1682_v62 = vld [vmem:[#allocation2 + $0x151] sm:$0xff] }
 0x1ab   : > { %1565 = vrot.lane.b32.xlu0 %v6359_v8, %s5953_s30  ;;  %1056 = vst.msk [vmem:[#allocation3 + $0x50] sm:$0xff] %vm1045_vm5, %v970_v3 }
 0x1ac   : > { %1373 = vrot.lane.b32.xlu1 %v1868_v18, %s5952_s29 }
 0x1ad   : > { %v972_v44 = vpop.permute.xlu0 %971  ;;  %v1739_v24 = vpop.permute.xlu1 %1738 }
 0x1ae   : > { %1057 = vst.msk [vmem:[#allocation3 + $0x58] sm:$0xff] %vm1045_vm5, %v972_v44  ;;  %v1683_v44 = vld [vmem:[#allocation2 + $0x159] sm:$0xff] }
 0x1af   : > { %1567 = vrot.lane.b32.xlu0 %v6371_v12, %s5953_s30  ;;  %1827 = vst.msk [vmem:[#allocation3 + $0x40] sm:$0xff] %vm1818_vm9, %v1739_v24 }
 0x1b0   : > { %989 = vrot.lane.b32.xlu1 %v6359_v8, %s5950_s27  ;;  %v1869_v8 = vld [vmem:[#allocation2 + $0x10a] sm:$0xff] }
 0x1b1   : > { %v1741_v29 = vpop.permute.xlu0 %1740  ;;  %v1163_v51 = vpop.permute.xlu1 %1162 }
 0x1b2   : > { %1828 = vst.msk [vmem:[#allocation3 + $0x48] sm:$0xff] %vm1818_vm9, %v1741_v29 }
 0x1b3   : > { %991 = vrot.lane.b32.xlu0 %v6371_v12, %s5950_s27  ;;  %1249 = vst.msk [vmem:[#allocation3 + $0x50] sm:$0xff] %vm1238_vm6, %v1163_v51  ;;  %v1875_v51 = vld [vmem:[#allocation2 + $0x152] sm:$0xff] }
 0x1b4   : > { %1758 = vrot.lane.b32.xlu1 %v1676_v30, %s5954_s16 }
 0x1b5   : > { %v1165_v63 = vpop.permute.xlu0 %1164  ;;  %v1932_v20 = vpop.permute.xlu1 %1931 }
 0x1b6   : > { %1250 = vst.msk [vmem:[#allocation3 + $0x58] sm:$0xff] %vm1238_vm6, %v1165_v63  ;;  %v1876_v63 = vld [vmem:[#allocation2 + $0x15a] sm:$0xff] }
 0x1b7   : > { %1760 = vrot.lane.b32.xlu0 %v1677_v25, %s5954_s16  ;;  %2020 = vst.msk [vmem:[#allocation3 + $0x40] sm:$0xff] %vm2011_vm10, %v1932_v20 }
 0x1b8   : > { %1182 = vrot.lane.b32.xlu1 %v1676_v30, %s5951_s28 }
 0x1b9   : > { %v1934_v54 = vpop.permute.xlu0 %1933  ;;  %v1356_v12 = vpop.permute.xlu1 %1355 }
 0x1ba   : > { %2021 = vst.msk [vmem:[#allocation3 + $0x48] sm:$0xff] %vm2011_vm10, %v1934_v54 }
 0x1bb   : > { %1184 = vrot.lane.b32.xlu0 %v1677_v25, %s5951_s28  ;;  %1442 = vst.msk [vmem:[#allocation3 + $0x50] sm:$0xff] %vm1431_vm7, %v1356_v12  ;;  %v1491_v12 = vld [vmem:[#allocation2 + $0x168] sm:$0xff] }
 0x1bc   : > { %1951 = vrot.lane.b32.xlu1 %v1869_v8, %s5955_s17 }
 0x1bd   : > { %v1550_v28 = vpop.permute.xlu0 %1549  ;;  %v1358_v23 = vpop.permute.xlu1 %1357 }
 0x1be   : > { %1636 = vst.msk [vmem:[#allocation3 + $0x50] sm:$0xff] %vm1625_vm8, %v1550_v28  ;;  %v2052_v0 = vld [vmem:[#allocation3 + $0x40] sm:$0xff] }
 0x1bf   : > { %1953 = vrot.lane.b32.xlu0 %v6855_v37, %s5955_s17  ;;  %1443 = vst.msk [vmem:[#allocation3 + $0x58] sm:$0xff] %vm1431_vm7, %v1358_v23  ;;  %5446 = vmatprep.mubr.msk.f32.mxu0 %vm2088_vm11, %v2052_v0  ;;  %v1492_v23 = vld [vmem:[#allocation2 + $0x170] sm:$0xff] }
 0x1c0   : > { %1375 = vrot.lane.b32.xlu1 %v1869_v8, %s5952_s29 }
 0x1c1   : > { %v1552_v2 = vpop.permute.xlu0 %1551  ;;  %v2053_v5 = vld [vmem:[#allocation3 + $0x48] sm:$0xff]  ;;  %v974_v56 = vpop.permute.xlu1 %973 }
 0x1c2   : > { %1637 = vst.msk [vmem:[#allocation3 + $0x58] sm:$0xff] %vm1625_vm8, %v1552_v2  ;;  %5447 = vmatmul.mubr.msk.f32.gmra.mrb[8].mxu0 %vm2088_vm11, %v2053_v5 }
 0x1c3   : > { %1569 = vrot.lane.b32.xlu0 %v6369_v11, %s5953_s30  ;;  %1058 = vst.msk [vmem:[#allocation3 + $0x60] sm:$0xff] %vm1045_vm5, %v974_v56  ;;  %v1684_v56 = vld [vmem:[#allocation2 + $0x169] sm:$0xff] }
 0x1c4   : > { %1377 = vrot.lane.b32.xlu1 %v6855_v37, %s5952_s29 }
 0x1c5   : > { %v976_v59 = vpop.permute.xlu0 %975  ;;  %v1743_v55 = vpop.permute.xlu1 %1742 }
 0x1c6   : > { %1059 = vst.msk [vmem:[#allocation3 + $0x68] sm:$0xff] %vm1045_vm5, %v976_v59 }
 0x1c7   : > { %1571 = vrot.lane.b32.xlu0 %v6380_v15, %s5953_s30  ;;  %1829 = vst.msk [vmem:[#allocation3 + $0x50] sm:$0xff] %vm1818_vm9, %v1743_v55  ;;  %v1685_v55 = vld [vmem:[#allocation2 + $0x171] sm:$0xff] }
 0x1c8   : > { %993 = vrot.lane.b32.xlu1 %v6369_v11, %s5950_s27  ;;  %v1871_v11 = vld [vmem:[#allocation2 + $0x122] sm:$0xff] }
 0x1c9   : > { %v1745_v45 = vpop.permute.xlu0 %1744  ;;  %v1167_v41 = vpop.permute.xlu1 %1166 }
 0x1ca   : > { %1830 = vst.msk [vmem:[#allocation3 + $0x58] sm:$0xff] %vm1818_vm9, %v1745_v45 }
 0x1cb   : > { %995 = vrot.lane.b32.xlu0 %v6380_v15, %s5950_s27  ;;  %1251 = vst.msk [vmem:[#allocation3 + $0x60] sm:$0xff] %vm1238_vm6, %v1167_v41 }
 0x1cc   : > { %1762 = vrot.lane.b32.xlu1 %v1678_v32, %s5954_s16 }
 0x1cd   : > { %v1169_v34 = vpop.permute.xlu0 %1168  ;;  %v1936_v22 = vpop.permute.xlu1 %1935 }
 0x1ce   : > { %1252 = vst.msk [vmem:[#allocation3 + $0x68] sm:$0xff] %vm1238_vm6, %v1169_v34 }
 0x1cf   : > { %1764 = vrot.lane.b32.xlu0 %v1679_v33, %s5954_s16  ;;  %2022 = vst.msk [vmem:[#allocation3 + $0x50] sm:$0xff] %vm2011_vm10, %v1936_v22  ;;  %v1878_v22 = vld [vmem:[#allocation2 + $0x172] sm:$0xff] }
 0x1d0   : > { %1186 = vrot.lane.b32.xlu1 %v1678_v32, %s5951_s28 }
 0x1d1   : > { %v1938_v13 = vpop.permute.xlu0 %1937  ;;  %v1360_v15 = vpop.permute.xlu1 %1359 }
 0x1d2   : > { %2023 = vst.msk [vmem:[#allocation3 + $0x58] sm:$0xff] %vm2011_vm10, %v1938_v13 }
 0x1d3   : > { %1188 = vrot.lane.b32.xlu0 %v1679_v33, %s5951_s28  ;;  %1444 = vst.msk [vmem:[#allocation3 + $0x60] sm:$0xff] %vm1431_vm7, %v1360_v15  ;;  %v1877_v33 = vld [vmem:[#allocation2 + $0x16a] sm:$0xff] }
 0x1d4   : > { %1955 = vrot.lane.b32.xlu1 %v1871_v11, %s5955_s17 }
 0x1d5   : > { %v1554_v48 = vpop.permute.xlu0 %1553  ;;  %v1362_v17 = vpop.permute.xlu1 %1361 }
 0x1d6   : > { %1638 = vst.msk [vmem:[#allocation3 + $0x60] sm:$0xff] %vm1625_vm8, %v1554_v48  ;;  %v2054_v50 = vld [vmem:[#allocation3 + $0x50] sm:$0xff] }
 0x1d7   : > { %1957 = vrot.lane.b32.xlu0 %v1872_v27, %s5955_s17  ;;  %1445 = vst.msk [vmem:[#allocation3 + $0x68] sm:$0xff] %vm1431_vm7, %v1362_v17  ;;  %5449 = vmatprep.mubr.msk.f32.mxu0 %vm2088_vm11, %v2054_v50 }
 0x1d8   : > { %1379 = vrot.lane.b32.xlu1 %v1871_v11, %s5952_s29 }
 0x1d9   : > { %v1556_v4 = vpop.permute.xlu0 %1555  ;;  %v2055_v7 = vld [vmem:[#allocation3 + $0x58] sm:$0xff]  ;;  %v978_v61 = vpop.permute.xlu1 %977 }
 0x1da   : > { %1639 = vst.msk [vmem:[#allocation3 + $0x68] sm:$0xff] %vm1625_vm8, %v1556_v4  ;;  %5450 = vmatmul.mubr.msk.f32.gmra.mrb[10].mxu0 %vm2088_vm11, %v2055_v7 }
 0x1db   : > { %1573 = vrot.lane.b32.xlu0 %v1487_v58, %s5953_s30  ;;  %1060 = vst.msk [vmem:[#allocation3 + $0x70] sm:$0xff] %vm1045_vm5, %v978_v61 }
 0x1dc   : > { %1381 = vrot.lane.b32.xlu1 %v1872_v27, %s5952_s29  ;;  %v1493_v27 = vld [vmem:[#allocation2 + $0x180] sm:$0xff] }
 0x1dd   : > { %v980_v36 = vpop.permute.xlu0 %979 }
 0x1de   : > { %1061 = vst.msk [vmem:[#allocation3 + $0x78] sm:$0xff] %vm1045_vm5, %v980_v36  ;;  %v1747_v40 = vpop.permute.xlu1 %1746 }
 0x1df   : > { %1575 = vrot.lane.b32.xlu0 %v1488_v35, %s5953_s30  ;;  %1831 = vst.msk [vmem:[#allocation3 + $0x60] sm:$0xff] %vm1818_vm9, %v1747_v40  ;;  %v1687_v40 = vld [vmem:[#allocation2 + $0x189] sm:$0xff] }
 0x1e0   : > { %997 = vrot.lane.b32.xlu1 %v1487_v58, %s5950_s27  ;;  %v1494_v58 = vld [vmem:[#allocation2 + $0x188] sm:$0xff] }
 0x1e1   : > { %v1749_v43 = vpop.permute.xlu0 %1748 }
 0x1e2   : > { %1832 = vst.msk [vmem:[#allocation3 + $0x68] sm:$0xff] %vm1818_vm9, %v1749_v43  ;;  %v1171_v16 = vpop.permute.xlu1 %1170 }
 0x1e3   : > { %999 = vrot.lane.b32.xlu0 %v1488_v35, %s5950_s27  ;;  %1253 = vst.msk [vmem:[#allocation3 + $0x70] sm:$0xff] %vm1238_vm6, %v1171_v16  ;;  %v1686_v35 = vld [vmem:[#allocation2 + $0x181] sm:$0xff] }
 0x1e4   : > { %1766 = vrot.lane.b32.xlu1 %v1680_v26, %s5954_s16 }
 0x1e5   : > { %v1173_v19 = vpop.permute.xlu0 %1172 }
 0x1e6   : > { %1254 = vst.msk [vmem:[#allocation3 + $0x78] sm:$0xff] %vm1238_vm6, %v1173_v19  ;;  %v1940_v52 = vpop.permute.xlu1 %1939 }
 0x1e7   : > { %1768 = vrot.lane.b32.xlu0 %v1681_v38, %s5954_s16  ;;  %2024 = vst.msk [vmem:[#allocation3 + $0x60] sm:$0xff] %vm2011_vm10, %v1940_v52  ;;  %v1880_v52 = vld [vmem:[#allocation2 + $0x18a] sm:$0xff] }
 0x1e8   : > { %1190 = vrot.lane.b32.xlu1 %v1680_v26, %s5951_s28 }
 0x1e9   : > { %v1942_v39 = vpop.permute.xlu0 %1941 }
 0x1ea   : > { %2025 = vst.msk [vmem:[#allocation3 + $0x68] sm:$0xff] %vm2011_vm10, %v1942_v39  ;;  %v1364_v1 = vpop.permute.xlu1 %1363 }
 0x1eb   : > { %1192 = vrot.lane.b32.xlu0 %v1681_v38, %s5951_s28  ;;  %1446 = vst.msk [vmem:[#allocation3 + $0x70] sm:$0xff] %vm1431_vm7, %v1364_v1  ;;  %v1879_v38 = vld [vmem:[#allocation2 + $0x182] sm:$0xff] }
 0x1ec   : > { %1959 = vrot.lane.b32.xlu1 %v1873_v60, %s5955_s17 }
 0x1ed   : > { %v1558_v42 = vpop.permute.xlu0 %1557 }
 0x1ee   : > { %1640 = vst.msk [vmem:[#allocation3 + $0x70] sm:$0xff] %vm1625_vm8, %v1558_v42  ;;  %v1366_v47 = vpop.permute.xlu1 %1365  ;;  %v2056_v6 = vld [vmem:[#allocation3 + $0x60] sm:$0xff] }
 0x1ef   : > { %1961 = vrot.lane.b32.xlu0 %v1874_v49, %s5955_s17  ;;  %1447 = vst.msk [vmem:[#allocation3 + $0x78] sm:$0xff] %vm1431_vm7, %v1366_v47  ;;  %5452 = vmatprep.mubr.msk.f32.mxu0 %vm2088_vm11, %v2056_v6  ;;  %v2535_v6 = vld [vmem:[#allocation4] sm:$0xff] }
 0x1f0   : > { %1383 = vrot.lane.b32.xlu1 %v1873_v60, %s5952_s29  ;;  %2567 = vst.msk [vmem:[#allocation5] sm:$0xff] %vm2446_vm12, %v2535_v6 }
 0x1f1   : > { %v1560_v46 = vpop.permute.xlu0 %1559  ;;  %v2057_v31 = vld [vmem:[#allocation3 + $0x68] sm:$0xff] }
 0x1f2   : > { %1641 = vst.msk [vmem:[#allocation3 + $0x78] sm:$0xff] %vm1625_vm8, %v1560_v46  ;;  %5453 = vmatmul.mubr.msk.f32.gmra.mrb[12].mxu0 %vm2088_vm11, %v2057_v31  ;;  %v982_v18 = vpop.permute.xlu1 %981  ;;  %v1688_v46 = vld [vmem:[#allocation2 + $0x199] sm:$0xff] }
 0x1f3   : > { %1577 = vrot.lane.b32.xlu0 %v1489_v9, %s5953_s30  ;;  %1062 = vst.msk [vmem:[#allocation3 + $0x80] sm:$0xff] %vm1045_vm5, %v982_v18  ;;  %v7118_v18 = vld [vmem:[%s8113_s3] ss:$0 sm:$0xff] }
 0x1f4   : > { %1385 = vrot.lane.b32.xlu1 %v1874_v49, %s5952_s29  ;;  %v1495_v49 = vld [vmem:[#allocation2 + $0x198] sm:$0xff] }
 0x1f5   : > { %v984_v21 = vpop.permute.xlu0 %983 }
 0x1f6   : > { %1063 = vst.msk [vmem:[#allocation3 + $0x88] sm:$0xff] %vm1045_vm5, %v984_v21  ;;  %v1751_v57 = vpop.permute.xlu1 %1750  ;;  %v2536_v21 = vld [vmem:[#allocation4 + $0x8] sm:$0xff] }
 0x1f7   : > { %1579 = vrot.lane.b32.xlu0 %v1490_v10, %s5953_s30  ;;  %1833 = vst.msk [vmem:[#allocation3 + $0x70] sm:$0xff] %vm1818_vm9, %v1751_v57 }
 0x1f8   : > { %1001 = vrot.lane.b32.xlu1 %v1489_v9, %s5950_s27  ;;  %2568 = vst.msk [vmem:[#allocation5 + $0x8] sm:$0xff] %vm2446_vm12, %v2536_v21  ;;  %v4178_v21 = vld [vmem:[%s8114_s4 + $0x10] sm:$0xff] }
 0x1f9   : > { %v1753_v53 = vpop.permute.xlu0 %1752 }
 0x1fa   : > { %1834 = vst.msk [vmem:[#allocation3 + $0x78] sm:$0xff] %vm1818_vm9, %v1753_v53  ;;  %v1175_v3 = vpop.permute.xlu1 %1174 }
 0x1fb   : > { %1003 = vrot.lane.b32.xlu0 %v1490_v10, %s5950_s27  ;;  %1255 = vst.msk [vmem:[#allocation3 + $0x80] sm:$0xff] %vm1238_vm6, %v1175_v3  ;;  %v1496_v10 = vld [vmem:[#allocation2 + $0x1a0] sm:$0xff] }
 0x1fc   : > { %1770 = vrot.lane.b32.xlu1 %v1682_v62, %s5954_s16 }
 0x1fd   : > { %v1177_v24 = vpop.permute.xlu0 %1176 }
 0x1fe   : > { %1256 = vst.msk [vmem:[#allocation3 + $0x88] sm:$0xff] %vm1238_vm6, %v1177_v24  ;;  %v1944_v29 = vpop.permute.xlu1 %1943 }
 0x1ff   : > { %1772 = vrot.lane.b32.xlu0 %v1683_v44, %s5954_s16  ;;  %2026 = vst.msk [vmem:[#allocation3 + $0x70] sm:$0xff] %vm2011_vm10, %v1944_v29 }
 0x200   : > { %1194 = vrot.lane.b32.xlu1 %v1682_v62, %s5951_s28  ;;  %v1881_v62 = vld [vmem:[#allocation2 + $0x19a] sm:$0xff] }
 0x201   : > { %v1946_v30 = vpop.permute.xlu0 %1945 }
 0x202   : > { %2027 = vst.msk [vmem:[#allocation3 + $0x78] sm:$0xff] %vm2011_vm10, %v1946_v30  ;;  %v1368_v25 = vpop.permute.xlu1 %1367 }
 0x203   : > { %1196 = vrot.lane.b32.xlu0 %v1683_v44, %s5951_s28  ;;  %1448 = vst.msk [vmem:[#allocation3 + $0x80] sm:$0xff] %vm1431_vm7, %v1368_v25 }
 0x204   : > { %1963 = vrot.lane.b32.xlu1 %v1875_v51, %s5955_s17 }
 0x205   : > { %v1562_v20 = vpop.permute.xlu0 %1561 }
 0x206   : > { %1642 = vst.msk [vmem:[#allocation3 + $0x80] sm:$0xff] %vm1625_vm8, %v1562_v20  ;;  %v1370_v54 = vpop.permute.xlu1 %1369  ;;  %v2058_v8 = vld [vmem:[#allocation3 + $0x70] sm:$0xff]  ;;  %v2599_v20 = vld [vmem:[#allocation4 + $0x1] sm:$0xff] }
 0x207   : > { %1965 = vrot.lane.b32.xlu0 %v1876_v63, %s5955_s17  ;;  %1449 = vst.msk [vmem:[#allocation3 + $0x88] sm:$0xff] %vm1431_vm7, %v1370_v54  ;;  %5455 = vmatprep.mubr.msk.f32.mxu0 %vm2088_vm11, %v2058_v8  ;;  %v1882_v8 = vld [vmem:[#allocation2 + $0x1a2] sm:$0xff] }
 0x208   : > { %1387 = vrot.lane.b32.xlu1 %v1875_v51, %s5952_s29  ;;  %v1689_v51 = vld [vmem:[#allocation2 + $0x1a1] sm:$0xff] }
 0x209   : > { %v1564_v37 = vpop.permute.xlu0 %1563  ;;  %v2059_v28 = vld [vmem:[#allocation3 + $0x78] sm:$0xff] }
 0x20a   : > { %1643 = vst.msk [vmem:[#allocation3 + $0x88] sm:$0xff] %vm1625_vm8, %v1564_v37  ;;  %5456 = vmatmul.mubr.msk.f32.gmra.mrb[14].mxu0 %vm2088_vm11, %v2059_v28  ;;  %v986_v14 = vpop.permute.xlu1 %985  ;;  %v2792_v37 = vld [vmem:[#allocation4 + $0x2] sm:$0xff] }
 0x20b   : > { %1581 = vrot.lane.b32.xlu0 %v1491_v12, %s5953_s30  ;;  %1064 = vst.msk [vmem:[#allocation3 + $0x90] sm:$0xff] %vm1045_vm5, %v986_v14  ;;  %v2600_v14 = vld [vmem:[#allocation4 + $0x9] sm:$0xff] }
 0x20c   : > { %1389 = vrot.lane.b32.xlu1 %v1876_v63, %s5952_s29 }
 0x20d   : > { %v988_v0 = vpop.permute.xlu0 %987 }
 0x20e   : > { %1065 = vst.msk [vmem:[#allocation3 + $0x98] sm:$0xff] %vm1045_vm5, %v988_v0  ;;  %v1755_v2 = vpop.permute.xlu1 %1754 }
 0x20f   : > { %1583 = vrot.lane.b32.xlu0 %v1492_v23, %s5953_s30  ;;  %1835 = vst.msk [vmem:[#allocation3 + $0x80] sm:$0xff] %vm1818_vm9, %v1755_v2 }
 0x210   : > { %1005 = vrot.lane.b32.xlu1 %v1491_v12, %s5950_s27 }
 0x211   : > { %v1757_v5 = vpop.permute.xlu0 %1756 }
 0x212   : > { %1836 = vst.msk [vmem:[#allocation3 + $0x88] sm:$0xff] %vm1818_vm9, %v1757_v5  ;;  %v1179_v59 = vpop.permute.xlu1 %1178 }
 0x213   : > { %1007 = vrot.lane.b32.xlu0 %v1492_v23, %s5950_s27  ;;  %1257 = vst.msk [vmem:[#allocation3 + $0x90] sm:$0xff] %vm1238_vm6, %v1179_v59 }
 0x214   : > { %1774 = vrot.lane.b32.xlu1 %v1684_v56, %s5954_s16 }
 0x215   : > { %v1181_v45 = vpop.permute.xlu0 %1180 }
 0x216   : > { %1258 = vst.msk [vmem:[#allocation3 + $0x98] sm:$0xff] %vm1238_vm6, %v1181_v45  ;;  %v1948_v32 = vpop.permute.xlu1 %1947 }
 0x217   : > { %1776 = vrot.lane.b32.xlu0 %v1685_v55, %s5954_s16  ;;  %2028 = vst.msk [vmem:[#allocation3 + $0x80] sm:$0xff] %vm2011_vm10, %v1948_v32 }
 0x218   : > { %1198 = vrot.lane.b32.xlu1 %v1684_v56, %s5951_s28  ;;  %v2793_v56 = vld [vmem:[#allocation4 + $0xa] sm:$0xff] }
 0x219   : > { %v1950_v41 = vpop.permute.xlu0 %1949 }
 0x21a   : > { %2029 = vst.msk [vmem:[#allocation3 + $0x88] sm:$0xff] %vm2011_vm10, %v1950_v41  ;;  %v1372_v34 = vpop.permute.xlu1 %1371 }
 0x21b   : > { %1200 = vrot.lane.b32.xlu0 %v1685_v55, %s5951_s28  ;;  %1450 = vst.msk [vmem:[#allocation3 + $0x90] sm:$0xff] %vm1431_vm7, %v1372_v34 }
 0x21c   : > { %1967 = vrot.lane.b32.xlu1 %v1877_v33, %s5955_s17 }
 0x21d   : > { %v1566_v13 = vpop.permute.xlu0 %1565 }
 0x21e   : > { %1644 = vst.msk [vmem:[#allocation3 + $0x90] sm:$0xff] %vm1625_vm8, %v1566_v13  ;;  %v1374_v11 = vpop.permute.xlu1 %1373  ;;  %v2060_v15 = vld [vmem:[#allocation3 + $0x80] sm:$0xff] }
 0x21f   : > { %1969 = vrot.lane.b32.xlu0 %v1878_v22, %s5955_s17  ;;  %1451 = vst.msk [vmem:[#allocation3 + $0x98] sm:$0xff] %vm1431_vm7, %v1374_v11  ;;  %5458 = vmatprep.mubr.msk.f32.mxu0 %vm2088_vm11, %v2060_v15 }
 0x220   : > { %1391 = vrot.lane.b32.xlu1 %v1877_v33, %s5952_s29 }
 0x221   : > { %v1568_v48 = vpop.permute.xlu0 %1567  ;;  %v2061_v17 = vld [vmem:[#allocation3 + $0x88] sm:$0xff] }
 0x222   : > { %1645 = vst.msk [vmem:[#allocation3 + $0x98] sm:$0xff] %vm1625_vm8, %v1568_v48  ;;  %5459 = vmatmul.mubr.msk.f32.gmra.mrb[16].mxu0 %vm2088_vm11, %v2061_v17  ;;  %v990_v50 = vpop.permute.xlu1 %989 }
 0x223   : > { %1585 = vrot.lane.b32.xlu0 %v1493_v27, %s5953_s30  ;;  %1066 = vst.msk [vmem:[#allocation3 + $0xa0] sm:$0xff] %vm1045_vm5, %v990_v50 }
 0x224   : > { %1393 = vrot.lane.b32.xlu1 %v1878_v22, %s5952_s29 }
 0x225   : > { %v992_v4 = vpop.permute.xlu0 %991 }
 0x226   : > { %1067 = vst.msk [vmem:[#allocation3 + $0xa8] sm:$0xff] %vm1045_vm5, %v992_v4  ;;  %v1759_v7 = vpop.permute.xlu1 %1758 }
 0x227   : > { %1587 = vrot.lane.b32.xlu0 %v1494_v58, %s5953_s30  ;;  %1837 = vst.msk [vmem:[#allocation3 + $0x90] sm:$0xff] %vm1818_vm9, %v1759_v7 }
 0x228   : > { %1009 = vrot.lane.b32.xlu1 %v1493_v27, %s5950_s27 }
 0x229   : > { %v1761_v61 = vpop.permute.xlu0 %1760 }
 0x22a   : > { %1838 = vst.msk [vmem:[#allocation3 + $0x98] sm:$0xff] %vm1818_vm9, %v1761_v61  ;;  %v1183_v36 = vpop.permute.xlu1 %1182 }
 0x22b   : > { %1011 = vrot.lane.b32.xlu0 %v1494_v58, %s5950_s27  ;;  %1259 = vst.msk [vmem:[#allocation3 + $0xa0] sm:$0xff] %vm1238_vm6, %v1183_v36 }
 0x22c   : > { %1778 = vrot.lane.b32.xlu1 %v1686_v35, %s5954_s16 }
 0x22d   : > { %v1185_v43 = vpop.permute.xlu0 %1184 }
 0x22e   : > { %1260 = vst.msk [vmem:[#allocation3 + $0xa8] sm:$0xff] %vm1238_vm6, %v1185_v43  ;;  %v1952_v26 = vpop.permute.xlu1 %1951 }
 0x22f   : > { %1780 = vrot.lane.b32.xlu0 %v1687_v40, %s5954_s16  ;;  %2030 = vst.msk [vmem:[#allocation3 + $0x90] sm:$0xff] %vm2011_vm10, %v1952_v26 }
 0x230   : > { %1202 = vrot.lane.b32.xlu1 %v1686_v35, %s5951_s28 }
 0x231   : > { %v1954_v16 = vpop.permute.xlu0 %1953 }
 0x232   : > { %2031 = vst.msk [vmem:[#allocation3 + $0x98] sm:$0xff] %vm2011_vm10, %v1954_v16  ;;  %v1376_v19 = vpop.permute.xlu1 %1375 }
 0x233   : > { %1204 = vrot.lane.b32.xlu0 %v1687_v40, %s5951_s28  ;;  %1452 = vst.msk [vmem:[#allocation3 + $0xa0] sm:$0xff] %vm1431_vm7, %v1376_v19 }
 0x234   : > { %1971 = vrot.lane.b32.xlu1 %v1879_v38, %s5955_s17 }
 0x235   : > { %v1570_v39 = vpop.permute.xlu0 %1569 }
 0x236   : > { %1646 = vst.msk [vmem:[#allocation3 + $0xa0] sm:$0xff] %vm1625_vm8, %v1570_v39  ;;  %v1378_v60 = vpop.permute.xlu1 %1377  ;;  %v2062_v1 = vld [vmem:[#allocation3 + $0x90] sm:$0xff]  ;;  %v4177_v39 = vld [vmem:[%s8114_s4 + $0x8] sm:$0xff] }
 0x237   : > { %1973 = vrot.lane.b32.xlu0 %v1880_v52, %s5955_s17  ;;  %1453 = vst.msk [vmem:[#allocation3 + $0xa8] sm:$0xff] %vm1431_vm7, %v1378_v60  ;;  %5461 = vmatprep.mubr.msk.f32.mxu0 %vm2088_vm11, %v2062_v1 }
 0x238   : > { %1395 = vrot.lane.b32.xlu1 %v1879_v38, %s5952_s29 }
 0x239   : > { %v1572_v42 = vpop.permute.xlu0 %1571  ;;  %v2063_v47 = vld [vmem:[#allocation3 + $0x98] sm:$0xff] }
 0x23a   : > { %1647 = vst.msk [vmem:[#allocation3 + $0xa8] sm:$0xff] %vm1625_vm8, %v1572_v42  ;;  %5462 = vmatmul.mubr.msk.f32.gmra.mrb[18].mxu0 %vm2088_vm11, %v2063_v47  ;;  %v994_v9 = vpop.permute.xlu1 %993 }
 0x23b   : > { %1589 = vrot.lane.b32.xlu0 %v1495_v49, %s5953_s30  ;;  %1068 = vst.msk [vmem:[#allocation3 + $0xb0] sm:$0xff] %vm1045_vm5, %v994_v9 }
 0x23c   : > { %1397 = vrot.lane.b32.xlu1 %v1880_v52, %s5952_s29  ;;  %v4176_v52 = vld [vmem:[%s8114_s4] sm:$0xff]  ;;  %s5959_s29 = smov 64  }
 0x23d   : > { %v996_v31 = vpop.permute.xlu0 %995  ;;  %v5556_v49 = vpack.c.bf16 %v4177_v39, %v4176_v52 }
 0x23e   : > { %1069 = vst.msk [vmem:[#allocation3 + $0xb8] sm:$0xff] %vm1045_vm5, %v996_v31  ;;  %v1763_v57 = vpop.permute.xlu1 %1762  ;;  %v5436_v53 = vpop.f32.mrb[0].mxu0 }
 0x23f   : > { %1782 = vrot.lane.b32.xlu0 %v1688_v46, %s5954_s16  ;;  %1839 = vst.msk [vmem:[#allocation3 + $0xa0] sm:$0xff] %vm1818_vm9, %v1763_v57  ;;  %v2261_v3 = vadd.f32 %v5436_v53, %v7118_v18  ;;  %v2255_v24 = vpop.f32.mrb[1].mxu0  ;;  %5557 = vmatprep.subr.bf16.mxu1 %v5556_v49  ;;  %v4179_v57 = vld [vmem:[%s8114_s4 + $0x18] sm:$0xff] }
 0x240   : > { %v2256_v29 = vadd.f32 %v7118_v18, %v2255_v24  ;;  %1591 = vrot.lane.b32.xlu1 %v1496_v10, %s5953_s30  ;;  %5559 = vmatpush3.bf16.msra.mxu1 %v5556_v49  ;;  %v5560_v53 = vpack.c.bf16 %v4179_v57, %v4178_v21  ;;  %v4180_v24 = vld [vmem:[%s8114_s4 + $0x20] sm:$0xff] }
 0x241   : > { %v1765_v44 = vpop.permute.xlu0 %1764  ;;  %v2415_v30 = vmax.f32 %v2261_v3, 0.0 }
 0x242   : > { %1840 = vst.msk [vmem:[#allocation3 + $0xa8] sm:$0xff] %vm1818_vm9, %v1765_v44  ;;  %v2414_v25 = vmax.f32 %v2256_v29, 0.0  ;;  %v1187_v63 = vpop.permute.xlu1 %1186  ;;  %5561 = vmatprep.subr.bf16.mxu1 %v5560_v53  ;;  %v4181_v29 = vld [vmem:[%s8114_s4 + $0x28] sm:$0xff] }
 0x243   : > { %1975 = vrot.lane.b32.xlu0 %v1881_v62, %s5955_s17  ;;  %2504 = vst.msk [vmem:[#allocation4 + $0x21] sm:$0xff] %vm2446_vm12, %v2415_v30 }
 0x244   : > { %1261 = vst.msk [vmem:[#allocation3 + $0xb0] sm:$0xff] %vm1238_vm6, %v1187_v63  ;;  %1784 = vrot.lane.b32.xlu1 %v1689_v51, %s5954_s16  ;;  %5563 = vmatpush3.bf16.msra.mxu1 %v5560_v53  ;;  %v5564_v51 = vpack.c.bf16 %v4181_v29, %v4180_v24  ;;  %s8089_s16 = scalar_lea.vmem %s8117_s7, %s5345_s13 }
 0x245   : > { %v1189_v54 = vpop.permute.xlu0 %1188  ;;  %2503 = vst.msk [vmem:[#allocation4 + $0x19] sm:$0xff] %vm2446_vm12, %v2414_v25 }
 0x246   : > { %1262 = vst.msk [vmem:[#allocation3 + $0xb8] sm:$0xff] %vm1238_vm6, %v1189_v54  ;;  %v1956_v12 = vpop.permute.xlu1 %1955  ;;  %5565 = vmatprep.subr.bf16.mxu1 %v5564_v51 }
 0x247   : > { %2663 = vrot.lane.b32.xlu0 %v2599_v20, %s5949_s26  ;;  %2032 = vst.msk [vmem:[#allocation3 + $0xa0] sm:$0xff] %vm2011_vm10, %v1956_v12  ;;  %v4182_v20 = vld [vmem:[%s8114_s4 + $0x30] sm:$0xff]  ;;  %v4183_v12 = vld [vmem:[%s8114_s4 + $0x38] sm:$0xff] }
 0x248   : > { %1977 = vrot.lane.b32.xlu1 %v1882_v8, %s5955_s17  ;;  %5567 = vmatpush3.bf16.msra.mxu1 %v5564_v51 }
 0x249   : > { %v1958_v28 = vpop.permute.xlu0 %1957 }
 0x24a   : > { %2033 = vst.msk [vmem:[#allocation3 + $0xa8] sm:$0xff] %vm2011_vm10, %v1958_v28  ;;  %v1380_v23 = vpop.permute.xlu1 %1379  ;;  %v3179_v27 = vld [vmem:[#allocation4 + $0x21] sm:$0xff]  ;;  %v5568_v28 = vpack.c.bf16 %v4183_v12, %v4182_v20 }
 0x24b   : > { %2856 = vrot.lane.b32.xlu0 %v2792_v37, %s5951_s28  ;;  %1454 = vst.msk [vmem:[#allocation3 + $0xb0] sm:$0xff] %vm1431_vm7, %v1380_v23  ;;  %v3372_v35 = vld [vmem:[#allocation4 + $0x22] sm:$0xff] }
 0x24c   : > { %v2985_v2 = vld [vmem:[#allocation4 + $0x18] sm:$0xff]  ;;  %v2986_v5 = vld [vmem:[#allocation4 + $0x20] sm:$0xff]  ;;  %2665 = vrot.lane.b32.xlu1 %v2600_v14, %s5949_s26  ;;  %5569 = vmatprep.subr.bf16.mxu1 %v5568_v28 }
 0x24d   : > { %v1574_v0 = vpop.permute.xlu0 %1573  ;;  %2569 = vst.msk [vmem:[#allocation5 + $0x10] sm:$0xff] %vm2446_vm12, %v2985_v2  ;;  %2570 = vst.msk [vmem:[#allocation5 + $0x18] sm:$0xff] %vm2446_vm12, %v2986_v5  ;;  %v3178_v41 = vld [vmem:[#allocation4 + $0x19] sm:$0xff]  ;;  %5571 = vmatpush3.bf16.msra.mxu1 %v5568_v28 }
 0x24e   : > { %1648 = vst.msk [vmem:[#allocation3 + $0xb0] sm:$0xff] %vm1625_vm8, %v1574_v0  ;;  %v1382_v59 = vpop.permute.xlu1 %1381  ;;  %v2064_v55 = vld [vmem:[#allocation3 + $0xa0] sm:$0xff]  ;;  %v4184_v0 = vld [vmem:[%s8114_s4 + $0x40] sm:$0xff] }
 0x24f   : > { %3049 = vrot.lane.b32.xlu0 %v2985_v2, %s5953_s30  ;;  %1455 = vst.msk [vmem:[#allocation3 + $0xb8] sm:$0xff] %vm1431_vm7, %v1382_v59  ;;  %5464 = vmatprep.mubr.msk.f32.mxu0 %vm2088_vm11, %v2064_v55  ;;  %v3371_v61 = vld [vmem:[#allocation4 + $0x1a] sm:$0xff] }
 0x250   : > { %2858 = vrot.lane.b32.xlu1 %v2793_v56, %s5951_s28  ;;  %5498 = vmatprep.subr.mxu1 %v4184_v0 }
 0x251   : > { %v1576_v45 = vpop.permute.xlu0 %1575  ;;  %v2065_v32 = vld [vmem:[#allocation3 + $0xa8] sm:$0xff]  ;;  %5499 = vmatpush3.msra.mxu1 %v4184_v0 }
 0x252   : > { %1649 = vst.msk [vmem:[#allocation3 + $0xb8] sm:$0xff] %vm1625_vm8, %v1576_v45  ;;  %5465 = vmatmul.mubr.msk.f32.gmra.mrb[20].mxu0 %vm2088_vm11, %v2065_v32  ;;  %v998_v33 = vpop.permute.xlu1 %997  ;;  %v5439_v34 = vpop.f32.mrb[2].mxu0 }
 0x253   : > { %3242 = vrot.lane.b32.xlu0 %v3178_v41, %s5955_s17  ;;  %1070 = vst.msk [vmem:[#allocation3 + $0xc0] sm:$0xff] %vm1045_vm5, %v998_v33  ;;  %v2271_v22 = vadd.f32 %v5439_v34, %v7118_v18  ;;  %v2265_v11 = vpop.f32.mrb[3].mxu0 }
 0x254   : > { %v2266_v15 = vadd.f32 %v7118_v18, %v2265_v11  ;;  %3051 = vrot.lane.b32.xlu1 %v2986_v5, %s5953_s30 }
 0x255   : > { %v1000_v13 = vpop.permute.xlu0 %999  ;;  %v2417_v48 = vmax.f32 %v2271_v22, 0.0 }
 0x256   : > { %1071 = vst.msk [vmem:[#allocation3 + $0xc8] sm:$0xff] %vm1045_vm5, %v1000_v13  ;;  %v2416_v17 = vmax.f32 %v2266_v15, 0.0  ;;  %v1767_v50 = vpop.permute.xlu1 %1766 }
 0x257   : > { %3244 = vrot.lane.b32.xlu0 %v3179_v27, %s5955_s17  ;;  %2506 = vst.msk [vmem:[#allocation4 + $0x39] sm:$0xff] %vm2446_vm12, %v2417_v48 }
 0x258   : > { %1841 = vst.msk [vmem:[#allocation3 + $0xb0] sm:$0xff] %vm1818_vm9, %v1767_v50  ;;  %2667 = vrot.lane.b32.xlu1 %v3178_v41, %s5949_s26 }
 0x259   : > { %v1769_v58 = vpop.permute.xlu0 %1768  ;;  %2505 = vst.msk [vmem:[#allocation4 + $0x31] sm:$0xff] %vm2446_vm12, %v2416_v17 }
 0x25a   : > { %1842 = vst.msk [vmem:[#allocation3 + $0xb8] sm:$0xff] %vm1818_vm9, %v1769_v58  ;;  %v1191_v4 = vpop.permute.xlu1 %1190 }
 0x25b   : > { %2669 = vrot.lane.b32.xlu0 %v3179_v27, %s5949_s26  ;;  %1263 = vst.msk [vmem:[#allocation3 + $0xc0] sm:$0xff] %vm1238_vm6, %v1191_v4 }
 0x25c   : > { %3435 = vrot.lane.b32.xlu1 %v3371_v61, %s5956_s22 }
 0x25d   : > { %v1193_v7 = vpop.permute.xlu0 %1192 }
 0x25e   : > { %1264 = vst.msk [vmem:[#allocation3 + $0xc8] sm:$0xff] %vm1238_vm6, %v1193_v7  ;;  %v1960_v36 = vpop.permute.xlu1 %1959  ;;  %v3759_v30 = vld [vmem:[#allocation4 + $0x39] sm:$0xff] }
 0x25f   : > { %3437 = vrot.lane.b32.xlu0 %v3372_v35, %s5956_s22  ;;  %2034 = vst.msk [vmem:[#allocation3 + $0xb0] sm:$0xff] %vm2011_vm10, %v1960_v36  ;;  %v3952_v55 = vld [vmem:[#allocation4 + $0x3a] sm:$0xff] }
 0x260   : > { %v3565_v43 = vld [vmem:[#allocation4 + $0x30] sm:$0xff]  ;;  %v3566_v26 = vld [vmem:[#allocation4 + $0x38] sm:$0xff]  ;;  %2860 = vrot.lane.b32.xlu1 %v3371_v61, %s5951_s28 }
 0x261   : > { %v1962_v40 = vpop.permute.xlu0 %1961  ;;  %2571 = vst.msk [vmem:[#allocation5 + $0x20] sm:$0xff] %vm2446_vm12, %v3565_v43  ;;  %2572 = vst.msk [vmem:[#allocation5 + $0x28] sm:$0xff] %vm2446_vm12, %v3566_v26  ;;  %v3758_v44 = vld [vmem:[#allocation4 + $0x31] sm:$0xff] }
 0x262   : > { %2035 = vst.msk [vmem:[#allocation3 + $0xb8] sm:$0xff] %vm2011_vm10, %v1962_v40  ;;  %v1384_v16 = vpop.permute.xlu1 %1383  ;;  %v3951_v23 = vld [vmem:[#allocation4 + $0x32] sm:$0xff] }
 0x263   : > { %2862 = vrot.lane.b32.xlu0 %v3372_v35, %s5951_s28  ;;  %1456 = vst.msk [vmem:[#allocation3 + $0xc0] sm:$0xff] %vm1431_vm7, %v1384_v16 }
 0x264   : > { %3629 = vrot.lane.b32.xlu1 %v3565_v43, %s5957_s9 }
 0x265   : > { %v1578_v38 = vpop.permute.xlu0 %1577  ;;  %v5442_v19 = vpop.f32.mrb[4].mxu0 }
 0x266   : > { %1650 = vst.msk [vmem:[#allocation3 + $0xc0] sm:$0xff] %vm1625_vm8, %v1578_v38  ;;  %v2281_v60 = vadd.f32 %v5442_v19, %v7118_v18  ;;  %v2275_v1 = vpop.f32.mrb[5].mxu0  ;;  %v1386_v47 = vpop.permute.xlu1 %1385  ;;  %v2066_v6 = vld [vmem:[#allocation3 + $0xb0] sm:$0xff] }
 0x267   : > { %3631 = vrot.lane.b32.xlu0 %v3566_v26, %s5957_s9  ;;  %v2276_v42 = vadd.f32 %v7118_v18, %v2275_v1  ;;  %1457 = vst.msk [vmem:[#allocation3 + $0xc8] sm:$0xff] %vm1431_vm7, %v1386_v47  ;;  %5467 = vmatprep.mubr.msk.f32.mxu0 %vm2088_vm11, %v2066_v6 }
 0x268   : > { %v2419_v9 = vmax.f32 %v2281_v60, 0.0  ;;  %3053 = vrot.lane.b32.xlu1 %v3565_v43, %s5953_s30 }
 0x269   : > { %v1580_v46 = vpop.permute.xlu0 %1579  ;;  %v2418_v31 = vmax.f32 %v2276_v42, 0.0  ;;  %v2067_v10 = vld [vmem:[#allocation3 + $0xb8] sm:$0xff] }
 0x26a   : > { %1651 = vst.msk [vmem:[#allocation3 + $0xc8] sm:$0xff] %vm1625_vm8, %v1580_v46  ;;  %5468 = vmatmul.mubr.msk.f32.gmra.mrb[22].mxu0 %vm2088_vm11, %v2067_v10  ;;  %v1002_v62 = vpop.permute.xlu1 %1001 }
 0x26b   : > { %2508 = vst.msk [vmem:[#allocation4 + $0x51] sm:$0xff] %vm2446_vm12, %v2419_v9  ;;  %2507 = vst.msk [vmem:[#allocation4 + $0x49] sm:$0xff] %vm2446_vm12, %v2418_v31  ;;  %3055 = vrot.lane.b32.xlu0 %v3566_v26, %s5953_s30 }
 0x26c   : > { %1072 = vst.msk [vmem:[#allocation3 + $0xd0] sm:$0xff] %vm1045_vm5, %v1002_v62  ;;  %3822 = vrot.lane.b32.xlu1 %v3758_v44, %s5958_s19 }
 0x26d   : > { %v1004_v3 = vpop.permute.xlu0 %1003 }
 0x26e   : > { %1073 = vst.msk [vmem:[#allocation3 + $0xd8] sm:$0xff] %vm1045_vm5, %v1004_v3  ;;  %v1771_v25 = vpop.permute.xlu1 %1770 }
 0x26f   : > { %3824 = vrot.lane.b32.xlu0 %v3759_v30, %s5958_s19  ;;  %1843 = vst.msk [vmem:[#allocation3 + $0xc0] sm:$0xff] %vm1818_vm9, %v1771_v25 }
 0x270   : > { %3246 = vrot.lane.b32.xlu1 %v3758_v44, %s5955_s17 }
 0x271   : > { %v1773_v63 = vpop.permute.xlu0 %1772 }
 0x272   : > { %1844 = vst.msk [vmem:[#allocation3 + $0xc8] sm:$0xff] %vm1818_vm9, %v1773_v63  ;;  %v3567_v54 = vld [vmem:[#allocation4 + $0x48] sm:$0xff]  ;;  %v3568_v8 = vld [vmem:[#allocation4 + $0x50] sm:$0xff]  ;;  %v1195_v37 = vpop.permute.xlu1 %1194 }
 0x273   : > { %2671 = vrot.lane.b32.xlu0 %v3758_v44, %s5949_s26  ;;  %2573 = vst.msk [vmem:[#allocation5 + $0x30] sm:$0xff] %vm2446_vm12, %v3567_v54  ;;  %2574 = vst.msk [vmem:[#allocation5 + $0x38] sm:$0xff] %vm2446_vm12, %v3568_v8  ;;  %v3760_v36 = vld [vmem:[#allocation4 + $0x49] sm:$0xff]  ;;  %v3761_v40 = vld [vmem:[#allocation4 + $0x51] sm:$0xff] }
 0x274   : > { %1265 = vst.msk [vmem:[#allocation3 + $0xd0] sm:$0xff] %vm1238_vm6, %v1195_v37  ;;  %4015 = vrot.lane.b32.xlu1 %v3951_v23, %s5959_s29  ;;  %v3953_v19 = vld [vmem:[#allocation4 + $0x4a] sm:$0xff]  ;;  %v3954_v21 = vld [vmem:[#allocation4 + $0x52] sm:$0xff] }
 0x275   : > { %v1197_v14 = vpop.permute.xlu0 %1196 }
 0x276   : > { %1266 = vst.msk [vmem:[#allocation3 + $0xd8] sm:$0xff] %vm1238_vm6, %v1197_v14  ;;  %v1964_v2 = vpop.permute.xlu1 %1963 }
 0x277   : > { %3439 = vrot.lane.b32.xlu0 %v3951_v23, %s5956_s22  ;;  %2036 = vst.msk [vmem:[#allocation3 + $0xc0] sm:$0xff] %vm2011_vm10, %v1964_v2 }
 0x278   : > { %3248 = vrot.lane.b32.xlu1 %v3759_v30, %s5955_s17 }
 0x279   : > { %v1966_v5 = vpop.permute.xlu0 %1965 }
 0x27a   : > { %2037 = vst.msk [vmem:[#allocation3 + $0xc8] sm:$0xff] %vm2011_vm10, %v1966_v5  ;;  %v1388_v56 = vpop.permute.xlu1 %1387 }
 0x27b   : > { %2673 = vrot.lane.b32.xlu0 %v3759_v30, %s5949_s26  ;;  %1458 = vst.msk [vmem:[#allocation3 + $0xd0] sm:$0xff] %vm1431_vm7, %v1388_v56 }
 0x27c   : > { %4017 = vrot.lane.b32.xlu1 %v3952_v55, %s5959_s29 }
 0x27d   : > { %v1582_v59 = vpop.permute.xlu0 %1581  ;;  %v5445_v45 = vpop.f32.mrb[6].mxu0 }
 0x27e   : > { %1652 = vst.msk [vmem:[#allocation3 + $0xd0] sm:$0xff] %vm1625_vm8, %v1582_v59  ;;  %v2291_v32 = vadd.f32 %v5445_v45, %v7118_v18  ;;  %v2285_v41 = vpop.f32.mrb[7].mxu0  ;;  %v1390_v34 = vpop.permute.xlu1 %1389  ;;  %v2068_v22 = vld [vmem:[#allocation3 + $0xc0] sm:$0xff] }
 0x27f   : > { %3441 = vrot.lane.b32.xlu0 %v3952_v55, %s5956_s22  ;;  %v2286_v33 = vadd.f32 %v7118_v18, %v2285_v41  ;;  %1459 = vst.msk [vmem:[#allocation3 + $0xd8] sm:$0xff] %vm1431_vm7, %v1390_v34  ;;  %5470 = vmatprep.mubr.msk.f32.mxu0 %vm2088_vm11, %v2068_v22 }
 0x280   : > { %v2421_v13 = vmax.f32 %v2291_v32, 0.0  ;;  %2864 = vrot.lane.b32.xlu1 %v3951_v23, %s5951_s28 }
 0x281   : > { %v1584_v11 = vpop.permute.xlu0 %1583  ;;  %v2420_v15 = vmax.f32 %v2286_v33, 0.0  ;;  %v2069_v27 = vld [vmem:[#allocation3 + $0xc8] sm:$0xff] }
 0x282   : > { %1653 = vst.msk [vmem:[#allocation3 + $0xd8] sm:$0xff] %vm1625_vm8, %v1584_v11  ;;  %5471 = vmatmul.mubr.msk.f32.gmra.mrb[24].mxu0 %vm2088_vm11, %v2069_v27  ;;  %v1006_v48 = vpop.permute.xlu1 %1005 }
 0x283   : > { %2510 = vst.msk [vmem:[#allocation4 + $0x69] sm:$0xff] %vm2446_vm12, %v2421_v13  ;;  %2509 = vst.msk [vmem:[#allocation4 + $0x61] sm:$0xff] %vm2446_vm12, %v2420_v15  ;;  %2866 = vrot.lane.b32.xlu0 %v3952_v55, %s5951_s28 }
 0x284   : > { %1074 = vst.msk [vmem:[#allocation3 + $0xe0] sm:$0xff] %vm1045_vm5, %v1006_v48  ;;  %3633 = vrot.lane.b32.xlu1 %v3567_v54, %s5957_s9 }
 0x285   : > { %v1008_v17 = vpop.permute.xlu0 %1007 }
 0x286   : > { %1075 = vst.msk [vmem:[#allocation3 + $0xe8] sm:$0xff] %vm1045_vm5, %v1008_v17  ;;  %v1775_v50 = vpop.permute.xlu1 %1774 }
 0x287   : > { %3635 = vrot.lane.b32.xlu0 %v3568_v8, %s5957_s9  ;;  %1845 = vst.msk [vmem:[#allocation3 + $0xd0] sm:$0xff] %vm1818_vm9, %v1775_v50 }
 0x288   : > { %3057 = vrot.lane.b32.xlu1 %v3567_v54, %s5953_s30 }
 0x289   : > { %v1777_v58 = vpop.permute.xlu0 %1776 }
 0x28a   : > { %1846 = vst.msk [vmem:[#allocation3 + $0xd8] sm:$0xff] %vm1818_vm9, %v1777_v58  ;;  %v7252_v4 = vld [vmem:[#allocation4 + $0x60] sm:$0xff]  ;;  %v7254_v7 = vld [vmem:[#allocation4 + $0x68] sm:$0xff]  ;;  %v1199_v61 = vpop.permute.xlu1 %1198 }
 0x28b   : > { %3059 = vrot.lane.b32.xlu0 %v3568_v8, %s5953_s30  ;;  %2575 = vst.msk [vmem:[#allocation5 + $0x40] sm:$0xff] %vm2446_vm12, %v7252_v4  ;;  %2576 = vst.msk [vmem:[#allocation5 + $0x48] sm:$0xff] %vm2446_vm12, %v7254_v7  ;;  %v3762_v63 = vld [vmem:[#allocation4 + $0x61] sm:$0xff]  ;;  %v3763_v54 = vld [vmem:[#allocation4 + $0x69] sm:$0xff] }
 0x28c   : > { %1267 = vst.msk [vmem:[#allocation3 + $0xe0] sm:$0xff] %vm1238_vm6, %v1199_v61  ;;  %3826 = vrot.lane.b32.xlu1 %v3760_v36, %s5958_s19  ;;  %v3955_v55 = vld [vmem:[#allocation4 + $0x62] sm:$0xff]  ;;  %v3956_v13 = vld [vmem:[#allocation4 + $0x6a] sm:$0xff] }
 0x28d   : > { %v1201_v35 = vpop.permute.xlu0 %1200 }
 0x28e   : > { %1268 = vst.msk [vmem:[#allocation3 + $0xe8] sm:$0xff] %vm1238_vm6, %v1201_v35  ;;  %v1968_v43 = vpop.permute.xlu1 %1967 }
 0x28f   : > { %3828 = vrot.lane.b32.xlu0 %v3761_v40, %s5958_s19  ;;  %2038 = vst.msk [vmem:[#allocation3 + $0xd0] sm:$0xff] %vm2011_vm10, %v1968_v43 }
 0x290   : > { %3250 = vrot.lane.b32.xlu1 %v3760_v36, %s5955_s17 }
 0x291   : > { %v1970_v26 = vpop.permute.xlu0 %1969 }
 0x292   : > { %2039 = vst.msk [vmem:[#allocation3 + $0xd8] sm:$0xff] %vm2011_vm10, %v1970_v26  ;;  %v1392_v16 = vpop.permute.xlu1 %1391 }
 0x293   : > { %2675 = vrot.lane.b32.xlu0 %v3760_v36, %s5949_s26  ;;  %1460 = vst.msk [vmem:[#allocation3 + $0xe0] sm:$0xff] %vm1431_vm7, %v1392_v16 }
 0x294   : > { %4019 = vrot.lane.b32.xlu1 %v3953_v19, %s5959_s29 }
 0x295   : > { %v1586_v38 = vpop.permute.xlu0 %1585  ;;  %v5448_v52 = vpop.f32.mrb[8].mxu0 }
 0x296   : > { %1654 = vst.msk [vmem:[#allocation3 + $0xe0] sm:$0xff] %vm1625_vm8, %v1586_v38  ;;  %v2301_v39 = vadd.f32 %v5448_v52, %v7118_v18  ;;  %v2295_v60 = vpop.f32.mrb[9].mxu0  ;;  %v1394_v49 = vpop.permute.xlu1 %1393  ;;  %v2070_v42 = vld [vmem:[#allocation3 + $0xd0] sm:$0xff] }
 0x297   : > { %3443 = vrot.lane.b32.xlu0 %v3953_v19, %s5956_s22  ;;  %v2296_v1 = vadd.f32 %v7118_v18, %v2295_v60  ;;  %1461 = vst.msk [vmem:[#allocation3 + $0xe8] sm:$0xff] %vm1431_vm7, %v1394_v49  ;;  %5473 = vmatprep.mubr.msk.f32.mxu0 %vm2088_vm11, %v2070_v42 }
 0x298   : > { %v2423_v47 = vmax.f32 %v2301_v39, 0.0  ;;  %3252 = vrot.lane.b32.xlu1 %v3761_v40, %s5955_s17 }
 0x299   : > { %v1588_v6 = vpop.permute.xlu0 %1587  ;;  %v2422_v9 = vmax.f32 %v2296_v1, 0.0  ;;  %v2071_v46 = vld [vmem:[#allocation3 + $0xd8] sm:$0xff] }
 0x29a   : > { %1655 = vst.msk [vmem:[#allocation3 + $0xe8] sm:$0xff] %vm1625_vm8, %v1588_v6  ;;  %5474 = vmatmul.mubr.msk.f32.gmra.mrb[26].mxu0 %vm2088_vm11, %v2071_v46  ;;  %v1010_v31 = vpop.permute.xlu1 %1009 }
 0x29b   : > { %2512 = vst.msk [vmem:[#allocation4 + $0x81] sm:$0xff] %vm2446_vm12, %v2423_v47  ;;  %2511 = vst.msk [vmem:[#allocation4 + $0x79] sm:$0xff] %vm2446_vm12, %v2422_v9  ;;  %2677 = vrot.lane.b32.xlu0 %v3761_v40, %s5949_s26 }
 0x29c   : > { %1076 = vst.msk [vmem:[#allocation3 + $0xf0] sm:$0xff] %vm1045_vm5, %v1010_v31  ;;  %4021 = vrot.lane.b32.xlu1 %v3954_v21, %s5959_s29 }
 0x29d   : > { %v1012_v10 = vpop.permute.xlu0 %1011 }
 0x29e   : > { %1077 = vst.msk [vmem:[#allocation3 + $0xf8] sm:$0xff] %vm1045_vm5, %v1012_v10  ;;  %v1779_v57 = vpop.permute.xlu1 %1778  ;;  %vm4111_vm5 = vcmask 589312  }
 0x29f   : > { %3445 = vrot.lane.b32.xlu0 %v3954_v21, %s5956_s22  ;;  %1847 = vst.msk [vmem:[#allocation3 + $0xe0] sm:$0xff] %vm1818_vm9, %v1779_v57 }
 0x2a0   : > { %2868 = vrot.lane.b32.xlu1 %v3953_v19, %s5951_s28 }
 0x2a1   : > { %v1781_v53 = vpop.permute.xlu0 %1780 }
 0x2a2   : > { %1848 = vst.msk [vmem:[#allocation3 + $0xe8] sm:$0xff] %vm1818_vm9, %v1781_v53  ;;  %v7290_v62 = vld [vmem:[#allocation4 + $0x78] sm:$0xff]  ;;  %v7292_v3 = vld [vmem:[#allocation4 + $0x80] sm:$0xff]  ;;  %v1203_v44 = vpop.permute.xlu1 %1202 }
 0x2a3   : > { %2870 = vrot.lane.b32.xlu0 %v3954_v21, %s5951_s28  ;;  %2577 = vst.msk [vmem:[#allocation5 + $0x50] sm:$0xff] %vm2446_vm12, %v7290_v62  ;;  %2578 = vst.msk [vmem:[#allocation5 + $0x58] sm:$0xff] %vm2446_vm12, %v7292_v3  ;;  %v3764_v38 = vld [vmem:[#allocation4 + $0x79] sm:$0xff]  ;;  %v3765_v19 = vld [vmem:[#allocation4 + $0x81] sm:$0xff] }
 0x2a4   : > { %1269 = vst.msk [vmem:[#allocation3 + $0xf0] sm:$0xff] %vm1238_vm6, %v1203_v44  ;;  %3637 = vrot.lane.b32.xlu1 %v7252_v4, %s5957_s9  ;;  %v3957_v47 = vld [vmem:[#allocation4 + $0x7a] sm:$0xff]  ;;  %v3958_v10 = vld [vmem:[#allocation4 + $0x82] sm:$0xff] }
 0x2a5   : > { %v1205_v24 = vpop.permute.xlu0 %1204 }
 0x2a6   : > { %1270 = vst.msk [vmem:[#allocation3 + $0xf8] sm:$0xff] %vm1238_vm6, %v1205_v24  ;;  %v1972_v29 = vpop.permute.xlu1 %1971  ;;  %vm4192_vm6 = vcmask 588800  }
 0x2a7   : > { %3639 = vrot.lane.b32.xlu0 %v7254_v7, %s5957_s9  ;;  %2040 = vst.msk [vmem:[#allocation3 + $0xe0] sm:$0xff] %vm2011_vm10, %v1972_v29 }
 0x2a8   : > { %3061 = vrot.lane.b32.xlu1 %v7252_v4, %s5953_s30 }
 0x2a9   : > { %v1974_v30 = vpop.permute.xlu0 %1973 }
 0x2aa   : > { %2041 = vst.msk [vmem:[#allocation3 + $0xe8] sm:$0xff] %vm2011_vm10, %v1974_v30  ;;  %v1396_v51 = vpop.permute.xlu1 %1395 }
 0x2ab   : > { %3063 = vrot.lane.b32.xlu0 %v7254_v7, %s5953_s30  ;;  %1462 = vst.msk [vmem:[#allocation3 + $0xf0] sm:$0xff] %vm1431_vm7, %v1396_v51 }
 0x2ac   : > { %3830 = vrot.lane.b32.xlu1 %v3762_v63, %s5958_s19 }
 0x2ad   : > { %v1590_v25 = vpop.permute.xlu0 %1589  ;;  %v5451_v20 = vpop.f32.mrb[10].mxu0 }
 0x2ae   : > { %1656 = vst.msk [vmem:[#allocation3 + $0xf0] sm:$0xff] %vm1625_vm8, %v1590_v25  ;;  %v2311_v8 = vadd.f32 %v5451_v20, %v7118_v18  ;;  %v2305_v12 = vpop.f32.mrb[11].mxu0  ;;  %v1398_v28 = vpop.permute.xlu1 %1397  ;;  %v2072_v14 = vld [vmem:[#allocation3 + $0xe0] sm:$0xff] }
 0x2af   : > { %3832 = vrot.lane.b32.xlu0 %v3763_v54, %s5958_s19  ;;  %v2306_v37 = vadd.f32 %v7118_v18, %v2305_v12  ;;  %1463 = vst.msk [vmem:[#allocation3 + $0xf8] sm:$0xff] %vm1431_vm7, %v1398_v28  ;;  %5476 = vmatprep.mubr.msk.f32.mxu0 %vm2088_vm11, %v2072_v14 }
 0x2b0   : > { %v2425_v23 = vmax.f32 %v2311_v8, 0.0  ;;  %3254 = vrot.lane.b32.xlu1 %v3762_v63, %s5955_s17 }
 0x2b1   : > { %v1783_v0 = vpop.permute.xlu0 %1782  ;;  %v2424_v2 = vmax.f32 %v2306_v37, 0.0  ;;  %v2073_v5 = vld [vmem:[#allocation3 + $0xe8] sm:$0xff] }
 0x2b2   : > { %1849 = vst.msk [vmem:[#allocation3 + $0xf0] sm:$0xff] %vm1818_vm9, %v1783_v0  ;;  %5477 = vmatmul.mubr.msk.f32.gmra.mrb[28].mxu0 %vm2088_vm11, %v2073_v5  ;;  %v1592_v56 = vpop.permute.xlu1 %1591 }
 0x2b3   : > { %2514 = vst.msk [vmem:[#allocation4 + $0x99] sm:$0xff] %vm2446_vm12, %v2425_v23  ;;  %2513 = vst.msk [vmem:[#allocation4 + $0x91] sm:$0xff] %vm2446_vm12, %v2424_v2  ;;  %2679 = vrot.lane.b32.xlu0 %v3762_v63, %s5949_s26 }
 0x2b4   : > { %1657 = vst.msk [vmem:[#allocation3 + $0xf8] sm:$0xff] %vm1625_vm8, %v1592_v56  ;;  %4023 = vrot.lane.b32.xlu1 %v3955_v55, %s5959_s29 }
 0x2b5   : > { %v1976_v59 = vpop.permute.xlu0 %1975 }
 0x2b6   : > { %2042 = vst.msk [vmem:[#allocation3 + $0xf0] sm:$0xff] %vm2011_vm10, %v1976_v59  ;;  %v1785_v45 = vpop.permute.xlu1 %1784 }
 0x2b7   : > { %3447 = vrot.lane.b32.xlu0 %v3955_v55, %s5956_s22  ;;  %1850 = vst.msk [vmem:[#allocation3 + $0xf8] sm:$0xff] %vm1818_vm9, %v1785_v45 }
 0x2b8   : > { %3256 = vrot.lane.b32.xlu1 %v3763_v54, %s5955_s17 }
 0x2b9   : > { %v2664_v32 = vpop.permute.xlu0 %2663 }
 0x2ba   : > { %2760 = vst.msk [vmem:[#allocation5] sm:$0xff] %vm2759_vm14, %v2664_v32  ;;  %v7332_v41 = vld [vmem:[#allocation4 + $0x90] sm:$0xff]  ;;  %v7334_v33 = vld [vmem:[#allocation4 + $0x98] sm:$0xff]  ;;  %v1978_v34 = vpop.permute.xlu1 %1977 }
 0x2bb   : > { %2681 = vrot.lane.b32.xlu0 %v3763_v54, %s5949_s26  ;;  %2579 = vst.msk [vmem:[#allocation5 + $0x60] sm:$0xff] %vm2446_vm12, %v7332_v41  ;;  %2580 = vst.msk [vmem:[#allocation5 + $0x68] sm:$0xff] %vm2446_vm12, %v7334_v33  ;;  %v3766_v37 = vld [vmem:[#allocation4 + $0x91] sm:$0xff]  ;;  %v3767_v28 = vld [vmem:[#allocation4 + $0x99] sm:$0xff] }
 0x2bc   : > { %2043 = vst.msk [vmem:[#allocation3 + $0xf8] sm:$0xff] %vm2011_vm10, %v1978_v34  ;;  %4025 = vrot.lane.b32.xlu1 %v3956_v13, %s5959_s29  ;;  %v3959_v56 = vld [vmem:[#allocation4 + $0x92] sm:$0xff] }
 0x2bd   : > { %v2857_v22 = vpop.permute.xlu0 %2856  ;;  %v2074_v11 = vld [vmem:[#allocation3 + $0xf0] sm:$0xff] }
 0x2be   : > { %2953 = vst.msk [vmem:[#allocation5] sm:$0xff] %vm2952_vm15, %v2857_v22  ;;  %5479 = vmatprep.mubr.msk.f32.mxu0 %vm2088_vm11, %v2074_v11  ;;  %v2666_v15 = vpop.permute.xlu1 %2665 }
 0x2bf   : > { %3449 = vrot.lane.b32.xlu0 %v3956_v13, %s5956_s22  ;;  %2761 = vst.msk [vmem:[#allocation5 + $0x8] sm:$0xff] %vm2759_vm14, %v2666_v15  ;;  %v3960_v15 = vld [vmem:[#allocation4 + $0x9a] sm:$0xff] }
 0x2c0   : > { %2872 = vrot.lane.b32.xlu1 %v3955_v55, %s5951_s28 }
 0x2c1   : > { %v3050_v27 = vpop.permute.xlu0 %3049 }
 0x2c2   : > { %3146 = vst.msk [vmem:[#allocation5] sm:$0xff] %vm3145_vm0, %v3050_v27  ;;  %v2859_v48 = vpop.permute.xlu1 %2858 }
 0x2c3   : > { %2874 = vrot.lane.b32.xlu0 %v3956_v13, %s5951_s28  ;;  %v2075_v17 = vld [vmem:[#allocation3 + $0xf8] sm:$0xff]  ;;  %2954 = vst.msk [vmem:[#allocation5 + $0x8] sm:$0xff] %vm2952_vm15, %v2859_v48 }
 0x2c4   : > { %5480 = vmatmul.mubr.msk.f32.gmra.mrb[30].mxu0 %vm2088_vm11, %v2075_v17  ;;  %3641 = vrot.lane.b32.xlu1 %v7290_v62, %s5957_s9 }
 0x2c5   : > { %v3243_v50 = vpop.permute.xlu0 %3242  ;;  %v5454_v58 = vpop.f32.mrb[12].mxu0 }
 0x2c6   : > { %3339 = vst.msk [vmem:[#allocation5] sm:$0xff] %vm3338_vm1, %v3243_v50  ;;  %v2321_v4 = vadd.f32 %v5454_v58, %v7118_v18  ;;  %v2315_v7 = vpop.f32.mrb[13].mxu0  ;;  %v3052_v35 = vpop.permute.xlu1 %3051 }
 0x2c7   : > { %3643 = vrot.lane.b32.xlu0 %v7292_v3, %s5957_s9  ;;  %v2316_v61 = vadd.f32 %v7118_v18, %v2315_v7  ;;  %3147 = vst.msk [vmem:[#allocation5 + $0x8] sm:$0xff] %vm3145_vm0, %v3052_v35 }
 0x2c8   : > { %v2427_v36 = vmax.f32 %v2321_v4, 0.0  ;;  %3065 = vrot.lane.b32.xlu1 %v7290_v62, %s5953_s30 }
 0x2c9   : > { %v3245_v40 = vpop.permute.xlu0 %3244  ;;  %v2426_v43 = vmax.f32 %v2316_v61, 0.0 }
 0x2ca   : > { %3340 = vst.msk [vmem:[#allocation5 + $0x8] sm:$0xff] %vm3338_vm1, %v3245_v40  ;;  %v2668_v26 = vpop.permute.xlu1 %2667 }
 0x2cb   : > { %2516 = vst.msk [vmem:[#allocation4 + $0xb1] sm:$0xff] %vm2446_vm12, %v2427_v36  ;;  %2515 = vst.msk [vmem:[#allocation4 + $0xa9] sm:$0xff] %vm2446_vm12, %v2426_v43  ;;  %3067 = vrot.lane.b32.xlu0 %v7292_v3, %s5953_s30 }
 0x2cc   : > { %2762 = vst.msk [vmem:[#allocation5 + $0x10] sm:$0xff] %vm2759_vm14, %v2668_v26  ;;  %3834 = vrot.lane.b32.xlu1 %v3764_v38, %s5958_s19 }
 0x2cd   : > { %v2670_v16 = vpop.permute.xlu0 %2669 }
 0x2ce   : > { %2763 = vst.msk [vmem:[#allocation5 + $0x18] sm:$0xff] %vm2759_vm14, %v2670_v16  ;;  %v3436_v52 = vpop.permute.xlu1 %3435  ;;  %v7479_v16 = vld [vmem:[%s8113_s3] ss:$0 sm:$0xff] }
 0x2cf   : > { %3836 = vrot.lane.b32.xlu0 %v3765_v19, %s5958_s19  ;;  %3532 = vst.msk [vmem:[#allocation5] sm:$0xff] %vm3531_vm2, %v3436_v52 }
 0x2d0   : > { %3258 = vrot.lane.b32.xlu1 %v3764_v38, %s5955_s17 }
 0x2d1   : > { %v3438_v39 = vpop.permute.xlu0 %3437 }
 0x2d2   : > { %3533 = vst.msk [vmem:[#allocation5 + $0x8] sm:$0xff] %vm3531_vm2, %v3438_v39  ;;  %v7374_v60 = vld [vmem:[#allocation4 + $0xa8] sm:$0xff]  ;;  %v7376_v1 = vld [vmem:[#allocation4 + $0xb0] sm:$0xff]  ;;  %v2861_v49 = vpop.permute.xlu1 %2860 }
 0x2d3   : > { %2683 = vrot.lane.b32.xlu0 %v3764_v38, %s5949_s26  ;;  %2581 = vst.msk [vmem:[#allocation5 + $0x70] sm:$0xff] %vm2446_vm12, %v7374_v60  ;;  %2582 = vst.msk [vmem:[#allocation5 + $0x78] sm:$0xff] %vm2446_vm12, %v7376_v1  ;;  %v3768_v40 = vld [vmem:[#allocation4 + $0xa9] sm:$0xff]  ;;  %v3769_v26 = vld [vmem:[#allocation4 + $0xb1] sm:$0xff] }
 0x2d4   : > { %2955 = vst.msk [vmem:[#allocation5 + $0x10] sm:$0xff] %vm2952_vm15, %v2861_v49  ;;  %4027 = vrot.lane.b32.xlu1 %v3957_v47, %s5959_s29 }
 0x2d5   : > { %v2863_v42 = vpop.permute.xlu0 %2862 }
 0x2d6   : > { %2956 = vst.msk [vmem:[#allocation5 + $0x18] sm:$0xff] %vm2952_vm15, %v2863_v42  ;;  %v3630_v6 = vpop.permute.xlu1 %3629 }
 0x2d7   : > { %3451 = vrot.lane.b32.xlu0 %v3957_v47, %s5956_s22  ;;  %3726 = vst.msk [vmem:[#allocation5] sm:$0xff] %vm3725_vm3, %v3630_v6 }
 0x2d8   : > { %3260 = vrot.lane.b32.xlu1 %v3765_v19, %s5955_s17 }
 0x2d9   : > { %v3632_v9 = vpop.permute.xlu0 %3631 }
 0x2da   : > { %3727 = vst.msk [vmem:[#allocation5 + $0x8] sm:$0xff] %vm3725_vm3, %v3632_v9  ;;  %v3054_v46 = vpop.permute.xlu1 %3053  ;;  %v3961_v9 = vld [vmem:[#allocation4 + $0xaa] sm:$0xff] }
 0x2db   : > { %2685 = vrot.lane.b32.xlu0 %v3765_v19, %s5949_s26  ;;  %3148 = vst.msk [vmem:[#allocation5 + $0x10] sm:$0xff] %vm3145_vm0, %v3054_v46 }
 0x2dc   : > { %4029 = vrot.lane.b32.xlu1 %v3958_v10, %s5959_s29 }
 0x2dd   : > { %v3056_v31 = vpop.permute.xlu0 %3055  ;;  %v5457_v21 = vpop.f32.mrb[14].mxu0 }
 0x2de   : > { %3149 = vst.msk [vmem:[#allocation5 + $0x18] sm:$0xff] %vm3145_vm0, %v3056_v31  ;;  %v2331_v57 = vadd.f32 %v5457_v21, %v7118_v18  ;;  %v2325_v53 = vpop.f32.mrb[15].mxu0  ;;  %v3823_v3 = vpop.permute.xlu1 %3822 }
 0x2df   : > { %3453 = vrot.lane.b32.xlu0 %v3958_v10, %s5956_s22  ;;  %v2326_v62 = vadd.f32 %v7118_v18, %v2325_v53  ;;  %3919 = vst.msk [vmem:[#allocation5] sm:$0xff] %vm3918_vm4, %v3823_v3  ;;  %v3962_v3 = vld [vmem:[#allocation4 + $0xb2] sm:$0xff] }
 0x2e0   : > { %v2429_v44 = vmax.f32 %v2331_v57, 0.0  ;;  %2876 = vrot.lane.b32.xlu1 %v3957_v47, %s5951_s28 }
 0x2e1   : > { %v3825_v24 = vpop.permute.xlu0 %3824  ;;  %v2428_v29 = vmax.f32 %v2326_v62, 0.0 }
 0x2e2   : > { %3920 = vst.msk [vmem:[#allocation5 + $0x8] sm:$0xff] %vm3918_vm4, %v3825_v24  ;;  %v3247_v30 = vpop.permute.xlu1 %3246 }
 0x2e3   : > { %2518 = vst.msk [vmem:[#allocation4 + $0xc9] sm:$0xff] %vm2446_vm12, %v2429_v44  ;;  %2517 = vst.msk [vmem:[#allocation4 + $0xc1] sm:$0xff] %vm2446_vm12, %v2428_v29  ;;  %2878 = vrot.lane.b32.xlu0 %v3958_v10, %s5951_s28 }
 0x2e4   : > { %3341 = vst.msk [vmem:[#allocation5 + $0x10] sm:$0xff] %vm3338_vm1, %v3247_v30  ;;  %3645 = vrot.lane.b32.xlu1 %v7332_v41, %s5957_s9 }
 0x2e5   : > { %v2672_v51 = vpop.permute.xlu0 %2671 }
 0x2e6   : > { %2764 = vst.msk [vmem:[#allocation5 + $0x20] sm:$0xff] %vm2759_vm14, %v2672_v51  ;;  %v4016_v25 = vpop.permute.xlu1 %4015 }
 0x2e7   : > { %3647 = vrot.lane.b32.xlu0 %v7334_v33, %s5957_s9  ;;  %4112 = vst.msk [vmem:[#allocation5] sm:$0xff] %vm4111_vm5, %v4016_v25 }
 0x2e8   : > { %3069 = vrot.lane.b32.xlu1 %v7332_v41, %s5953_s30 }
 0x2e9   : > { %v3440_v63 = vpop.permute.xlu0 %3439 }
 0x2ea   : > { %3534 = vst.msk [vmem:[#allocation5 + $0x10] sm:$0xff] %vm3531_vm2, %v3440_v63  ;;  %v7413_v20 = vld [vmem:[#allocation4 + $0xc0] sm:$0xff]  ;;  %v7415_v54 = vld [vmem:[#allocation4 + $0xc8] sm:$0xff]  ;;  %v3249_v8 = vpop.permute.xlu1 %3248 }
 0x2eb   : > { %3071 = vrot.lane.b32.xlu0 %v7334_v33, %s5953_s30  ;;  %2583 = vst.msk [vmem:[#allocation5 + $0x80] sm:$0xff] %vm2446_vm12, %v7413_v20  ;;  %2584 = vst.msk [vmem:[#allocation5 + $0x88] sm:$0xff] %vm2446_vm12, %v7415_v54 }
 0x2ec   : > { %3342 = vst.msk [vmem:[#allocation5 + $0x18] sm:$0xff] %vm3338_vm1, %v3249_v8  ;;  %3838 = vrot.lane.b32.xlu1 %v3766_v37, %s5958_s19 }
 0x2ed   : > { %v2674_v12 = vpop.permute.xlu0 %2673 }
 0x2ee   : > { %2765 = vst.msk [vmem:[#allocation5 + $0x28] sm:$0xff] %vm2759_vm14, %v2674_v12  ;;  %v4018_v14 = vpop.permute.xlu1 %4017  ;;  %v4144_v23 = vld [vmem:[#allocation5] sm:$0xff] }
 0x2ef   : > { %3840 = vrot.lane.b32.xlu0 %v3767_v28, %s5958_s19  ;;  %4113 = vst.msk [vmem:[#allocation5 + $0x8] sm:$0xff] %vm4111_vm5, %v4018_v14  ;;  %5500 = vmatprep.mubr.msk.f32.mxu1 %vm4192_vm6, %v4144_v23 }
 0x2f0   : > { %3262 = vrot.lane.b32.xlu1 %v3766_v37, %s5955_s17 }
 0x2f1   : > { %v3442_v0 = vpop.permute.xlu0 %3441 }
 0x2f2   : > { %3535 = vst.msk [vmem:[#allocation5 + $0x18] sm:$0xff] %vm3531_vm2, %v3442_v0  ;;  %v2865_v2 = vpop.permute.xlu1 %2864 }
 0x2f3   : > { %2687 = vrot.lane.b32.xlu0 %v3766_v37, %s5949_s26  ;;  %2957 = vst.msk [vmem:[#allocation5 + $0x20] sm:$0xff] %vm2952_vm15, %v2865_v2  ;;  %v3770_v2 = vld [vmem:[#allocation4 + $0xc1] sm:$0xff] }
 0x2f4   : > { %4031 = vrot.lane.b32.xlu1 %v3959_v56, %s5959_s29 }
 0x2f5   : > { %v2867_v5 = vpop.permute.xlu0 %2866  ;;  %v5460_v59 = vpop.f32.mrb[16].mxu0 }
 0x2f6   : > { %2958 = vst.msk [vmem:[#allocation5 + $0x28] sm:$0xff] %vm2952_vm15, %v2867_v5  ;;  %v2341_v55 = vadd.f32 %v5460_v59, %v7118_v18  ;;  %v2335_v45 = vpop.f32.mrb[17].mxu0  ;;  %v3634_v41 = vpop.permute.xlu1 %3633  ;;  %v4145_v33 = vld [vmem:[#allocation5 + $0x8] sm:$0xff]  ;;  %v3771_v5 = vld [vmem:[#allocation4 + $0xc9] sm:$0xff] }
 0x2f7   : > { %3455 = vrot.lane.b32.xlu0 %v3959_v56, %s5956_s22  ;;  %v2336_v32 = vadd.f32 %v7118_v18, %v2335_v45  ;;  %3728 = vst.msk [vmem:[#allocation5 + $0x10] sm:$0xff] %vm3725_vm3, %v3634_v41  ;;  %5501 = vmatmul.mubr.msk.f32.vlgmr.msra.gmra.mrb[0].mxu1 %vm4192_vm6, %v4145_v33  ;;  %v3963_v41 = vld [vmem:[#allocation4 + $0xc2] sm:$0xff] }
 0x2f8   : > { %v2431_v34 = vmax.f32 %v2341_v55, 0.0  ;;  %3264 = vrot.lane.b32.xlu1 %v3767_v28, %s5955_s17 }
 0x2f9   : > { %v3636_v22 = vpop.permute.xlu0 %3635  ;;  %v2430_v13 = vmax.f32 %v2336_v32, 0.0 }
 0x2fa   : > { %3729 = vst.msk [vmem:[#allocation5 + $0x18] sm:$0xff] %vm3725_vm3, %v3636_v22  ;;  %v3058_v18 = vpop.permute.xlu1 %3057 }
 0x2fb   : > { %2520 = vst.msk [vmem:[#allocation4 + $0xe1] sm:$0xff] %vm2446_vm12, %v2431_v34  ;;  %2519 = vst.msk [vmem:[#allocation4 + $0xd9] sm:$0xff] %vm2446_vm12, %v2430_v13  ;;  %2689 = vrot.lane.b32.xlu0 %v3767_v28, %s5949_s26 }
 0x2fc   : > { %3150 = vst.msk [vmem:[#allocation5 + $0x20] sm:$0xff] %vm3145_vm0, %v3058_v18  ;;  %4033 = vrot.lane.b32.xlu1 %v3960_v15, %s5959_s29 }
 0x2fd   : > { %v3060_v11 = vpop.permute.xlu0 %3059 }
 0x2fe   : > { %3151 = vst.msk [vmem:[#allocation5 + $0x28] sm:$0xff] %vm3145_vm0, %v3060_v11  ;;  %v3827_v27 = vpop.permute.xlu1 %3826  ;;  %v3964_v11 = vld [vmem:[#allocation4 + $0xca] sm:$0xff] }
 0x2ff   : > { %3457 = vrot.lane.b32.xlu0 %v3960_v15, %s5956_s22  ;;  %3921 = vst.msk [vmem:[#allocation5 + $0x10] sm:$0xff] %vm3918_vm4, %v3827_v27 }
 0x300   : > { %2880 = vrot.lane.b32.xlu1 %v3959_v56, %s5951_s28 }
 0x301   : > { %v3829_v48 = vpop.permute.xlu0 %3828 }
 0x302   : > { %3922 = vst.msk [vmem:[#allocation5 + $0x18] sm:$0xff] %vm3918_vm4, %v3829_v48  ;;  %v7452_v17 = vld [vmem:[#allocation4 + $0xd8] sm:$0xff]  ;;  %v7454_v50 = vld [vmem:[#allocation4 + $0xe0] sm:$0xff]  ;;  %v3251_v58 = vpop.permute.xlu1 %3250 }
 0x303   : > { %2882 = vrot.lane.b32.xlu0 %v3960_v15, %s5951_s28  ;;  %2585 = vst.msk [vmem:[#allocation5 + $0x90] sm:$0xff] %vm2446_vm12, %v7452_v17  ;;  %2586 = vst.msk [vmem:[#allocation5 + $0x98] sm:$0xff] %vm2446_vm12, %v7454_v50 }
 0x304   : > { %3343 = vst.msk [vmem:[#allocation5 + $0x20] sm:$0xff] %vm3338_vm1, %v3251_v58  ;;  %3649 = vrot.lane.b32.xlu1 %v7374_v60, %s5957_s9 }
 0x305   : > { %v2676_v4 = vpop.permute.xlu0 %2675 }
 0x306   : > { %2766 = vst.msk [vmem:[#allocation5 + $0x30] sm:$0xff] %vm2759_vm14, %v2676_v4  ;;  %v4020_v7 = vpop.permute.xlu1 %4019 }
 0x307   : > { %3651 = vrot.lane.b32.xlu0 %v7376_v1, %s5957_s9  ;;  %4114 = vst.msk [vmem:[#allocation5 + $0x10] sm:$0xff] %vm4111_vm5, %v4020_v7 }
 0x308   : > { %3073 = vrot.lane.b32.xlu1 %v7374_v60, %s5953_s30 }
 0x309   : > { %v3444_v61 = vpop.permute.xlu0 %3443 }
 0x30a   : > { %3536 = vst.msk [vmem:[#allocation5 + $0x20] sm:$0xff] %vm3531_vm2, %v3444_v61  ;;  %v3253_v35 = vpop.permute.xlu1 %3252 }
 0x30b   : > { %3075 = vrot.lane.b32.xlu0 %v7376_v1, %s5953_s30  ;;  %3344 = vst.msk [vmem:[#allocation5 + $0x28] sm:$0xff] %vm3338_vm1, %v3253_v35 }
 0x30c   : > { %3842 = vrot.lane.b32.xlu1 %v3768_v40, %s5958_s19 }
 0x30d   : > { %v2678_v36 = vpop.permute.xlu0 %2677  ;;  %v5463_v43 = vpop.f32.mrb[18].mxu0 }
 0x30e   : > { %2767 = vst.msk [vmem:[#allocation5 + $0x38] sm:$0xff] %vm2759_vm14, %v2678_v36  ;;  %v2351_v38 = vadd.f32 %v7479_v16, %v5463_v43  ;;  %v2345_v19 = vpop.f32.mrb[19].mxu0  ;;  %v4022_v39 = vpop.permute.xlu1 %4021  ;;  %v4146_v60 = vld [vmem:[#allocation5 + $0x10] sm:$0xff] }
 0x30f   : > { %3844 = vrot.lane.b32.xlu0 %v3769_v26, %s5958_s19  ;;  %v2346_v52 = vadd.f32 %v7479_v16, %v2345_v19  ;;  %4115 = vst.msk [vmem:[#allocation5 + $0x18] sm:$0xff] %vm4111_vm5, %v4022_v39  ;;  %5503 = vmatprep.mubr.msk.f32.mxu1 %vm4192_vm6, %v4146_v60  ;;  %v3772_v60 = vld [vmem:[#allocation4 + $0xd9] sm:$0xff] }
 0x310   : > { %v2433_v1 = vmax.f32 %v2351_v38, 0.0  ;;  %3266 = vrot.lane.b32.xlu1 %v3768_v40, %s5955_s17 }
 0x311   : > { %v3446_v49 = vpop.permute.xlu0 %3445  ;;  %v2432_v42 = vmax.f32 %v2346_v52, 0.0 }
 0x312   : > { %3537 = vst.msk [vmem:[#allocation5 + $0x28] sm:$0xff] %vm3531_vm2, %v3446_v49  ;;  %v2869_v47 = vpop.permute.xlu1 %2868 }
 0x313   : > { %2522 = vst.msk [vmem:[#allocation4 + $0xf9] sm:$0xff] %vm2446_vm12, %v2433_v1  ;;  %2521 = vst.msk [vmem:[#allocation4 + $0xf1] sm:$0xff] %vm2446_vm12, %v2432_v42  ;;  %2691 = vrot.lane.b32.xlu0 %v3768_v40, %s5949_s26 }
 0x314   : > { %2959 = vst.msk [vmem:[#allocation5 + $0x30] sm:$0xff] %vm2952_vm15, %v2869_v47  ;;  %4035 = vrot.lane.b32.xlu1 %v3961_v9, %s5959_s29 }
 0x315   : > { %v2871_v6 = vpop.permute.xlu0 %2870 }
 0x316   : > { %2960 = vst.msk [vmem:[#allocation5 + $0x38] sm:$0xff] %vm2952_vm15, %v2871_v6  ;;  %v3638_v46 = vpop.permute.xlu1 %3637  ;;  %v4147_v31 = vld [vmem:[#allocation5 + $0x18] sm:$0xff]  ;;  %v3965_v6 = vld [vmem:[#allocation4 + $0xda] sm:$0xff] }
 0x317   : > { %3459 = vrot.lane.b32.xlu0 %v3961_v9, %s5956_s22  ;;  %3730 = vst.msk [vmem:[#allocation5 + $0x20] sm:$0xff] %vm3725_vm3, %v3638_v46  ;;  %5504 = vmatmul.mubr.msk.f32.gmra.mrb[2].mxu1 %vm4192_vm6, %v4147_v31 }
 0x318   : > { %3268 = vrot.lane.b32.xlu1 %v3769_v26, %s5955_s17 }
 0x319   : > { %v3640_v10 = vpop.permute.xlu0 %3639 }
 0x31a   : > { %3731 = vst.msk [vmem:[#allocation5 + $0x28] sm:$0xff] %vm3725_vm3, %v3640_v10  ;;  %v7499_v21 = vld [vmem:[#allocation4 + $0xf0] sm:$0xff]  ;;  %v7501_v57 = vld [vmem:[#allocation4 + $0xf8] sm:$0xff]  ;;  %v3062_v53 = vpop.permute.xlu1 %3061 }
 0x31b   : > { %2693 = vrot.lane.b32.xlu0 %v3769_v26, %s5949_s26  ;;  %2587 = vst.msk [vmem:[#allocation5 + $0xa0] sm:$0xff] %vm2446_vm12, %v7499_v21  ;;  %2588 = vst.msk [vmem:[#allocation5 + $0xa8] sm:$0xff] %vm2446_vm12, %v7501_v57 }
 0x31c   : > { %3152 = vst.msk [vmem:[#allocation5 + $0x30] sm:$0xff] %vm3145_vm0, %v3062_v53  ;;  %4037 = vrot.lane.b32.xlu1 %v3962_v3, %s5959_s29 }
 0x31d   : > { %v3064_v62 = vpop.permute.xlu0 %3063 }
 0x31e   : > { %3153 = vst.msk [vmem:[#allocation5 + $0x38] sm:$0xff] %vm3145_vm0, %v3064_v62  ;;  %v3831_v44 = vpop.permute.xlu1 %3830 }
 0x31f   : > { %3461 = vrot.lane.b32.xlu0 %v3962_v3, %s5956_s22  ;;  %3923 = vst.msk [vmem:[#allocation5 + $0x20] sm:$0xff] %vm3918_vm4, %v3831_v44 }
 0x320   : > { %2884 = vrot.lane.b32.xlu1 %v3961_v9, %s5951_s28 }
 0x321   : > { %v3833_v24 = vpop.permute.xlu0 %3832 }
 0x322   : > { %3924 = vst.msk [vmem:[#allocation5 + $0x28] sm:$0xff] %vm3918_vm4, %v3833_v24  ;;  %v3255_v29 = vpop.permute.xlu1 %3254 }
 0x323   : > { %2886 = vrot.lane.b32.xlu0 %v3962_v3, %s5951_s28  ;;  %3345 = vst.msk [vmem:[#allocation5 + $0x30] sm:$0xff] %vm3338_vm1, %v3255_v29 }
 0x324   : > { %3653 = vrot.lane.b32.xlu1 %v7413_v20, %s5957_s9 }
 0x325   : > { %v2680_v30 = vpop.permute.xlu0 %2679  ;;  %v5466_v51 = vpop.f32.mrb[20].mxu0 }
 0x326   : > { %2768 = vst.msk [vmem:[#allocation5 + $0x40] sm:$0xff] %vm2759_vm14, %v2680_v30  ;;  %v2361_v25 = vadd.f32 %v7479_v16, %v5466_v51  ;;  %v2355_v63 = vpop.f32.mrb[21].mxu0  ;;  %v4024_v12 = vpop.permute.xlu1 %4023  ;;  %v3966_v51 = vld [vmem:[#allocation4 + $0xe2] sm:$0xff] }
 0x327   : > { %3655 = vrot.lane.b32.xlu0 %v7415_v54, %s5957_s9  ;;  %v2356_v8 = vadd.f32 %v7479_v16, %v2355_v63  ;;  %4116 = vst.msk [vmem:[#allocation5 + $0x20] sm:$0xff] %vm4111_vm5, %v4024_v12 }
 0x328   : > { %v2435_v37 = vmax.f32 %v2361_v25, 0.0  ;;  %3077 = vrot.lane.b32.xlu1 %v7413_v20, %s5953_s30 }
 0x329   : > { %v3448_v28 = vpop.permute.xlu0 %3447  ;;  %v2434_v14 = vmax.f32 %v2356_v8, 0.0 }
 0x32a   : > { %3538 = vst.msk [vmem:[#allocation5 + $0x30] sm:$0xff] %vm3531_vm2, %v3448_v28  ;;  %v3257_v23 = vpop.permute.xlu1 %3256 }
 0x32b   : > { %2524 = vst.msk [vmem:[#allocation4 + $0x111] sm:$0xff] %vm2446_vm12, %v2435_v37  ;;  %2523 = vst.msk [vmem:[#allocation4 + $0x109] sm:$0xff] %vm2446_vm12, %v2434_v14  ;;  %3079 = vrot.lane.b32.xlu0 %v7415_v54, %s5953_s30 }
 0x32c   : > { %3346 = vst.msk [vmem:[#allocation5 + $0x38] sm:$0xff] %vm3338_vm1, %v3257_v23  ;;  %3846 = vrot.lane.b32.xlu1 %v3770_v2, %s5958_s19 }
 0x32d   : > { %v2682_v0 = vpop.permute.xlu0 %2681 }
 0x32e   : > { %2769 = vst.msk [vmem:[#allocation5 + $0x48] sm:$0xff] %vm2759_vm14, %v2682_v0  ;;  %v4026_v56 = vpop.permute.xlu1 %4025  ;;  %v4148_v59 = vld [vmem:[#allocation5 + $0x20] sm:$0xff] }
 0x32f   : > { %3848 = vrot.lane.b32.xlu0 %v3771_v5, %s5958_s19  ;;  %4117 = vst.msk [vmem:[#allocation5 + $0x28] sm:$0xff] %vm4111_vm5, %v4026_v56  ;;  %5506 = vmatprep.mubr.msk.f32.mxu1 %vm4192_vm6, %v4148_v59  ;;  %v3775_v59 = vld [vmem:[#allocation4 + $0xf9] sm:$0xff] }
 0x330   : > { %3270 = vrot.lane.b32.xlu1 %v3770_v2, %s5955_s17 }
 0x331   : > { %v3450_v20 = vpop.permute.xlu0 %3449 }
 0x332   : > { %3539 = vst.msk [vmem:[#allocation5 + $0x38] sm:$0xff] %vm3531_vm2, %v3450_v20  ;;  %v7540_v54 = vld [vmem:[#allocation4 + $0x108] sm:$0xff]  ;;  %v7542_v55 = vld [vmem:[#allocation4 + $0x110] sm:$0xff]  ;;  %v2873_v45 = vpop.permute.xlu1 %2872 }
 0x333   : > { %2695 = vrot.lane.b32.xlu0 %v3770_v2, %s5949_s26  ;;  %2589 = vst.msk [vmem:[#allocation5 + $0xb0] sm:$0xff] %vm2446_vm12, %v7540_v54  ;;  %2590 = vst.msk [vmem:[#allocation5 + $0xb8] sm:$0xff] %vm2446_vm12, %v7542_v55 }
 0x334   : > { %2961 = vst.msk [vmem:[#allocation5 + $0x40] sm:$0xff] %vm2952_vm15, %v2873_v45  ;;  %4039 = vrot.lane.b32.xlu1 %v3963_v41, %s5959_s29 }
 0x335   : > { %v2875_v32 = vpop.permute.xlu0 %2874 }
 0x336   : > { %2962 = vst.msk [vmem:[#allocation5 + $0x48] sm:$0xff] %vm2952_vm15, %v2875_v32  ;;  %v3642_v33 = vpop.permute.xlu1 %3641  ;;  %v4149_v34 = vld [vmem:[#allocation5 + $0x28] sm:$0xff] }
 0x337   : > { %3463 = vrot.lane.b32.xlu0 %v3963_v41, %s5956_s22  ;;  %3732 = vst.msk [vmem:[#allocation5 + $0x30] sm:$0xff] %vm3725_vm3, %v3642_v33  ;;  %5507 = vmatmul.mubr.msk.f32.gmra.mrb[4].mxu1 %vm4192_vm6, %v4149_v34 }
 0x338   : > { %3272 = vrot.lane.b32.xlu1 %v3771_v5, %s5955_s17 }
 0x339   : > { %v3644_v22 = vpop.permute.xlu0 %3643 }
 0x33a   : > { %3733 = vst.msk [vmem:[#allocation5 + $0x38] sm:$0xff] %vm3725_vm3, %v3644_v22  ;;  %v3066_v13 = vpop.permute.xlu1 %3065 }
 0x33b   : > { %2697 = vrot.lane.b32.xlu0 %v3771_v5, %s5949_s26  ;;  %3154 = vst.msk [vmem:[#allocation5 + $0x40] sm:$0xff] %vm3145_vm0, %v3066_v13  ;;  %v3774_v5 = vld [vmem:[#allocation4 + $0xf1] sm:$0xff] }
 0x33c   : > { %4041 = vrot.lane.b32.xlu1 %v3964_v11, %s5959_s29 }
 0x33d   : > { %v3068_v18 = vpop.permute.xlu0 %3067  ;;  %v5469_v15 = vpop.f32.mrb[22].mxu0 }
 0x33e   : > { %3155 = vst.msk [vmem:[#allocation5 + $0x48] sm:$0xff] %vm3145_vm0, %v3068_v18  ;;  %v2371_v27 = vadd.f32 %v7479_v16, %v5469_v15  ;;  %v2365_v48 = vpop.f32.mrb[23].mxu0  ;;  %v3835_v4 = vpop.permute.xlu1 %3834  ;;  %v3967_v18 = vld [vmem:[#allocation4 + $0xf2] sm:$0xff] }
 0x33f   : > { %3465 = vrot.lane.b32.xlu0 %v3964_v11, %s5956_s22  ;;  %v2366_v58 = vadd.f32 %v7479_v16, %v2365_v48  ;;  %3925 = vst.msk [vmem:[#allocation5 + $0x30] sm:$0xff] %vm3918_vm4, %v3835_v4 }
 0x340   : > { %v2437_v7 = vmax.f32 %v2371_v27, 0.0  ;;  %2888 = vrot.lane.b32.xlu1 %v3963_v41, %s5951_s28 }
 0x341   : > { %v3837_v61 = vpop.permute.xlu0 %3836  ;;  %v2436_v35 = vmax.f32 %v2366_v58, 0.0 }
 0x342   : > { %3926 = vst.msk [vmem:[#allocation5 + $0x38] sm:$0xff] %vm3918_vm4, %v3837_v61  ;;  %v3259_v36 = vpop.permute.xlu1 %3258  ;;  %v3968_v61 = vld [vmem:[#allocation4 + $0xfa] sm:$0xff] }
 0x343   : > { %2526 = vst.msk [vmem:[#allocation4 + $0x129] sm:$0xff] %vm2446_vm12, %v2437_v7  ;;  %2525 = vst.msk [vmem:[#allocation4 + $0x121] sm:$0xff] %vm2446_vm12, %v2436_v35  ;;  %2890 = vrot.lane.b32.xlu0 %v3964_v11, %s5951_s28 }
 0x344   : > { %3347 = vst.msk [vmem:[#allocation5 + $0x40] sm:$0xff] %vm3338_vm1, %v3259_v36  ;;  %3657 = vrot.lane.b32.xlu1 %v7452_v17, %s5957_s9 }
 0x345   : > { %v2684_v40 = vpop.permute.xlu0 %2683 }
 0x346   : > { %2770 = vst.msk [vmem:[#allocation5 + $0x50] sm:$0xff] %vm2759_vm14, %v2684_v40  ;;  %v4028_v43 = vpop.permute.xlu1 %4027 }
 0x347   : > { %3659 = vrot.lane.b32.xlu0 %v7454_v50, %s5957_s9  ;;  %4118 = vst.msk [vmem:[#allocation5 + $0x30] sm:$0xff] %vm4111_vm5, %v4028_v43 }
 0x348   : > { %3081 = vrot.lane.b32.xlu1 %v7452_v17, %s5953_s30  ;;  %v3773_v17 = vld [vmem:[#allocation4 + $0xe1] sm:$0xff] }
 0x349   : > { %v3452_v26 = vpop.permute.xlu0 %3451 }
 0x34a   : > { %3540 = vst.msk [vmem:[#allocation5 + $0x40] sm:$0xff] %vm3531_vm2, %v3452_v26  ;;  %v7580_v38 = vld [vmem:[#allocation4 + $0x120] sm:$0xff]  ;;  %v7582_v19 = vld [vmem:[#allocation4 + $0x128] sm:$0xff]  ;;  %v3261_v52 = vpop.permute.xlu1 %3260 }
 0x34b   : > { %3083 = vrot.lane.b32.xlu0 %v7454_v50, %s5953_s30  ;;  %2591 = vst.msk [vmem:[#allocation5 + $0xc0] sm:$0xff] %vm2446_vm12, %v7580_v38  ;;  %2592 = vst.msk [vmem:[#allocation5 + $0xc8] sm:$0xff] %vm2446_vm12, %v7582_v19 }
 0x34c   : > { %3348 = vst.msk [vmem:[#allocation5 + $0x48] sm:$0xff] %vm3338_vm1, %v3261_v52  ;;  %3850 = vrot.lane.b32.xlu1 %v3772_v60, %s5958_s19 }
 0x34d   : > { %v2686_v39 = vpop.permute.xlu0 %2685 }
 0x34e   : > { %2771 = vst.msk [vmem:[#allocation5 + $0x58] sm:$0xff] %vm2759_vm14, %v2686_v39  ;;  %v4030_v1 = vpop.permute.xlu1 %4029  ;;  %v4150_v50 = vld [vmem:[#allocation5 + $0x30] sm:$0xff] }
 0x34f   : > { %3852 = vrot.lane.b32.xlu0 %v3773_v17, %s5958_s19  ;;  %4119 = vst.msk [vmem:[#allocation5 + $0x38] sm:$0xff] %vm4111_vm5, %v4030_v1  ;;  %5509 = vmatprep.mubr.msk.f32.mxu1 %vm4192_vm6, %v4150_v50 }
 0x350   : > { %3274 = vrot.lane.b32.xlu1 %v3772_v60, %s5955_s17 }
 0x351   : > { %v3454_v49 = vpop.permute.xlu0 %3453 }
 0x352   : > { %3541 = vst.msk [vmem:[#allocation5 + $0x48] sm:$0xff] %vm3531_vm2, %v3454_v49  ;;  %v2877_v42 = vpop.permute.xlu1 %2876 }
 0x353   : > { %2699 = vrot.lane.b32.xlu0 %v3772_v60, %s5949_s26  ;;  %2963 = vst.msk [vmem:[#allocation5 + $0x50] sm:$0xff] %vm2952_vm15, %v2877_v42 }
 0x354   : > { %4043 = vrot.lane.b32.xlu1 %v3965_v6, %s5959_s29 }
 0x355   : > { %v2879_v47 = vpop.permute.xlu0 %2878  ;;  %v5472_v9 = vpop.f32.mrb[24].mxu0 }
 0x356   : > { %2964 = vst.msk [vmem:[#allocation5 + $0x58] sm:$0xff] %vm2952_vm15, %v2879_v47  ;;  %v2381_v46 = vadd.f32 %v7479_v16, %v5472_v9  ;;  %v2375_v31 = vpop.f32.mrb[25].mxu0  ;;  %v3646_v53 = vpop.permute.xlu1 %3645  ;;  %v4151_v62 = vld [vmem:[#allocation5 + $0x38] sm:$0xff]  ;;  %v3777_v9 = vld [vmem:[#allocation4 + $0x111] sm:$0xff] }
 0x357   : > { %3467 = vrot.lane.b32.xlu0 %v3965_v6, %s5956_s22  ;;  %v2376_v10 = vadd.f32 %v7479_v16, %v2375_v31  ;;  %3734 = vst.msk [vmem:[#allocation5 + $0x40] sm:$0xff] %vm3725_vm3, %v3646_v53  ;;  %5510 = vmatmul.mubr.msk.f32.gmra.mrb[6].mxu1 %vm4192_vm6, %v4151_v62 }
 0x358   : > { %v2439_v3 = vmax.f32 %v2381_v46, 0.0  ;;  %3276 = vrot.lane.b32.xlu1 %v3773_v17, %s5955_s17 }
 0x359   : > { %v3648_v44 = vpop.permute.xlu0 %3647  ;;  %v2438_v24 = vmax.f32 %v2376_v10, 0.0 }
 0x35a   : > { %3735 = vst.msk [vmem:[#allocation5 + $0x48] sm:$0xff] %vm3725_vm3, %v3648_v44  ;;  %v3070_v29 = vpop.permute.xlu1 %3069 }
 0x35b   : > { %2528 = vst.msk [vmem:[#allocation4 + $0x141] sm:$0xff] %vm2446_vm12, %v2439_v3  ;;  %2527 = vst.msk [vmem:[#allocation4 + $0x139] sm:$0xff] %vm2446_vm12, %v2438_v24  ;;  %2701 = vrot.lane.b32.xlu0 %v3773_v17, %s5949_s26  ;;  %v3969_v3 = vld [vmem:[#allocation4 + $0x10a] sm:$0xff] }
 0x35c   : > { %3156 = vst.msk [vmem:[#allocation5 + $0x50] sm:$0xff] %vm3145_vm0, %v3070_v29  ;;  %4045 = vrot.lane.b32.xlu1 %v3966_v51, %s5959_s29 }
 0x35d   : > { %v3072_v30 = vpop.permute.xlu0 %3071 }
 0x35e   : > { %3157 = vst.msk [vmem:[#allocation5 + $0x58] sm:$0xff] %vm3145_vm0, %v3072_v30  ;;  %v3839_v25 = vpop.permute.xlu1 %3838 }
 0x35f   : > { %3469 = vrot.lane.b32.xlu0 %v3966_v51, %s5956_s22  ;;  %3927 = vst.msk [vmem:[#allocation5 + $0x40] sm:$0xff] %vm3918_vm4, %v3839_v25 }
 0x360   : > { %2892 = vrot.lane.b32.xlu1 %v3965_v6, %s5951_s28  ;;  %v3776_v6 = vld [vmem:[#allocation4 + $0x109] sm:$0xff] }
 0x361   : > { %v3841_v63 = vpop.permute.xlu0 %3840 }
 0x362   : > { %3928 = vst.msk [vmem:[#allocation5 + $0x48] sm:$0xff] %vm3918_vm4, %v3841_v63  ;;  %v7619_v8 = vld [vmem:[#allocation4 + $0x138] sm:$0xff]  ;;  %v7621_v12 = vld [vmem:[#allocation4 + $0x140] sm:$0xff]  ;;  %v3263_v37 = vpop.permute.xlu1 %3262 }
 0x363   : > { %2894 = vrot.lane.b32.xlu0 %v3966_v51, %s5951_s28  ;;  %2593 = vst.msk [vmem:[#allocation5 + $0xd0] sm:$0xff] %vm2446_vm12, %v7619_v8  ;;  %2594 = vst.msk [vmem:[#allocation5 + $0xd8] sm:$0xff] %vm2446_vm12, %v7621_v12 }
 0x364   : > { %3349 = vst.msk [vmem:[#allocation5 + $0x50] sm:$0xff] %vm3338_vm1, %v3263_v37  ;;  %3661 = vrot.lane.b32.xlu1 %v7499_v21, %s5957_s9 }
 0x365   : > { %v2688_v28 = vpop.permute.xlu0 %2687 }
 0x366   : > { %2772 = vst.msk [vmem:[#allocation5 + $0x60] sm:$0xff] %vm2759_vm14, %v2688_v28  ;;  %v4032_v14 = vpop.permute.xlu1 %4031 }
 0x367   : > { %3663 = vrot.lane.b32.xlu0 %v7501_v57, %s5957_s9  ;;  %4120 = vst.msk [vmem:[#allocation5 + $0x40] sm:$0xff] %vm4111_vm5, %v4032_v14 }
 0x368   : > { %3085 = vrot.lane.b32.xlu1 %v7499_v21, %s5953_s30 }
 0x369   : > { %v3456_v23 = vpop.permute.xlu0 %3455 }
 0x36a   : > { %3542 = vst.msk [vmem:[#allocation5 + $0x50] sm:$0xff] %vm3531_vm2, %v3456_v23  ;;  %v3265_v0 = vpop.permute.xlu1 %3264 }
 0x36b   : > { %3087 = vrot.lane.b32.xlu0 %v7501_v57, %s5953_s30  ;;  %3350 = vst.msk [vmem:[#allocation5 + $0x58] sm:$0xff] %vm3338_vm1, %v3265_v0  ;;  %v3970_v0 = vld [vmem:[#allocation4 + $0x112] sm:$0xff] }
 0x36c   : > { %3854 = vrot.lane.b32.xlu1 %v3774_v5, %s5958_s19 }
 0x36d   : > { %v2690_v2 = vpop.permute.xlu0 %2689  ;;  %v5475_v56 = vpop.f32.mrb[26].mxu0 }
 0x36e   : > { %2773 = vst.msk [vmem:[#allocation5 + $0x68] sm:$0xff] %vm2759_vm14, %v2690_v2  ;;  %v2391_v20 = vadd.f32 %v7479_v16, %v5475_v56  ;;  %v2385_v45 = vpop.f32.mrb[27].mxu0  ;;  %v4034_v32 = vpop.permute.xlu1 %4033  ;;  %v4152_v57 = vld [vmem:[#allocation5 + $0x40] sm:$0xff] }
 0x36f   : > { %3856 = vrot.lane.b32.xlu0 %v3775_v59, %s5958_s19  ;;  %v2386_v21 = vadd.f32 %v7479_v16, %v2385_v45  ;;  %4121 = vst.msk [vmem:[#allocation5 + $0x48] sm:$0xff] %vm4111_vm5, %v4034_v32  ;;  %5512 = vmatprep.mubr.msk.f32.mxu1 %vm4192_vm6, %v4152_v57  ;;  %v3778_v32 = vld [vmem:[#allocation4 + $0x121] sm:$0xff]  ;;  %v3779_v57 = vld [vmem:[#allocation4 + $0x129] sm:$0xff] }
 0x370   : > { %v2441_v41 = vmax.f32 %v2391_v20, 0.0  ;;  %3278 = vrot.lane.b32.xlu1 %v3774_v5, %s5955_s17 }
 0x371   : > { %v3458_v33 = vpop.permute.xlu0 %3457  ;;  %v2440_v34 = vmax.f32 %v2386_v21, 0.0 }
 0x372   : > { %3543 = vst.msk [vmem:[#allocation5 + $0x58] sm:$0xff] %vm3531_vm2, %v3458_v33  ;;  %v2881_v22 = vpop.permute.xlu1 %2880 }
 0x373   : > { %2530 = vst.msk [vmem:[#allocation4 + $0x159] sm:$0xff] %vm2446_vm12, %v2441_v41  ;;  %2529 = vst.msk [vmem:[#allocation4 + $0x151] sm:$0xff] %vm2446_vm12, %v2440_v34  ;;  %2703 = vrot.lane.b32.xlu0 %v3774_v5, %s5949_s26 }
 0x374   : > { %2965 = vst.msk [vmem:[#allocation5 + $0x60] sm:$0xff] %vm2952_vm15, %v2881_v22  ;;  %4047 = vrot.lane.b32.xlu1 %v3967_v18, %s5959_s29  ;;  %v3971_v22 = vld [vmem:[#allocation4 + $0x122] sm:$0xff] }
 0x375   : > { %v2883_v13 = vpop.permute.xlu0 %2882 }
 0x376   : > { %2966 = vst.msk [vmem:[#allocation5 + $0x68] sm:$0xff] %vm2952_vm15, %v2883_v13  ;;  %v3650_v11 = vpop.permute.xlu1 %3649  ;;  %v4153_v15 = vld [vmem:[#allocation5 + $0x48] sm:$0xff] }
 0x377   : > { %3471 = vrot.lane.b32.xlu0 %v3967_v18, %s5956_s22  ;;  %3736 = vst.msk [vmem:[#allocation5 + $0x50] sm:$0xff] %vm3725_vm3, %v3650_v11  ;;  %5513 = vmatmul.mubr.msk.f32.gmra.mrb[8].mxu1 %vm4192_vm6, %v4153_v15 }
 0x378   : > { %3280 = vrot.lane.b32.xlu1 %v3775_v59, %s5955_s17 }
 0x379   : > { %v3652_v27 = vpop.permute.xlu0 %3651 }
 0x37a   : > { %3737 = vst.msk [vmem:[#allocation5 + $0x58] sm:$0xff] %vm3725_vm3, %v3652_v27  ;;  %v7661_v48 = vld [vmem:[#allocation4 + $0x150] sm:$0xff]  ;;  %v7663_v58 = vld [vmem:[#allocation4 + $0x158] sm:$0xff]  ;;  %v3074_v4 = vpop.permute.xlu1 %3073 }
 0x37b   : > { %2705 = vrot.lane.b32.xlu0 %v3775_v59, %s5949_s26  ;;  %2595 = vst.msk [vmem:[#allocation5 + $0xe0] sm:$0xff] %vm2446_vm12, %v7661_v48  ;;  %2596 = vst.msk [vmem:[#allocation5 + $0xe8] sm:$0xff] %vm2446_vm12, %v7663_v58 }
 0x37c   : > { %3158 = vst.msk [vmem:[#allocation5 + $0x60] sm:$0xff] %vm3145_vm0, %v3074_v4  ;;  %4049 = vrot.lane.b32.xlu1 %v3968_v61, %s5959_s29  ;;  %v3972_v4 = vld [vmem:[#allocation4 + $0x12a] sm:$0xff] }
 0x37d   : > { %v3076_v7 = vpop.permute.xlu0 %3075 }
 0x37e   : > { %3159 = vst.msk [vmem:[#allocation5 + $0x68] sm:$0xff] %vm3145_vm0, %v3076_v7  ;;  %v3843_v35 = vpop.permute.xlu1 %3842 }
 0x37f   : > { %3473 = vrot.lane.b32.xlu0 %v3968_v61, %s5956_s22  ;;  %3929 = vst.msk [vmem:[#allocation5 + $0x50] sm:$0xff] %vm3918_vm4, %v3843_v35 }
 0x380   : > { %2896 = vrot.lane.b32.xlu1 %v3967_v18, %s5951_s28 }
 0x381   : > { %v3845_v36 = vpop.permute.xlu0 %3844 }
 0x382   : > { %3930 = vst.msk [vmem:[#allocation5 + $0x58] sm:$0xff] %vm3918_vm4, %v3845_v36  ;;  %v3267_v40 = vpop.permute.xlu1 %3266 }
 0x383   : > { %2898 = vrot.lane.b32.xlu0 %v3968_v61, %s5951_s28  ;;  %3351 = vst.msk [vmem:[#allocation5 + $0x60] sm:$0xff] %vm3338_vm1, %v3267_v40 }
 0x384   : > { %3665 = vrot.lane.b32.xlu1 %v7540_v54, %s5957_s9 }
 0x385   : > { %v2692_v43 = vpop.permute.xlu0 %2691  ;;  %v5478_v26 = vpop.f32.mrb[28].mxu0 }
 0x386   : > { %2774 = vst.msk [vmem:[#allocation5 + $0x70] sm:$0xff] %vm2759_vm14, %v2692_v43  ;;  %v2401_v52 = vadd.f32 %v7479_v16, %v5478_v26  ;;  %v2395_v39 = vpop.f32.mrb[29].mxu0  ;;  %v4036_v17 = vpop.permute.xlu1 %4035 }
 0x387   : > { %3667 = vrot.lane.b32.xlu0 %v7542_v55, %s5957_s9  ;;  %v2396_v60 = vadd.f32 %v7479_v16, %v2395_v39  ;;  %4122 = vst.msk [vmem:[#allocation5 + $0x50] sm:$0xff] %vm4111_vm5, %v4036_v17  ;;  %v3780_v17 = vld [vmem:[#allocation4 + $0x139] sm:$0xff] }
 0x388   : > { %v2443_v1 = vmax.f32 %v2401_v52, 0.0  ;;  %3089 = vrot.lane.b32.xlu1 %v7540_v54, %s5953_s30 }
 0x389   : > { %v3460_v50 = vpop.permute.xlu0 %3459  ;;  %v2442_v49 = vmax.f32 %v2396_v60, 0.0 }
 0x38a   : > { %3544 = vst.msk [vmem:[#allocation5 + $0x60] sm:$0xff] %vm3531_vm2, %v3460_v50  ;;  %v3269_v42 = vpop.permute.xlu1 %3268 }
 0x38b   : > { %2532 = vst.msk [vmem:[#allocation4 + $0x171] sm:$0xff] %vm2446_vm12, %v2443_v1  ;;  %2531 = vst.msk [vmem:[#allocation4 + $0x169] sm:$0xff] %vm2446_vm12, %v2442_v49  ;;  %3091 = vrot.lane.b32.xlu0 %v7542_v55, %s5953_s30  ;;  %v3781_v1 = vld [vmem:[#allocation4 + $0x141] sm:$0xff] }
 0x38c   : > { %3352 = vst.msk [vmem:[#allocation5 + $0x68] sm:$0xff] %vm3338_vm1, %v3269_v42  ;;  %3858 = vrot.lane.b32.xlu1 %v3776_v6, %s5958_s19 }
 0x38d   : > { %v2694_v47 = vpop.permute.xlu0 %2693 }
 0x38e   : > { %2775 = vst.msk [vmem:[#allocation5 + $0x78] sm:$0xff] %vm2759_vm14, %v2694_v47  ;;  %v4038_v46 = vpop.permute.xlu1 %4037  ;;  %v4154_v31 = vld [vmem:[#allocation5 + $0x50] sm:$0xff] }
 0x38f   : > { %3860 = vrot.lane.b32.xlu0 %v3777_v9, %s5958_s19  ;;  %4123 = vst.msk [vmem:[#allocation5 + $0x58] sm:$0xff] %vm4111_vm5, %v4038_v46  ;;  %5515 = vmatprep.mubr.msk.f32.mxu1 %vm4192_vm6, %v4154_v31  ;;  %v3973_v47 = vld [vmem:[#allocation4 + $0x13a] sm:$0xff] }
 0x390   : > { %3282 = vrot.lane.b32.xlu1 %v3776_v6, %s5955_s17 }
 0x391   : > { %v3462_v54 = vpop.permute.xlu0 %3461 }
 0x392   : > { %3545 = vst.msk [vmem:[#allocation5 + $0x68] sm:$0xff] %vm3531_vm2, %v3462_v54  ;;  %v7702_v55 = vld [vmem:[#allocation4 + $0x168] sm:$0xff]  ;;  %v7704_v10 = vld [vmem:[#allocation4 + $0x170] sm:$0xff]  ;;  %v2885_v53 = vpop.permute.xlu1 %2884 }
 0x393   : > { %2707 = vrot.lane.b32.xlu0 %v3776_v6, %s5949_s26  ;;  %2597 = vst.msk [vmem:[#allocation5 + $0xf0] sm:$0xff] %vm2446_vm12, %v7702_v55  ;;  %2598 = vst.msk [vmem:[#allocation5 + $0xf8] sm:$0xff] %vm2446_vm12, %v7704_v10 }
 0x394   : > { %2967 = vst.msk [vmem:[#allocation5 + $0x70] sm:$0xff] %vm2952_vm15, %v2885_v53  ;;  %4051 = vrot.lane.b32.xlu1 %v3969_v3, %s5959_s29  ;;  %v3974_v53 = vld [vmem:[#allocation4 + $0x142] sm:$0xff] }
 0x395   : > { %v2887_v62 = vpop.permute.xlu0 %2886 }
 0x396   : > { %2968 = vst.msk [vmem:[#allocation5 + $0x78] sm:$0xff] %vm2952_vm15, %v2887_v62  ;;  %v3654_v24 = vpop.permute.xlu1 %3653  ;;  %v4155_v29 = vld [vmem:[#allocation5 + $0x58] sm:$0xff] }
 0x397   : > { %3475 = vrot.lane.b32.xlu0 %v3969_v3, %s5956_s22  ;;  %v5481_v44 = vpop.f32.mrb[30].mxu0  ;;  %3738 = vst.msk [vmem:[#allocation5 + $0x60] sm:$0xff] %vm3725_vm3, %v3654_v24  ;;  %5516 = vmatmul.mubr.msk.f32.gmra.mrb[10].mxu1 %vm4192_vm6, %v4155_v29 }
 0x398   : > { %v2411_v30 = vadd.f32 %v7479_v16, %v5481_v44  ;;  %v2405_v51 = vpop.f32.mrb[31].mxu0  ;;  %3284 = vrot.lane.b32.xlu1 %v3777_v9, %s5955_s17 }
 0x399   : > { %v3656_v25 = vpop.permute.xlu0 %3655  ;;  %v2406_v63 = vadd.f32 %v7479_v16, %v2405_v51 }
 0x39a   : > { %3739 = vst.msk [vmem:[#allocation5 + $0x68] sm:$0xff] %vm3725_vm3, %v3656_v25  ;;  %v2445_v37 = vmax.f32 %v2411_v30, 0.0  ;;  %v3078_v14 = vpop.permute.xlu1 %3077 }
 0x39b   : > { %2709 = vrot.lane.b32.xlu0 %v3777_v9, %s5949_s26  ;;  %v2444_v28 = vmax.f32 %v2406_v63, 0.0  ;;  %3160 = vst.msk [vmem:[#allocation5 + $0x70] sm:$0xff] %vm3145_vm0, %v3078_v14  ;;  %v3783_v14 = vld [vmem:[#allocation4 + $0x159] sm:$0xff] }
 0x39c   : > { %2534 = vst.msk [vmem:[#allocation4 + $0x189] sm:$0xff] %vm2446_vm12, %v2445_v37  ;;  %4053 = vrot.lane.b32.xlu1 %v3970_v0, %s5959_s29 }
 0x39d   : > { %v3080_v23 = vpop.permute.xlu0 %3079  ;;  %2533 = vst.msk [vmem:[#allocation4 + $0x181] sm:$0xff] %vm2446_vm12, %v2444_v28  ;;  %v3782_v28 = vld [vmem:[#allocation4 + $0x151] sm:$0xff] }
 0x39e   : > { %3161 = vst.msk [vmem:[#allocation5 + $0x78] sm:$0xff] %vm3145_vm0, %v3080_v23  ;;  %v3847_v16 = vpop.permute.xlu1 %3846 }
 0x39f   : > { %3477 = vrot.lane.b32.xlu0 %v3970_v0, %s5956_s22  ;;  %3931 = vst.msk [vmem:[#allocation5 + $0x60] sm:$0xff] %vm3918_vm4, %v3847_v16 }
 0x3a0   : > { %2900 = vrot.lane.b32.xlu1 %v3969_v3, %s5951_s28 }
 0x3a1   : > { %v3849_v2 = vpop.permute.xlu0 %3848 }
 0x3a2   : > { %3932 = vst.msk [vmem:[#allocation5 + $0x68] sm:$0xff] %vm3918_vm4, %v3849_v2  ;;  %v3271_v5 = vpop.permute.xlu1 %3270  ;;  %v3975_v2 = vld [vmem:[#allocation4 + $0x152] sm:$0xff] }
 0x3a3   : > { %2902 = vrot.lane.b32.xlu0 %v3970_v0, %s5951_s28  ;;  %3353 = vst.msk [vmem:[#allocation5 + $0x70] sm:$0xff] %vm3338_vm1, %v3271_v5 }
 0x3a4   : > { %3669 = vrot.lane.b32.xlu1 %v7580_v38, %s5957_s9 }
 0x3a5   : > { %v2696_v56 = vpop.permute.xlu0 %2695 }
 0x3a6   : > { %2776 = vst.msk [vmem:[#allocation5 + $0x80] sm:$0xff] %vm2759_vm14, %v2696_v56  ;;  %v4040_v59 = vpop.permute.xlu1 %4039 }
 0x3a7   : > { %3671 = vrot.lane.b32.xlu0 %v7582_v19, %s5957_s9  ;;  %4124 = vst.msk [vmem:[#allocation5 + $0x60] sm:$0xff] %vm4111_vm5, %v4040_v59 }
 0x3a8   : > { %3093 = vrot.lane.b32.xlu1 %v7580_v38, %s5953_s30 }
 0x3a9   : > { %v3464_v20 = vpop.permute.xlu0 %3463 }
 0x3aa   : > { %3546 = vst.msk [vmem:[#allocation5 + $0x70] sm:$0xff] %vm3531_vm2, %v3464_v20  ;;  %v3273_v45 = vpop.permute.xlu1 %3272 }
 0x3ab   : > { %3095 = vrot.lane.b32.xlu0 %v7582_v19, %s5953_s30  ;;  %3354 = vst.msk [vmem:[#allocation5 + $0x78] sm:$0xff] %vm3338_vm1, %v3273_v45 }
 0x3ac   : > { %3862 = vrot.lane.b32.xlu1 %v3778_v32, %s5958_s19 }
 0x3ad   : > { %v2698_v21 = vpop.permute.xlu0 %2697 }
 0x3ae   : > { %2777 = vst.msk [vmem:[#allocation5 + $0x88] sm:$0xff] %vm2759_vm14, %v2698_v21  ;;  %v4042_v41 = vpop.permute.xlu1 %4041  ;;  %v4156_v33 = vld [vmem:[#allocation5 + $0x60] sm:$0xff]  ;;  %v3976_v21 = vld [vmem:[#allocation4 + $0x15a] sm:$0xff] }
 0x3af   : > { %3864 = vrot.lane.b32.xlu0 %v3779_v57, %s5958_s19  ;;  %4125 = vst.msk [vmem:[#allocation5 + $0x68] sm:$0xff] %vm4111_vm5, %v4042_v41  ;;  %5518 = vmatprep.mubr.msk.f32.mxu1 %vm4192_vm6, %v4156_v33 }
 0x3b0   : > { %3286 = vrot.lane.b32.xlu1 %v3778_v32, %s5955_s17 }
 0x3b1   : > { %v3466_v38 = vpop.permute.xlu0 %3465 }
 0x3b2   : > { %3547 = vst.msk [vmem:[#allocation5 + $0x78] sm:$0xff] %vm3531_vm2, %v3466_v38  ;;  %v2889_v19 = vpop.permute.xlu1 %2888 }
 0x3b3   : > { %2711 = vrot.lane.b32.xlu0 %v3778_v32, %s5949_s26  ;;  %2969 = vst.msk [vmem:[#allocation5 + $0x80] sm:$0xff] %vm2952_vm15, %v2889_v19 }
 0x3b4   : > { %4055 = vrot.lane.b32.xlu1 %v3971_v22, %s5959_s29 }
 0x3b5   : > { %v2891_v34 = vpop.permute.xlu0 %2890 }
 0x3b6   : > { %2970 = vst.msk [vmem:[#allocation5 + $0x88] sm:$0xff] %vm2952_vm15, %v2891_v34  ;;  %v3658_v13 = vpop.permute.xlu1 %3657  ;;  %v4157_v18 = vld [vmem:[#allocation5 + $0x68] sm:$0xff] }
 0x3b7   : > { %3479 = vrot.lane.b32.xlu0 %v3971_v22, %s5956_s22  ;;  %3740 = vst.msk [vmem:[#allocation5 + $0x70] sm:$0xff] %vm3725_vm3, %v3658_v13  ;;  %5519 = vmatmul.mubr.msk.f32.gmra.mrb[12].mxu1 %vm4192_vm6, %v4157_v18 }
 0x3b8   : > { %3288 = vrot.lane.b32.xlu1 %v3779_v57, %s5955_s17 }
 0x3b9   : > { %v3660_v11 = vpop.permute.xlu0 %3659 }
 0x3ba   : > { %3741 = vst.msk [vmem:[#allocation5 + $0x78] sm:$0xff] %vm3725_vm3, %v3660_v11  ;;  %v3082_v15 = vpop.permute.xlu1 %3081  ;;  %v3784_v11 = vld [vmem:[#allocation4 + $0x169] sm:$0xff] }
 0x3bb   : > { %2713 = vrot.lane.b32.xlu0 %v3779_v57, %s5949_s26  ;;  %3162 = vst.msk [vmem:[#allocation5 + $0x80] sm:$0xff] %vm3145_vm0, %v3082_v15  ;;  %v3785_v15 = vld [vmem:[#allocation4 + $0x171] sm:$0xff] }
 0x3bc   : > { %4057 = vrot.lane.b32.xlu1 %v3972_v4, %s5959_s29 }
 0x3bd   : > { %v3084_v27 = vpop.permute.xlu0 %3083 }
 0x3be   : > { %3163 = vst.msk [vmem:[#allocation5 + $0x88] sm:$0xff] %vm3145_vm0, %v3084_v27  ;;  %v3851_v7 = vpop.permute.xlu1 %3850 }
 0x3bf   : > { %3481 = vrot.lane.b32.xlu0 %v3972_v4, %s5956_s22  ;;  %3933 = vst.msk [vmem:[#allocation5 + $0x70] sm:$0xff] %vm3918_vm4, %v3851_v7 }
 0x3c0   : > { %2904 = vrot.lane.b32.xlu1 %v3971_v22, %s5951_s28 }
 0x3c1   : > { %v3853_v61 = vpop.permute.xlu0 %3852 }
 0x3c2   : > { %3934 = vst.msk [vmem:[#allocation5 + $0x78] sm:$0xff] %vm3918_vm4, %v3853_v61  ;;  %v3275_v35 = vpop.permute.xlu1 %3274  ;;  %v3977_v61 = vld [vmem:[#allocation4 + $0x16a] sm:$0xff] }
 0x3c3   : > { %2906 = vrot.lane.b32.xlu0 %v3972_v4, %s5951_s28  ;;  %3355 = vst.msk [vmem:[#allocation5 + $0x80] sm:$0xff] %vm3338_vm1, %v3275_v35 }
 0x3c4   : > { %3673 = vrot.lane.b32.xlu1 %v7619_v8, %s5957_s9 }
 0x3c5   : > { %v2700_v36 = vpop.permute.xlu0 %2699 }
 0x3c6   : > { %2778 = vst.msk [vmem:[#allocation5 + $0x90] sm:$0xff] %vm2759_vm14, %v2700_v36  ;;  %v4044_v40 = vpop.permute.xlu1 %4043 }
 0x3c7   : > { %3675 = vrot.lane.b32.xlu0 %v7621_v12, %s5957_s9  ;;  %4126 = vst.msk [vmem:[#allocation5 + $0x70] sm:$0xff] %vm4111_vm5, %v4044_v40 }
 0x3c8   : > { %3097 = vrot.lane.b32.xlu1 %v7619_v8, %s5953_s30 }
 0x3c9   : > { %v3468_v43 = vpop.permute.xlu0 %3467 }
 0x3ca   : > { %3548 = vst.msk [vmem:[#allocation5 + $0x80] sm:$0xff] %vm3531_vm2, %v3468_v43  ;;  %v7782_v26 = vpop.f32.mrb[0].mxu1  ;;  %v3277_v52 = vpop.permute.xlu1 %3276 }
 0x3cb   : > { %3099 = vrot.lane.b32.xlu0 %v7621_v12, %s5953_s30  ;;  %3356 = vst.msk [vmem:[#allocation5 + $0x88] sm:$0xff] %vm3338_vm1, %v3277_v52  ;;  %v7785_v60 = vpop.f32.mrb[1].mxu1 }
 0x3cc   : > { %3866 = vrot.lane.b32.xlu1 %v3780_v17, %s5958_s19 }
 0x3cd   : > { %v2702_v39 = vpop.permute.xlu0 %2701 }
 0x3ce   : > { %2779 = vst.msk [vmem:[#allocation5 + $0x98] sm:$0xff] %vm2759_vm14, %v2702_v39  ;;  %v4046_v8 = vpop.permute.xlu1 %4045  ;;  %v4158_v50 = vld [vmem:[#allocation5 + $0x70] sm:$0xff]  ;;  %v3978_v39 = vld [vmem:[#allocation4 + $0x172] sm:$0xff] }
 0x3cf   : > { %3868 = vrot.lane.b32.xlu0 %v3781_v1, %s5958_s19  ;;  %4127 = vst.msk [vmem:[#allocation5 + $0x78] sm:$0xff] %vm4111_vm5, %v4046_v8  ;;  %5521 = vmatprep.mubr.msk.f32.mxu1 %vm4192_vm6, %v4158_v50 }
 0x3d0   : > { %3290 = vrot.lane.b32.xlu1 %v3780_v17, %s5955_s17 }
 0x3d1   : > { %v3470_v12 = vpop.permute.xlu0 %3469 }
 0x3d2   : > { %3549 = vst.msk [vmem:[#allocation5 + $0x88] sm:$0xff] %vm3531_vm2, %v3470_v12  ;;  %v2893_v49 = vpop.permute.xlu1 %2892  ;;  %v3593_v12 = vld [vmem:[#allocation4 + $0x180] sm:$0xff] }
 0x3d3   : > { %2715 = vrot.lane.b32.xlu0 %v3780_v17, %s5949_s26  ;;  %2971 = vst.msk [vmem:[#allocation5 + $0x90] sm:$0xff] %vm2952_vm15, %v2893_v49  ;;  %v3594_v49 = vld [vmem:[#allocation4 + $0x188] sm:$0xff] }
 0x3d4   : > { %4059 = vrot.lane.b32.xlu1 %v3973_v47, %s5959_s29 }
 0x3d5   : > { %v2895_v42 = vpop.permute.xlu0 %2894 }
 0x3d6   : > { %2972 = vst.msk [vmem:[#allocation5 + $0x98] sm:$0xff] %vm2952_vm15, %v2895_v42  ;;  %v3662_v6 = vpop.permute.xlu1 %3661  ;;  %v4159_v9 = vld [vmem:[#allocation5 + $0x78] sm:$0xff] }
 0x3d7   : > { %3483 = vrot.lane.b32.xlu0 %v3973_v47, %s5956_s22  ;;  %3742 = vst.msk [vmem:[#allocation5 + $0x80] sm:$0xff] %vm3725_vm3, %v3662_v6  ;;  %5522 = vmatmul.mubr.msk.f32.gmra.mrb[14].mxu1 %vm4192_vm6, %v4159_v9 }
 0x3d8   : > { %3292 = vrot.lane.b32.xlu1 %v3781_v1, %s5955_s17 }
 0x3d9   : > { %v3664_v46 = vpop.permute.xlu0 %3663 }
 0x3da   : > { %3743 = vst.msk [vmem:[#allocation5 + $0x88] sm:$0xff] %vm3725_vm3, %v3664_v46  ;;  %v3086_v31 = vpop.permute.xlu1 %3085 }
 0x3db   : > { %2717 = vrot.lane.b32.xlu0 %v3781_v1, %s5949_s26  ;;  %3164 = vst.msk [vmem:[#allocation5 + $0x90] sm:$0xff] %vm3145_vm0, %v3086_v31 }
 0x3dc   : > { %4061 = vrot.lane.b32.xlu1 %v3974_v53, %s5959_s29 }
 0x3dd   : > { %v3088_v54 = vpop.permute.xlu0 %3087 }
 0x3de   : > { %3165 = vst.msk [vmem:[#allocation5 + $0x98] sm:$0xff] %vm3145_vm0, %v3088_v54  ;;  %v3855_v62 = vpop.permute.xlu1 %3854  ;;  %v3786_v54 = vld [vmem:[#allocation4 + $0x181] sm:$0xff] }
 0x3df   : > { %3485 = vrot.lane.b32.xlu0 %v3974_v53, %s5956_s22  ;;  %3935 = vst.msk [vmem:[#allocation5 + $0x80] sm:$0xff] %vm3918_vm4, %v3855_v62 }
 0x3e0   : > { %2908 = vrot.lane.b32.xlu1 %v3973_v47, %s5951_s28 }
 0x3e1   : > { %v3857_v3 = vpop.permute.xlu0 %3856 }
 0x3e2   : > { %3936 = vst.msk [vmem:[#allocation5 + $0x88] sm:$0xff] %vm3918_vm4, %v3857_v3  ;;  %v3279_v44 = vpop.permute.xlu1 %3278 }
 0x3e3   : > { %2910 = vrot.lane.b32.xlu0 %v3974_v53, %s5951_s28  ;;  %3357 = vst.msk [vmem:[#allocation5 + $0x90] sm:$0xff] %vm3338_vm1, %v3279_v44  ;;  %v3787_v53 = vld [vmem:[#allocation4 + $0x189] sm:$0xff] }
 0x3e4   : > { %3677 = vrot.lane.b32.xlu1 %v7661_v48, %s5957_s9 }
 0x3e5   : > { %v2704_v24 = vpop.permute.xlu0 %2703 }
 0x3e6   : > { %2780 = vst.msk [vmem:[#allocation5 + $0xa0] sm:$0xff] %vm2759_vm14, %v2704_v24  ;;  %v4048_v29 = vpop.permute.xlu1 %4047 }
 0x3e7   : > { %3679 = vrot.lane.b32.xlu0 %v7663_v58, %s5957_s9  ;;  %4128 = vst.msk [vmem:[#allocation5 + $0x80] sm:$0xff] %vm4111_vm5, %v4048_v29 }
 0x3e8   : > { %3101 = vrot.lane.b32.xlu1 %v7661_v48, %s5953_s30 }
 0x3e9   : > { %v3472_v30 = vpop.permute.xlu0 %3471 }
 0x3ea   : > { %3550 = vst.msk [vmem:[#allocation5 + $0x90] sm:$0xff] %vm3531_vm2, %v3472_v30  ;;  %v3281_v51 = vpop.permute.xlu1 %3280  ;;  %v7824_v25 = vpop.f32.mrb[2].mxu1  ;;  %v3979_v30 = vld [vmem:[#allocation4 + $0x182] sm:$0xff] }
 0x3eb   : > { %3103 = vrot.lane.b32.xlu0 %v7663_v58, %s5953_s30  ;;  %3358 = vst.msk [vmem:[#allocation5 + $0x98] sm:$0xff] %vm3338_vm1, %v3281_v51  ;;  %v7827_v37 = vpop.f32.mrb[3].mxu1  ;;  %v3980_v51 = vld [vmem:[#allocation4 + $0x18a] sm:$0xff] }
 0x3ec   : > { %3870 = vrot.lane.b32.xlu1 %v3782_v28, %s5958_s19 }
 0x3ed   : > { %v2706_v63 = vpop.permute.xlu0 %2705 }
 0x3ee   : > { %2781 = vst.msk [vmem:[#allocation5 + $0xa8] sm:$0xff] %vm2759_vm14, %v2706_v63  ;;  %v4050_v48 = vpop.permute.xlu1 %4049  ;;  %v4160_v23 = vld [vmem:[#allocation5 + $0x80] sm:$0xff] }
 0x3ef   : > { %3872 = vrot.lane.b32.xlu0 %v3783_v14, %s5958_s19  ;;  %4129 = vst.msk [vmem:[#allocation5 + $0x88] sm:$0xff] %vm4111_vm5, %v4050_v48  ;;  %5524 = vmatprep.mubr.msk.f32.mxu1 %vm4192_vm6, %v4160_v23 }
 0x3f0   : > { %3294 = vrot.lane.b32.xlu1 %v3782_v28, %s5955_s17 }
 0x3f1   : > { %v3474_v58 = vpop.permute.xlu0 %3473 }
 0x3f2   : > { %3551 = vst.msk [vmem:[#allocation5 + $0x98] sm:$0xff] %vm3531_vm2, %v3474_v58  ;;  %v2897_v0 = vpop.permute.xlu1 %2896  ;;  %v3788_v58 = vld [vmem:[#allocation4 + $0x199] sm:$0xff] }
 0x3f3   : > { %2719 = vrot.lane.b32.xlu0 %v3782_v28, %s5949_s26  ;;  %2973 = vst.msk [vmem:[#allocation5 + $0xa0] sm:$0xff] %vm2952_vm15, %v2897_v0 }
 0x3f4   : > { %4063 = vrot.lane.b32.xlu1 %v3975_v2, %s5959_s29 }
 0x3f5   : > { %v2899_v16 = vpop.permute.xlu0 %2898 }
 0x3f6   : > { %2974 = vst.msk [vmem:[#allocation5 + $0xa8] sm:$0xff] %vm2952_vm15, %v2899_v16  ;;  %v3666_v5 = vpop.permute.xlu1 %3665  ;;  %v4161_v56 = vld [vmem:[#allocation5 + $0x88] sm:$0xff]  ;;  %v3596_v16 = vld [vmem:[#allocation4 + $0x1a0] sm:$0xff] }
 0x3f7   : > { %3487 = vrot.lane.b32.xlu0 %v3975_v2, %s5956_s22  ;;  %3744 = vst.msk [vmem:[#allocation5 + $0x90] sm:$0xff] %vm3725_vm3, %v3666_v5  ;;  %5525 = vmatmul.mubr.msk.f32.gmra.mrb[16].mxu1 %vm4192_vm6, %v4161_v56  ;;  %v3981_v5 = vld [vmem:[#allocation4 + $0x19a] sm:$0xff] }
 0x3f8   : > { %3296 = vrot.lane.b32.xlu1 %v3783_v14, %s5955_s17 }
 0x3f9   : > { %v3668_v59 = vpop.permute.xlu0 %3667 }
 0x3fa   : > { %3745 = vst.msk [vmem:[#allocation5 + $0x98] sm:$0xff] %vm3725_vm3, %v3668_v59  ;;  %v3090_v20 = vpop.permute.xlu1 %3089  ;;  %v3789_v59 = vld [vmem:[#allocation4 + $0x1a1] sm:$0xff] }
 0x3fb   : > { %2721 = vrot.lane.b32.xlu0 %v3783_v14, %s5949_s26  ;;  %3166 = vst.msk [vmem:[#allocation5 + $0xa0] sm:$0xff] %vm3145_vm0, %v3090_v20  ;;  %v3595_v14 = vld [vmem:[#allocation4 + $0x198] sm:$0xff] }
 0x3fc   : > { %4065 = vrot.lane.b32.xlu1 %v3976_v21, %s5959_s29 }
 0x3fd   : > { %v3092_v45 = vpop.permute.xlu0 %3091 }
 0x3fe   : > { %3167 = vst.msk [vmem:[#allocation5 + $0xa8] sm:$0xff] %vm3145_vm0, %v3092_v45  ;;  %v3859_v32 = vpop.permute.xlu1 %3858 }
 0x3ff   : > { %3489 = vrot.lane.b32.xlu0 %v3976_v21, %s5956_s22  ;;  %3937 = vst.msk [vmem:[#allocation5 + $0x90] sm:$0xff] %vm3918_vm4, %v3859_v32 }
 0x400   : > { %2912 = vrot.lane.b32.xlu1 %v3975_v2, %s5951_s28 }
 0x401   : > { %v3861_v57 = vpop.permute.xlu0 %3860 }
 0x402   : > { %3938 = vst.msk [vmem:[#allocation5 + $0x98] sm:$0xff] %vm3918_vm4, %v3861_v57  ;;  %v3283_v41 = vpop.permute.xlu1 %3282 }
 0x403   : > { %2914 = vrot.lane.b32.xlu0 %v3976_v21, %s5951_s28  ;;  %3359 = vst.msk [vmem:[#allocation5 + $0xa0] sm:$0xff] %vm3338_vm1, %v3283_v41  ;;  %v3982_v21 = vld [vmem:[#allocation4 + $0x1a2] sm:$0xff] }
 0x404   : > { %3681 = vrot.lane.b32.xlu1 %v7702_v55, %s5957_s9 }
 0x405   : > { %v2708_v33 = vpop.permute.xlu0 %2707 }
 0x406   : > { %2782 = vst.msk [vmem:[#allocation5 + $0xb0] sm:$0xff] %vm2759_vm14, %v2708_v33  ;;  %v4052_v38 = vpop.permute.xlu1 %4051 }
 0x407   : > { %3683 = vrot.lane.b32.xlu0 %v7704_v10, %s5957_s9  ;;  %4130 = vst.msk [vmem:[#allocation5 + $0x90] sm:$0xff] %vm4111_vm5, %v4052_v38 }
 0x408   : > { %3105 = vrot.lane.b32.xlu1 %v7702_v55, %s5953_s30 }
 0x409   : > { %v3476_v19 = vpop.permute.xlu0 %3475 }
 0x40a   : > { %3552 = vst.msk [vmem:[#allocation5 + $0xa0] sm:$0xff] %vm3531_vm2, %v3476_v19  ;;  %v3285_v34 = vpop.permute.xlu1 %3284  ;;  %v7866_v22 = vpop.f32.mrb[4].mxu1 }
 0x40b   : > { %3107 = vrot.lane.b32.xlu0 %v7704_v10, %s5953_s30  ;;  %3360 = vst.msk [vmem:[#allocation5 + $0xa8] sm:$0xff] %vm3338_vm1, %v3285_v34  ;;  %v7869_v18 = vpop.f32.mrb[5].mxu1 }
 0x40c   : > { %3874 = vrot.lane.b32.xlu1 %v3784_v11, %s5958_s19 }
 0x40d   : > { %v2710_v13 = vpop.permute.xlu0 %2709 }
 0x40e   : > { %2783 = vst.msk [vmem:[#allocation5 + $0xb8] sm:$0xff] %vm2759_vm14, %v2710_v13  ;;  %v4054_v55 = vpop.permute.xlu1 %4053  ;;  %v4162_v27 = vld [vmem:[#allocation5 + $0x90] sm:$0xff] }
 0x40f   : > { %3876 = vrot.lane.b32.xlu0 %v3785_v15, %s5958_s19  ;;  %4131 = vst.msk [vmem:[#allocation5 + $0x98] sm:$0xff] %vm4111_vm5, %v4054_v55  ;;  %5527 = vmatprep.mubr.msk.f32.mxu1 %vm4192_vm6, %v4162_v27 }
 0x410   : > { %3298 = vrot.lane.b32.xlu1 %v3784_v11, %s5955_s17 }
 0x411   : > { %v3478_v10 = vpop.permute.xlu0 %3477 }
 0x412   : > { %3553 = vst.msk [vmem:[#allocation5 + $0xa8] sm:$0xff] %vm3531_vm2, %v3478_v10  ;;  %v2901_v4 = vpop.permute.xlu1 %2900 }
 0x413   : > { %2723 = vrot.lane.b32.xlu0 %v3784_v11, %s5949_s26  ;;  %2975 = vst.msk [vmem:[#allocation5 + $0xb0] sm:$0xff] %vm2952_vm15, %v2901_v4 }
 0x414   : > { %4067 = vrot.lane.b32.xlu1 %v3977_v61, %s5959_s29 }
 0x415   : > { %v2903_v7 = vpop.permute.xlu0 %2902 }
 0x416   : > { %2976 = vst.msk [vmem:[#allocation5 + $0xb8] sm:$0xff] %vm2952_vm15, %v2903_v7  ;;  %v3670_v35 = vpop.permute.xlu1 %3669  ;;  %v4163_v36 = vld [vmem:[#allocation5 + $0x98] sm:$0xff] }
 0x417   : > { %3491 = vrot.lane.b32.xlu0 %v3977_v61, %s5956_s22  ;;  %3746 = vst.msk [vmem:[#allocation5 + $0xa0] sm:$0xff] %vm3725_vm3, %v3670_v35  ;;  %5528 = vmatmul.mubr.msk.f32.gmra.mrb[18].mxu1 %vm4192_vm6, %v4163_v36 }
 0x418   : > { %3300 = vrot.lane.b32.xlu1 %v3785_v15, %s5955_s17 }
 0x419   : > { %v3672_v40 = vpop.permute.xlu0 %3671 }
 0x41a   : > { %3747 = vst.msk [vmem:[#allocation5 + $0xa8] sm:$0xff] %vm3725_vm3, %v3672_v40  ;;  %v3094_v43 = vpop.permute.xlu1 %3093 }
 0x41b   : > { %2725 = vrot.lane.b32.xlu0 %v3785_v15, %s5949_s26  ;;  %3168 = vst.msk [vmem:[#allocation5 + $0xb0] sm:$0xff] %vm3145_vm0, %v3094_v43 }
 0x41c   : > { %4069 = vrot.lane.b32.xlu1 %v3978_v39, %s5959_s29 }
 0x41d   : > { %v3096_v52 = vpop.permute.xlu0 %3095 }
 0x41e   : > { %3169 = vst.msk [vmem:[#allocation5 + $0xb8] sm:$0xff] %vm3145_vm0, %v3096_v52  ;;  %v3863_v17 = vpop.permute.xlu1 %3862 }
 0x41f   : > { %3493 = vrot.lane.b32.xlu0 %v3978_v39, %s5956_s22  ;;  %3939 = vst.msk [vmem:[#allocation5 + $0xa0] sm:$0xff] %vm3918_vm4, %v3863_v17 }
 0x420   : > { %2916 = vrot.lane.b32.xlu1 %v3977_v61, %s5951_s28 }
 0x421   : > { %v3865_v1 = vpop.permute.xlu0 %3864 }
 0x422   : > { %3940 = vst.msk [vmem:[#allocation5 + $0xa8] sm:$0xff] %vm3918_vm4, %v3865_v1  ;;  %v3287_v8 = vpop.permute.xlu1 %3286 }
 0x423   : > { %2918 = vrot.lane.b32.xlu0 %v3978_v39, %s5951_s28  ;;  %3361 = vst.msk [vmem:[#allocation5 + $0xb0] sm:$0xff] %vm3338_vm1, %v3287_v8 }
 0x424   : > { %3685 = vrot.lane.b32.xlu1 %v3593_v12, %s5957_s9 }
 0x425   : > { %v2712_v50 = vpop.permute.xlu0 %2711 }
 0x426   : > { %2784 = vst.msk [vmem:[#allocation5 + $0xc0] sm:$0xff] %vm2759_vm14, %v2712_v50  ;;  %v4056_v42 = vpop.permute.xlu1 %4055 }
 0x427   : > { %3687 = vrot.lane.b32.xlu0 %v3594_v49, %s5957_s9  ;;  %4132 = vst.msk [vmem:[#allocation5 + $0xa0] sm:$0xff] %vm4111_vm5, %v4056_v42 }
 0x428   : > { %3109 = vrot.lane.b32.xlu1 %v3593_v12, %s5953_s30 }
 0x429   : > { %v3480_v47 = vpop.permute.xlu0 %3479 }
 0x42a   : > { %3554 = vst.msk [vmem:[#allocation5 + $0xb0] sm:$0xff] %vm3531_vm2, %v3480_v47  ;;  %v3289_v6 = vpop.permute.xlu1 %3288  ;;  %v7904_v9 = vpop.f32.mrb[6].mxu1 }
 0x42b   : > { %3111 = vrot.lane.b32.xlu0 %v3594_v49, %s5953_s30  ;;  %3362 = vst.msk [vmem:[#allocation5 + $0xb8] sm:$0xff] %vm3338_vm1, %v3289_v6  ;;  %v7907_v31 = vpop.f32.mrb[7].mxu1  ;;  %s5344_s30 = sshll.u32 %s8129_s25, 5 }
 0x42c   : > { %3878 = vrot.lane.b32.xlu1 %v3786_v54, %s5958_s19 }
 0x42d   : > { %v2714_v46 = vpop.permute.xlu0 %2713 }
 0x42e   : > { %2785 = vst.msk [vmem:[#allocation5 + $0xc8] sm:$0xff] %vm2759_vm14, %v2714_v46  ;;  %v4058_v62 = vpop.permute.xlu1 %4057  ;;  %v4164_v3 = vld [vmem:[#allocation5 + $0xa0] sm:$0xff] }
 0x42f   : > { %3880 = vrot.lane.b32.xlu0 %v3787_v53, %s5958_s19  ;;  %4133 = vst.msk [vmem:[#allocation5 + $0xa8] sm:$0xff] %vm4111_vm5, %v4058_v62  ;;  %5530 = vmatprep.mubr.msk.f32.mxu1 %vm4192_vm6, %v4164_v3 }
 0x430   : > { %3302 = vrot.lane.b32.xlu1 %v3786_v54, %s5955_s17 }
 0x431   : > { %v3482_v44 = vpop.permute.xlu0 %3481 }
 0x432   : > { %3555 = vst.msk [vmem:[#allocation5 + $0xb8] sm:$0xff] %vm3531_vm2, %v3482_v44  ;;  %v2905_v24 = vpop.permute.xlu1 %2904 }
 0x433   : > { %3304 = vrot.lane.b32.xlu0 %v3787_v53, %s5955_s17  ;;  %2977 = vst.msk [vmem:[#allocation5 + $0xc0] sm:$0xff] %vm2952_vm15, %v2905_v24 }
 0x434   : > { %4071 = vrot.lane.b32.xlu1 %v3979_v30, %s5959_s29 }
 0x435   : > { %v2907_v29 = vpop.permute.xlu0 %2906 }
 0x436   : > { %2978 = vst.msk [vmem:[#allocation5 + $0xc8] sm:$0xff] %vm2952_vm15, %v2907_v29  ;;  %v3674_v63 = vpop.permute.xlu1 %3673  ;;  %v4165_v28 = vld [vmem:[#allocation5 + $0xa8] sm:$0xff] }
 0x437   : > { %4073 = vrot.lane.b32.xlu0 %v3980_v51, %s5959_s29  ;;  %3748 = vst.msk [vmem:[#allocation5 + $0xb0] sm:$0xff] %vm3725_vm3, %v3674_v63  ;;  %5531 = vmatmul.mubr.msk.f32.gmra.mrb[20].mxu1 %vm4192_vm6, %v4165_v28 }
 0x438   : > { %3495 = vrot.lane.b32.xlu1 %v3979_v30, %s5956_s22 }
 0x439   : > { %v3676_v48 = vpop.permute.xlu0 %3675 }
 0x43a   : > { %3749 = vst.msk [vmem:[#allocation5 + $0xb8] sm:$0xff] %vm3725_vm3, %v3676_v48  ;;  %v3098_v23 = vpop.permute.xlu1 %3097 }
 0x43b   : > { %3689 = vrot.lane.b32.xlu0 %v3595_v14, %s5957_s9  ;;  %3170 = vst.msk [vmem:[#allocation5 + $0xc0] sm:$0xff] %vm3145_vm0, %v3098_v23 }
 0x43c   : > { %3497 = vrot.lane.b32.xlu1 %v3980_v51, %s5956_s22 }
 0x43d   : > { %v3100_v0 = vpop.permute.xlu0 %3099 }
 0x43e   : > { %3171 = vst.msk [vmem:[#allocation5 + $0xc8] sm:$0xff] %vm3145_vm0, %v3100_v0  ;;  %v3867_v2 = vpop.permute.xlu1 %3866 }
 0x43f   : > { %3882 = vrot.lane.b32.xlu0 %v3788_v58, %s5958_s19  ;;  %3941 = vst.msk [vmem:[#allocation5 + $0xb0] sm:$0xff] %vm3918_vm4, %v3867_v2 }
 0x440   : > { %3691 = vrot.lane.b32.xlu1 %v3596_v16, %s5957_s9  ;;  %s308_s9 = scalar_lea.vmem %s8111_s1, %s5344_s30 }
 0x441   : > { %v3869_v56 = vpop.permute.xlu0 %3868 }
 0x442   : > { %3942 = vst.msk [vmem:[#allocation5 + $0xb8] sm:$0xff] %vm3918_vm4, %v3869_v56  ;;  %v3291_v20 = vpop.permute.xlu1 %3290 }
 0x443   : > { %4075 = vrot.lane.b32.xlu0 %v3981_v5, %s5959_s29  ;;  %3363 = vst.msk [vmem:[#allocation5 + $0xc0] sm:$0xff] %vm3338_vm1, %v3291_v20 }
 0x444   : > { %3884 = vrot.lane.b32.xlu1 %v3789_v59, %s5958_s19 }
 0x445   : > { %v2716_v45 = vpop.permute.xlu0 %2715 }
 0x446   : > { %2786 = vst.msk [vmem:[#allocation5 + $0xd0] sm:$0xff] %vm2759_vm14, %v2716_v45  ;;  %v4060_v32 = vpop.permute.xlu1 %4059 }
 0x447   : > { %4134 = vst.msk [vmem:[#allocation5 + $0xb0] sm:$0xff] %vm4111_vm5, %v4060_v32 }
 0x448   : > { %4077 = vrot.lane.b32.xlu1 %v3982_v21, %s5959_s29 }
 0x449   : > { %v3484_v57 = vpop.permute.xlu0 %3483 }
 0x44a   : > { %3556 = vst.msk [vmem:[#allocation5 + $0xc0] sm:$0xff] %vm3531_vm2, %v3484_v57  ;;  %v3293_v41 = vpop.permute.xlu1 %3292  ;;  %v7940_v33 = vpop.f32.mrb[8].mxu1 }
 0x44b   : > { %3364 = vst.msk [vmem:[#allocation5 + $0xc8] sm:$0xff] %vm3338_vm1, %v3293_v41  ;;  %v7943_v19 = vpop.f32.mrb[9].mxu1 }
 0x44d   : > { %v2718_v38 = vpop.permute.xlu0 %2717 }
 0x44e   : > { %2787 = vst.msk [vmem:[#allocation5 + $0xd8] sm:$0xff] %vm2759_vm14, %v2718_v38  ;;  %v4062_v34 = vpop.permute.xlu1 %4061  ;;  %v4166_v13 = vld [vmem:[#allocation5 + $0xb0] sm:$0xff] }
 0x44f   : > { %4135 = vst.msk [vmem:[#allocation5 + $0xb8] sm:$0xff] %vm4111_vm5, %v4062_v34  ;;  %5533 = vmatprep.mubr.msk.f32.mxu1 %vm4192_vm6, %v4166_v13 }
 0x451   : > { %v3486_v11 = vpop.permute.xlu0 %3485 }
 0x452   : > { %3557 = vst.msk [vmem:[#allocation5 + $0xc8] sm:$0xff] %vm3531_vm2, %v3486_v11  ;;  %v2909_v15 = vpop.permute.xlu1 %2908 }
 0x453   : > { %2979 = vst.msk [vmem:[#allocation5 + $0xd0] sm:$0xff] %vm2952_vm15, %v2909_v15 }
 0x455   : > { %v2911_v55 = vpop.permute.xlu0 %2910 }
 0x456   : > { %2980 = vst.msk [vmem:[#allocation5 + $0xd8] sm:$0xff] %vm2952_vm15, %v2911_v55  ;;  %v3678_v27 = vpop.permute.xlu1 %3677  ;;  %v4167_v10 = vld [vmem:[#allocation5 + $0xb8] sm:$0xff] }
 0x457   : > { %3750 = vst.msk [vmem:[#allocation5 + $0xc0] sm:$0xff] %vm3725_vm3, %v3678_v27  ;;  %5534 = vmatmul.mubr.msk.f32.gmra.mrb[22].mxu1 %vm4192_vm6, %v4167_v10 }
 0x459   : > { %v3680_v4 = vpop.permute.xlu0 %3679 }
 0x45a   : > { %3751 = vst.msk [vmem:[#allocation5 + $0xc8] sm:$0xff] %vm3725_vm3, %v3680_v4  ;;  %v3102_v7 = vpop.permute.xlu1 %3101 }
 0x45b   : > { %3172 = vst.msk [vmem:[#allocation5 + $0xd0] sm:$0xff] %vm3145_vm0, %v3102_v7 }
 0x45d   : > { %v3104_v61 = vpop.permute.xlu0 %3103 }
 0x45e   : > { %3173 = vst.msk [vmem:[#allocation5 + $0xd8] sm:$0xff] %vm3145_vm0, %v3104_v61  ;;  %v3871_v35 = vpop.permute.xlu1 %3870 }
 0x45f   : > { %3943 = vst.msk [vmem:[#allocation5 + $0xc0] sm:$0xff] %vm3918_vm4, %v3871_v35 }
 0x461   : > { %v3873_v36 = vpop.permute.xlu0 %3872 }
 0x462   : > { %3944 = vst.msk [vmem:[#allocation5 + $0xc8] sm:$0xff] %vm3918_vm4, %v3873_v36  ;;  %v3295_v40 = vpop.permute.xlu1 %3294 }
 0x463   : > { %3365 = vst.msk [vmem:[#allocation5 + $0xd0] sm:$0xff] %vm3338_vm1, %v3295_v40 }
 0x465   : > { %v2720_v43 = vpop.permute.xlu0 %2719 }
 0x466   : > { %2788 = vst.msk [vmem:[#allocation5 + $0xe0] sm:$0xff] %vm2759_vm14, %v2720_v43  ;;  %v4064_v52 = vpop.permute.xlu1 %4063 }
 0x467   : > { %4136 = vst.msk [vmem:[#allocation5 + $0xc0] sm:$0xff] %vm4111_vm5, %v4064_v52 }
 0x469   : > { %v3488_v39 = vpop.permute.xlu0 %3487 }
 0x46a   : > { %3558 = vst.msk [vmem:[#allocation5 + $0xd0] sm:$0xff] %vm3531_vm2, %v3488_v39  ;;  %v3297_v17 = vpop.permute.xlu1 %3296  ;;  %v7962_v1 = vpop.f32.mrb[10].mxu1 }
 0x46b   : > { %3366 = vst.msk [vmem:[#allocation5 + $0xd8] sm:$0xff] %vm3338_vm1, %v3297_v17  ;;  %v7965_v50 = vpop.f32.mrb[11].mxu1  ;;  %v8025_v17 = vld [vmem:[%s8115_s5] ss:$0 sm:$0xff] }
 0x46d   : > { %v2722_v8 = vpop.permute.xlu0 %2721 }
 0x46e   : > { %2789 = vst.msk [vmem:[#allocation5 + $0xe8] sm:$0xff] %vm2759_vm14, %v2722_v8  ;;  %v4066_v12 = vpop.permute.xlu1 %4065  ;;  %v4168_v49 = vld [vmem:[#allocation5 + $0xc0] sm:$0xff]  ;;  %v4361_v8 = vadd.f32 %v7782_v26, %v8025_v17  ;;  %v4371_v26 = vadd.f32 %v7824_v25, %v8025_v17  ;;  %v4381_v25 = vadd.f32 %v7866_v22, %v8025_v17  ;;  %v4613_v22 = vld [vmem:[#allocation6 + $0x18] sm:$0xff] }
 0x46f   : > { %4137 = vst.msk [vmem:[#allocation5 + $0xc8] sm:$0xff] %vm4111_vm5, %v4066_v12  ;;  %5536 = vmatprep.mubr.msk.f32.mxu1 %vm4192_vm6, %v4168_v49  ;;  %v4356_v12 = vadd.f32 %v8025_v17, %v7785_v60  ;;  %v4366_v60 = vadd.f32 %v8025_v17, %v7827_v37  ;;  %v4376_v37 = vadd.f32 %v8025_v17, %v7869_v18  ;;  %v4610_v18 = vld [vmem:[#allocation6] sm:$0xff] }
 0x471   : > { %v3490_v42 = vpop.permute.xlu0 %3489 }
 0x472   : > { %3559 = vst.msk [vmem:[#allocation5 + $0xd8] sm:$0xff] %vm3531_vm2, %v3490_v42  ;;  %v2913_v47 = vpop.permute.xlu1 %2912 }
 0x473   : > { %2981 = vst.msk [vmem:[#allocation5 + $0xe0] sm:$0xff] %vm2952_vm15, %v2913_v47 }
 0x475   : > { %v2915_v6 = vpop.permute.xlu0 %2914 }
 0x476   : > { %2982 = vst.msk [vmem:[#allocation5 + $0xe8] sm:$0xff] %vm2952_vm15, %v2915_v6  ;;  %v3682_v46 = vpop.permute.xlu1 %3681  ;;  %v4169_v54 = vld [vmem:[#allocation5 + $0xc8] sm:$0xff] }
 0x477   : > { %3752 = vst.msk [vmem:[#allocation5 + $0xd0] sm:$0xff] %vm3725_vm3, %v3682_v46  ;;  %5537 = vmatmul.mubr.msk.f32.gmra.mrb[24].mxu1 %vm4192_vm6, %v4169_v54  ;;  %v4515_v46 = vmax.f32 %v4361_v8, 0.0 }
 0x479   : > { %v3684_v53 = vpop.permute.xlu0 %3683 }
 0x47a   : > { %3753 = vst.msk [vmem:[#allocation5 + $0xd8] sm:$0xff] %vm3725_vm3, %v3684_v53  ;;  %v3106_v62 = vpop.permute.xlu1 %3105  ;;  %v4514_v53 = vmax.f32 %v4356_v12, 0.0  ;;  %v4626_v12 = vld [vmem:[#allocation6 + $0x80] sm:$0xff] }
 0x47b   : > { %3174 = vst.msk [vmem:[#allocation5 + $0xe0] sm:$0xff] %vm3145_vm0, %v3106_v62 }
 0x47d   : > { %v3108_v3 = vpop.permute.xlu0 %3107 }
 0x47e   : > { %3175 = vst.msk [vmem:[#allocation5 + $0xe8] sm:$0xff] %vm3145_vm0, %v3108_v3  ;;  %v3875_v44 = vpop.permute.xlu1 %3874 }
 0x47f   : > { %3945 = vst.msk [vmem:[#allocation5 + $0xd0] sm:$0xff] %vm3918_vm4, %v3875_v44 }
 0x481   : > { %v3877_v24 = vpop.permute.xlu0 %3876 }
 0x482   : > { %3946 = vst.msk [vmem:[#allocation5 + $0xd8] sm:$0xff] %vm3918_vm4, %v3877_v24  ;;  %v3299_v29 = vpop.permute.xlu1 %3298 }
 0x483   : > { %3367 = vst.msk [vmem:[#allocation5 + $0xe0] sm:$0xff] %vm3338_vm1, %v3299_v29 }
 0x485   : > { %v2724_v30 = vpop.permute.xlu0 %2723 }
 0x486   : > { %2790 = vst.msk [vmem:[#allocation5 + $0xf0] sm:$0xff] %vm2759_vm14, %v2724_v30  ;;  %v4068_v51 = vpop.permute.xlu1 %4067 }
 0x487   : > { %4138 = vst.msk [vmem:[#allocation5 + $0xd0] sm:$0xff] %vm4111_vm5, %v4068_v51 }
 0x489   : > { %v3492_v63 = vpop.permute.xlu0 %3491 }
 0x48a   : > { %3560 = vst.msk [vmem:[#allocation5 + $0xe0] sm:$0xff] %vm3531_vm2, %v3492_v63  ;;  %v3301_v28 = vpop.permute.xlu1 %3300  ;;  %v7984_v14 = vpop.f32.mrb[12].mxu1  ;;  %v4517_v63 = vmax.f32 %v4371_v26, 0.0  ;;  %v4642_v26 = vld [vmem:[#allocation6 + $0x100] sm:$0xff] }
 0x48b   : > { %3368 = vst.msk [vmem:[#allocation5 + $0xe8] sm:$0xff] %vm3338_vm1, %v3301_v28  ;;  %v7987_v23 = vpop.f32.mrb[13].mxu1 }
 0x48d   : > { %v2726_v48 = vpop.permute.xlu0 %2725 }
 0x48e   : > { %2791 = vst.msk [vmem:[#allocation5 + $0xf8] sm:$0xff] %vm2759_vm14, %v2726_v48  ;;  %v4070_v58 = vpop.permute.xlu1 %4069  ;;  %v4170_v0 = vld [vmem:[#allocation5 + $0xd0] sm:$0xff]  ;;  %v4516_v48 = vmax.f32 %v4366_v60, 0.0  ;;  %v4391_v60 = vadd.f32 %v7904_v9, %v8025_v17 }
 0x48f   : > { %4139 = vst.msk [vmem:[#allocation5 + $0xd8] sm:$0xff] %vm4111_vm5, %v4070_v58  ;;  %5539 = vmatprep.mubr.msk.f32.mxu1 %vm4192_vm6, %v4170_v0 }
 0x491   : > { %v3494_v16 = vpop.permute.xlu0 %3493 }
 0x492   : > { %3561 = vst.msk [vmem:[#allocation5 + $0xe8] sm:$0xff] %vm3531_vm2, %v3494_v16  ;;  %v2917_v2 = vpop.permute.xlu1 %2916 }
 0x493   : > { %2983 = vst.msk [vmem:[#allocation5 + $0xf0] sm:$0xff] %vm2952_vm15, %v2917_v2 }
 0x495   : > { %v2919_v5 = vpop.permute.xlu0 %2918 }
 0x496   : > { %2984 = vst.msk [vmem:[#allocation5 + $0xf8] sm:$0xff] %vm2952_vm15, %v2919_v5  ;;  %v3686_v56 = vpop.permute.xlu1 %3685  ;;  %v4171_v59 = vld [vmem:[#allocation5 + $0xd8] sm:$0xff] }
 0x497   : > { %3754 = vst.msk [vmem:[#allocation5 + $0xe0] sm:$0xff] %vm3725_vm3, %v3686_v56  ;;  %5540 = vmatmul.mubr.msk.f32.gmra.mrb[26].mxu1 %vm4192_vm6, %v4171_v59 }
 0x499   : > { %v3688_v20 = vpop.permute.xlu0 %3687 }
 0x49a   : > { %3755 = vst.msk [vmem:[#allocation5 + $0xe8] sm:$0xff] %vm3725_vm3, %v3688_v20  ;;  %v3110_v45 = vpop.permute.xlu1 %3109  ;;  %v4519_v20 = vmax.f32 %v4381_v25, 0.0 }
 0x49b   : > { %3176 = vst.msk [vmem:[#allocation5 + $0xf0] sm:$0xff] %vm3145_vm0, %v3110_v45 }
 0x49d   : > { %v3112_v21 = vpop.permute.xlu0 %3111 }
 0x49e   : > { %3177 = vst.msk [vmem:[#allocation5 + $0xf8] sm:$0xff] %vm3145_vm0, %v3112_v21  ;;  %v3879_v32 = vpop.permute.xlu1 %3878  ;;  %v4518_v21 = vmax.f32 %v4376_v37, 0.0 }
 0x49f   : > { %3947 = vst.msk [vmem:[#allocation5 + $0xe0] sm:$0xff] %vm3918_vm4, %v3879_v32 }
 0x4a1   : > { %v3881_v57 = vpop.permute.xlu0 %3880 }
 0x4a2   : > { %3948 = vst.msk [vmem:[#allocation5 + $0xe8] sm:$0xff] %vm3918_vm4, %v3881_v57  ;;  %v3303_v41 = vpop.permute.xlu1 %3302 }
 0x4a3   : > { %3369 = vst.msk [vmem:[#allocation5 + $0xf0] sm:$0xff] %vm3338_vm1, %v3303_v41 }
 0x4a5   : > { %v3305_v38 = vpop.permute.xlu0 %3304 }
 0x4a6   : > { %3370 = vst.msk [vmem:[#allocation5 + $0xf8] sm:$0xff] %vm3338_vm1, %v3305_v38  ;;  %v4072_v34 = vpop.permute.xlu1 %4071  ;;  %v4611_v38 = vld [vmem:[#allocation6 + $0x8] sm:$0xff] }
 0x4a7   : > { %4140 = vst.msk [vmem:[#allocation5 + $0xe0] sm:$0xff] %vm4111_vm5, %v4072_v34  ;;  %v4619_v34 = vld [vmem:[#allocation6 + $0x48] sm:$0xff] }
 0x4a9   : > { %v4074_v13 = vpop.permute.xlu0 %4073 }
 0x4aa   : > { %4141 = vst.msk [vmem:[#allocation5 + $0xe8] sm:$0xff] %vm4111_vm5, %v4074_v13  ;;  %v3496_v11 = vpop.permute.xlu1 %3495  ;;  %v8006_v15 = vpop.f32.mrb[14].mxu1  ;;  %v5572_v13 = vpack.c.bf16 %v4619_v34, %v4611_v38  ;;  %v4683_v38 = vld [vmem:[#allocation6 + $0x248] sm:$0xff]  ;;  %v4677_v34 = vld [vmem:[#allocation6 + $0x218] sm:$0xff] }
 0x4ab   : > { %3562 = vst.msk [vmem:[#allocation5 + $0xf0] sm:$0xff] %vm3531_vm2, %v3496_v11  ;;  %v8009_v55 = vpop.f32.mrb[15].mxu1  ;;  %v4621_v11 = vld [vmem:[#allocation6 + $0x58] sm:$0xff] }
 0x4ac   : > { %5573 = vmatprep.subr.bf16.mxu0 %v5572_v13 }
 0x4ad   : > { %v3690_v27 = vpop.permute.xlu0 %3689 }
 0x4ae   : > { %3756 = vst.msk [vmem:[#allocation5 + $0xf0] sm:$0xff] %vm3725_vm3, %v3690_v27  ;;  %v3498_v10 = vpop.permute.xlu1 %3497  ;;  %v4172_v4 = vld [vmem:[#allocation5 + $0xe0] sm:$0xff] }
 0x4af   : > { %3563 = vst.msk [vmem:[#allocation5 + $0xf8] sm:$0xff] %vm3531_vm2, %v3498_v10  ;;  %5542 = vmatprep.mubr.msk.f32.mxu1 %vm4192_vm6, %v4172_v4  ;;  %v4618_v27 = vld [vmem:[#allocation6 + $0x40] sm:$0xff]  ;;  %v5636_v10 = vpack.c.bf16 %v4621_v11, %v4613_v22  ;;  %v4685_v22 = vld [vmem:[#allocation6 + $0x258] sm:$0xff] }
 0x4b0   : > { %v5574_v4 = vpack.c.bf16 %v4618_v27, %v4610_v18 }
 0x4b1   : > { %v4173_v7 = vld [vmem:[#allocation5 + $0xe8] sm:$0xff]  ;;  %v3883_v61 = vpop.permute.xlu0 %3882  ;;  %5637 = vmatprep.subr.bf16.mxu1 %v5636_v10 }
 0x4b2   : > { %5543 = vmatmul.mubr.msk.f32.gmra.mrb[28].mxu1 %vm4192_vm6, %v4173_v7  ;;  %3949 = vst.msk [vmem:[#allocation5 + $0xf0] sm:$0xff] %vm3918_vm4, %v3883_v61  ;;  %v3692_v35 = vpop.permute.xlu1 %3691  ;;  %v4612_v7 = vld [vmem:[#allocation6 + $0x10] sm:$0xff]  ;;  %5575 = vmatpush1.bf16.msra.mxu0 %v5574_v4 }
 0x4b3   : > { %3757 = vst.msk [vmem:[#allocation5 + $0xf8] sm:$0xff] %vm3725_vm3, %v3692_v35  ;;  %v4620_v61 = vld [vmem:[#allocation6 + $0x50] sm:$0xff]  ;;  %v4627_v35 = vld [vmem:[#allocation6 + $0x88] sm:$0xff] }
 0x4b5   : > { %v4076_v36 = vpop.permute.xlu0 %4075 }
 0x4b6   : > { %4142 = vst.msk [vmem:[#allocation5 + $0xf0] sm:$0xff] %vm4111_vm5, %v4076_v36  ;;  %v3885_v40 = vpop.permute.xlu1 %3884  ;;  %v5638_v36 = vpack.c.bf16 %v4620_v61, %v4612_v7  ;;  %v4674_v7 = vld [vmem:[#allocation6 + $0x200] sm:$0xff] }
 0x4b7   : > { %3950 = vst.msk [vmem:[#allocation5 + $0xf8] sm:$0xff] %vm3918_vm4, %v3885_v40  ;;  %v4635_v40 = vld [vmem:[#allocation6 + $0xc8] sm:$0xff]  ;;  %v4682_v61 = vld [vmem:[#allocation6 + $0x240] sm:$0xff] }
 0x4b8   : > { %5639 = vmatpush1.bf16.msra.mxu1 %v5638_v36 }
 0x4ba   : > { %v4078_v43 = vpop.permute.xlu1 %4077 }
 0x4bb   : > { %4143 = vst.msk [vmem:[#allocation5 + $0xf8] sm:$0xff] %vm4111_vm5, %v4078_v43  ;;  %v4629_v43 = vld [vmem:[#allocation6 + $0x98] sm:$0xff] }
 0x4bd   : > { %v4174_v52 = vld [vmem:[#allocation5 + $0xf0] sm:$0xff] }
 0x4be   : > { %5545 = vmatprep.mubr.msk.f32.mxu1 %vm4192_vm6, %v4174_v52  ;;  %v4637_v52 = vld [vmem:[#allocation6 + $0xd8] sm:$0xff] }
 0x4bf   : > { %v5640_v8 = vpack.c.bf16 %v4637_v52, %v4629_v43  ;;  %v4684_v43 = vld [vmem:[#allocation6 + $0x250] sm:$0xff]  ;;  %v4691_v52 = vld [vmem:[#allocation6 + $0x288] sm:$0xff] }
 0x4c1   : > { %5641 = vmatprep.subr.bf16.mxu1 %v5640_v8  ;;  %v4693_v8 = vld [vmem:[#allocation6 + $0x298] sm:$0xff] }
 0x4c2   : > { %v4175_v39 = vld [vmem:[#allocation5 + $0xf8] sm:$0xff] }
 0x4c3   : > { %5546 = vmatmul.mubr.msk.f32.gmra.mrb[30].mxu1 %vm4192_vm6, %v4175_v39  ;;  %v5576_v39 = vpack.c.bf16 %v4635_v40, %v4627_v35  ;;  %v4676_v35 = vld [vmem:[#allocation6 + $0x210] sm:$0xff]  ;;  %v5652_v40 = vpack.c.bf16 %v4685_v22, %v4677_v34 }
 0x4c5   : > { %5577 = vmatprep.subr.bf16.mxu0 %v5576_v39  ;;  %v4699_v39 = vld [vmem:[#allocation6 + $0x2c8] sm:$0xff] }
 0x4ca   : > { %v5526_v49 = vpop.f32.mrb[16].mxu1 }
 0x4cb   : > { %v4441_v42 = vadd.f32 %v5526_v49, %v8025_v17  ;;  %v4435_v47 = vpop.f32.mrb[17].mxu1  ;;  %v4634_v49 = vld [vmem:[#allocation6 + $0xc0] sm:$0xff] }
 0x4cc   : > { %v4436_v6 = vadd.f32 %v8025_v17, %v4435_v47  ;;  %v5578_v47 = vpack.c.bf16 %v4634_v49, %v4626_v12  ;;  %v4701_v12 = vld [vmem:[#allocation6 + $0x2d8] sm:$0xff]  ;;  %v5590_v49 = vpack.c.bf16 %v4682_v61, %v4674_v7  ;;  %v4763_v7 = vld [vmem:[#allocation6 + $0x4c8] sm:$0xff] }
 0x4cd   : > { %v4531_v54 = vmax.f32 %v4441_v42, 0.0  ;;  %v4628_v42 = vld [vmem:[#allocation6 + $0x90] sm:$0xff]  ;;  %v4757_v61 = vld [vmem:[#allocation6 + $0x498] sm:$0xff] }
 0x4ce   : > { %v4530_v62 = vmax.f32 %v4436_v6, 0.0  ;;  %v4636_v6 = vld [vmem:[#allocation6 + $0xd0] sm:$0xff]  ;;  %5579 = vmatpush1.bf16.msra.mxu0 %v5578_v47  ;;  %v5592_v47 = vpack.c.bf16 %v4699_v39, %v4691_v52  ;;  %v4754_v52 = vld [vmem:[#allocation6 + $0x480] sm:$0xff] }
 0x4cf   : > { %v5864_v3 = vpack.i.bf16 %v4515_v46, %v4531_v54  ;;  %v4643_v46 = vld [vmem:[#allocation6 + $0x108] sm:$0xff]  ;;  %v4762_v39 = vld [vmem:[#allocation6 + $0x4c0] sm:$0xff] }
 0x4d0   : > { %v5862_v44 = vpack.i.bf16 %v4514_v53, %v4530_v62  ;;  %v4651_v54 = vld [vmem:[#allocation6 + $0x148] sm:$0xff]  ;;  %v5642_v53 = vpack.c.bf16 %v4636_v6, %v4628_v42  ;;  %v5654_v42 = vpack.c.bf16 %v4684_v43, %v4676_v35  ;;  %v4690_v6 = vld [vmem:[#allocation6 + $0x280] sm:$0xff]  ;;  %v4765_v35 = vld [vmem:[#allocation6 + $0x4d8] sm:$0xff] }
 0x4d1   : > { %v5580_v62 = vpack.c.bf16 %v4651_v54, %v4643_v46  ;;  %v4698_v46 = vld [vmem:[#allocation6 + $0x2c0] sm:$0xff]  ;;  %v4692_v54 = vld [vmem:[#allocation6 + $0x290] sm:$0xff] }
 0x4d2   : > { %5863 = vxpose.xlu0.b32.start [1/16] (narrow) %v5862_v44, 8  ;;  %v4653_v44 = vld [vmem:[#allocation6 + $0x158] sm:$0xff]  ;;  %5643 = vmatpush1.bf16.msra.mxu1 %v5642_v53  ;;  %v5656_v53 = vpack.c.bf16 %v4701_v12, %v4693_v8  ;;  %v4756_v8 = vld [vmem:[#allocation6 + $0x490] sm:$0xff]  ;;  %v5672_v12 = vpack.c.bf16 %v4765_v35, %v4757_v61  ;;  %v4819_v35 = vld [vmem:[#allocation6 + $0x688] sm:$0xff] }
 0x4d3   : > { %5581 = vmatprep.subr.bf16.mxu0 %v5580_v62  ;;  %v4700_v62 = vld [vmem:[#allocation6 + $0x2d0] sm:$0xff] }
 0x4d4   : > { %v4812_v61 = vld [vmem:[#allocation6 + $0x650] sm:$0xff] }
 0x4d6   : > { %5865 = vxpose.xlu0.b32.cont [2/16] (narrow) %v5864_v3, 8  ;;  %v4645_v3 = vld [vmem:[#allocation6 + $0x118] sm:$0xff] }
 0x4ea   : > { %v5529_v24 = vpop.f32.mrb[18].mxu1 }
 0x4eb   : > { %v4451_v29 = vadd.f32 %v5529_v24, %v8025_v17  ;;  %v4445_v30 = vpop.f32.mrb[19].mxu1  ;;  %v5644_v24 = vpack.c.bf16 %v4653_v44, %v4645_v3  ;;  %v4707_v3 = vld [vmem:[#allocation6 + $0x308] sm:$0xff] }
 0x4ec   : > { %v4446_v51 = vadd.f32 %v8025_v17, %v4445_v30  ;;  %v4644_v30 = vld [vmem:[#allocation6 + $0x110] sm:$0xff]  ;;  %v4715_v44 = vld [vmem:[#allocation6 + $0x348] sm:$0xff] }
 0x4ed   : > { %v4533_v28 = vmax.f32 %v4451_v29, 0.0  ;;  %v4650_v29 = vld [vmem:[#allocation6 + $0x140] sm:$0xff]  ;;  %5645 = vmatprep.subr.bf16.mxu1 %v5644_v24  ;;  %v5594_v24 = vpack.c.bf16 %v4698_v46, %v4690_v6  ;;  %v4773_v6 = vld [vmem:[#allocation6 + $0x518] sm:$0xff] }
 0x4ee   : > { %v4532_v58 = vmax.f32 %v4446_v51, 0.0  ;;  %v4652_v51 = vld [vmem:[#allocation6 + $0x150] sm:$0xff]  ;;  %v4781_v46 = vld [vmem:[#allocation6 + $0x558] sm:$0xff] }
 0x4ef   : > { %v5868_v0 = vpack.i.bf16 %v4517_v63, %v4533_v28  ;;  %v4386_v63 = vadd.f32 %v8025_v17, %v7907_v31 }
 0x4f0   : > { %v5866_v16 = vpack.i.bf16 %v4516_v48, %v4532_v58  ;;  %v5582_v48 = vpack.c.bf16 %v4650_v29, %v4642_v26  ;;  %v4659_v58 = vld [vmem:[#allocation6 + $0x188] sm:$0xff]  ;;  %v4709_v26 = vld [vmem:[#allocation6 + $0x318] sm:$0xff]  ;;  %v5658_v29 = vpack.c.bf16 %v4700_v62, %v4692_v54  ;;  %v5610_v54 = vpack.c.bf16 %v4762_v39, %v4754_v52 }
 0x4f1   : > { %v4520_v13 = vmax.f32 %v4386_v63, 0.0  ;;  %v4714_v63 = vld [vmem:[#allocation6 + $0x340] sm:$0xff] }
 0x4f2   : > { %5867 = vxpose.xlu0.b32.cont [3/16] (narrow) %v5866_v16, 8  ;;  %v4661_v16 = vld [vmem:[#allocation6 + $0x198] sm:$0xff]  ;;  %5583 = vmatpush1.bf16.msra.mxu0 %v5582_v48 }
 0x4f6   : > { %5869 = vxpose.xlu0.b32.cont [4/16] (narrow) %v5868_v0, 8  ;;  %v4667_v0 = vld [vmem:[#allocation6 + $0x1c8] sm:$0xff] }
 0x4f7   : > { %v5584_v9 = vpack.c.bf16 %v4667_v0, %v4659_v58  ;;  %v4716_v58 = vld [vmem:[#allocation6 + $0x350] sm:$0xff]  ;;  %v4723_v0 = vld [vmem:[#allocation6 + $0x388] sm:$0xff] }
 0x4f9   : > { %5585 = vmatprep.subr.bf16.mxu0 %v5584_v9 }
 0x50a   : > { %v5532_v2 = vpop.f32.mrb[20].mxu1 }
 0x50b   : > { %v4461_v5 = vadd.f32 %v5532_v2, %v8025_v17  ;;  %v4455_v56 = vpop.f32.mrb[21].mxu1  ;;  %v5646_v2 = vpack.c.bf16 %v4652_v51, %v4644_v30  ;;  %v5596_v30 = vpack.c.bf16 %v4715_v44, %v4707_v3  ;;  %v4706_v51 = vld [vmem:[#allocation6 + $0x300] sm:$0xff] }
 0x50c   : > { %v4456_v59 = vadd.f32 %v8025_v17, %v4455_v56  ;;  %v4658_v56 = vld [vmem:[#allocation6 + $0x180] sm:$0xff] }
 0x50d   : > { %v4535_v45 = vmax.f32 %v4461_v5, 0.0  ;;  %v4669_v5 = vld [vmem:[#allocation6 + $0x1d8] sm:$0xff]  ;;  %5647 = vmatpush1.bf16.msra.mxu1 %v5646_v2  ;;  %v5598_v2 = vpack.c.bf16 %v4714_v63, %v4706_v51  ;;  %v4770_v3 = vld [vmem:[#allocation6 + $0x500] sm:$0xff]  ;;  %v4401_v51 = vadd.f32 %v7940_v33, %v8025_v17 }
 0x50e   : > { %v4534_v32 = vmax.f32 %v4456_v59, 0.0  ;;  %v4666_v59 = vld [vmem:[#allocation6 + $0x1c0] sm:$0xff]  ;;  %v5648_v31 = vpack.c.bf16 %v4669_v5, %v4661_v16  ;;  %v4731_v16 = vld [vmem:[#allocation6 + $0x3c8] sm:$0xff]  ;;  %v4789_v63 = vld [vmem:[#allocation6 + $0x598] sm:$0xff] }
 0x50f   : > { %v5872_v57 = vpack.i.bf16 %v4519_v20, %v4535_v45  ;;  %v4660_v45 = vld [vmem:[#allocation6 + $0x190] sm:$0xff]  ;;  %v5586_v18 = vpack.c.bf16 %v4666_v59, %v4658_v56  ;;  %v5600_v5 = vpack.c.bf16 %v4731_v16, %v4723_v0  ;;  %v4722_v56 = vld [vmem:[#allocation6 + $0x380] sm:$0xff] }
 0x510   : > { %v5870_v41 = vpack.i.bf16 %v4518_v21, %v4534_v32  ;;  %v4668_v21 = vld [vmem:[#allocation6 + $0x1d0] sm:$0xff]  ;;  %v4675_v32 = vld [vmem:[#allocation6 + $0x208] sm:$0xff]  ;;  %5649 = vmatprep.subr.bf16.mxu1 %v5648_v31  ;;  %v4730_v59 = vld [vmem:[#allocation6 + $0x3c0] sm:$0xff] }
 0x511   : > { %v5650_v10 = vpack.c.bf16 %v4668_v21, %v4660_v45  ;;  %v5588_v4 = vpack.c.bf16 %v4683_v38, %v4675_v32  ;;  %5587 = vmatpush1.bf16.msra.mxu0 %v5586_v18  ;;  %v4732_v45 = vld [vmem:[#allocation6 + $0x3d0] sm:$0xff]  ;;  %v4739_v21 = vld [vmem:[#allocation6 + $0x408] sm:$0xff]  ;;  %v5602_v38 = vpack.c.bf16 %v4730_v59, %v4722_v56  ;;  %v4778_v44 = vld [vmem:[#allocation6 + $0x540] sm:$0xff] }
 0x512   : > { %5871 = vxpose.xlu0.b32.cont [5/16] (narrow) %v5870_v41, 8  ;;  %v4747_v32 = vld [vmem:[#allocation6 + $0x448] sm:$0xff]  ;;  %v4740_v18 = vld [vmem:[#allocation6 + $0x410] sm:$0xff]  ;;  %v5614_v0 = vpack.c.bf16 %v4778_v44, %v4770_v3 }
 0x513   : > { %5651 = vmatpush1.bf16.msra.mxu1 %v5650_v10  ;;  %5589 = vmatprep.subr.bf16.mxu0 %v5588_v4  ;;  %v5604_v22 = vpack.c.bf16 %v4747_v32, %v4739_v21  ;;  %v4748_v10 = vld [vmem:[#allocation6 + $0x450] sm:$0xff]  ;;  %v4755_v4 = vld [vmem:[#allocation6 + $0x488] sm:$0xff]  ;;  %v4805_v32 = vld [vmem:[#allocation6 + $0x618] sm:$0xff] }
 0x514   : > { %5653 = vmatprep.subr.bf16.mxu1 %v5652_v40  ;;  %v5670_v40 = vpack.c.bf16 %v4748_v10, %v4740_v18  ;;  %v5608_v43 = vpack.c.bf16 %v4763_v7, %v4755_v4  ;;  %v4788_v56 = vld [vmem:[#allocation6 + $0x590] sm:$0xff]  ;;  %v4802_v18 = vld [vmem:[#allocation6 + $0x600] sm:$0xff] }
 0x515   : > { %5591 = vmatpush1.bf16.msra.mxu0 %v5590_v49  ;;  %v4764_v49 = vld [vmem:[#allocation6 + $0x4d0] sm:$0xff] }
 0x516   : > { %5873 = vxpose.xlu0.b32.cont [6/16] (narrow) %v5872_v57, 8  ;;  %v4521_v57 = vmax.f32 %v4391_v60, 0.0  ;;  %v4717_v60 = vld [vmem:[#allocation6 + $0x358] sm:$0xff]  ;;  %5593 = vmatprep.subr.bf16.mxu0 %v5592_v47  ;;  %v4779_v47 = vld [vmem:[#allocation6 + $0x548] sm:$0xff]  ;;  %v4804_v10 = vld [vmem:[#allocation6 + $0x610] sm:$0xff] }
 0x517   : > { %5655 = vmatpush1.bf16.msra.mxu1 %v5654_v42  ;;  %v5660_v48 = vpack.c.bf16 %v4717_v60, %v4709_v26  ;;  %v4771_v42 = vld [vmem:[#allocation6 + $0x508] sm:$0xff]  ;;  %v4772_v26 = vld [vmem:[#allocation6 + $0x510] sm:$0xff]  ;;  %v5676_v60 = vpack.c.bf16 %v4781_v46, %v4773_v6  ;;  %v5686_v39 = vpack.c.bf16 %v4812_v61, %v4804_v10 }
 0x518   : > { %5657 = vmatprep.subr.bf16.mxu1 %v5656_v53  ;;  %v5674_v53 = vpack.c.bf16 %v4764_v49, %v4756_v8  ;;  %v5612_v62 = vpack.c.bf16 %v4779_v47, %v4771_v42  ;;  %v4826_v49 = vld [vmem:[#allocation6 + $0x6c0] sm:$0xff]  ;;  %v4820_v42 = vld [vmem:[#allocation6 + $0x690] sm:$0xff]  ;;  %v4835_v46 = vld [vmem:[#allocation6 + $0x708] sm:$0xff] }
 0x519   : > { %5595 = vmatpush1.bf16.msra.mxu0 %v5594_v24  ;;  %v4780_v24 = vld [vmem:[#allocation6 + $0x550] sm:$0xff] }
 0x51a   : > { %5597 = vmatprep.subr.bf16.mxu0 %v5596_v30  ;;  %v4795_v30 = vld [vmem:[#allocation6 + $0x5c8] sm:$0xff]  ;;  %v4828_v6 = vld [vmem:[#allocation6 + $0x6d0] sm:$0xff] }
 0x51b   : > { %5659 = vmatpush1.bf16.msra.mxu1 %v5658_v29  ;;  %v4787_v29 = vld [vmem:[#allocation6 + $0x588] sm:$0xff]  ;;  %v5690_v44 = vpack.c.bf16 %v4828_v6, %v4820_v42 }
 0x51c   : > { %5661 = vmatprep.subr.bf16.mxu1 %v5660_v48  ;;  %v4396_v48 = vadd.f32 %v8025_v17, %v7943_v19  ;;  %v4811_v19 = vld [vmem:[#allocation6 + $0x648] sm:$0xff] }
 0x51d   : > { %5599 = vmatpush1.bf16.msra.mxu0 %v5598_v2  ;;  %v5616_v2 = vpack.c.bf16 %v4795_v30, %v4787_v29  ;;  %v4836_v29 = vld [vmem:[#allocation6 + $0x710] sm:$0xff] }
 0x51e   : > { %5601 = vmatprep.subr.bf16.mxu0 %v5600_v5  ;;  %v4794_v5 = vld [vmem:[#allocation6 + $0x5c0] sm:$0xff] }
 0x521   : > { %5603 = vmatpush1.bf16.msra.mxu0 %v5602_v38 }
 0x522   : > { %5605 = vmatprep.subr.bf16.mxu0 %v5604_v22 }
 0x52a   : > { %v5535_v28 = vpop.f32.mrb[22].mxu1 }
 0x52b   : > { %v4471_v25 = vadd.f32 %v5535_v28, %v8025_v17  ;;  %v4465_v37 = vpop.f32.mrb[23].mxu1  ;;  %v4708_v28 = vld [vmem:[#allocation6 + $0x310] sm:$0xff] }
 0x52c   : > { %v4466_v20 = vadd.f32 %v8025_v17, %v4465_v37  ;;  %v4733_v37 = vld [vmem:[#allocation6 + $0x3d8] sm:$0xff]  ;;  %v5662_v9 = vpack.c.bf16 %v4716_v58, %v4708_v28 }
 0x52d   : > { %v4537_v41 = vmax.f32 %v4471_v25, 0.0  ;;  %v4725_v25 = vld [vmem:[#allocation6 + $0x398] sm:$0xff] }
 0x52e   : > { %v4536_v11 = vmax.f32 %v4466_v20, 0.0  ;;  %v4724_v20 = vld [vmem:[#allocation6 + $0x390] sm:$0xff]  ;;  %v5664_v31 = vpack.c.bf16 %v4733_v37, %v4725_v25  ;;  %5663 = vmatpush1.bf16.msra.mxu1 %v5662_v9  ;;  %v4797_v28 = vld [vmem:[#allocation6 + $0x5d8] sm:$0xff]  ;;  %v5678_v37 = vpack.c.bf16 %v4780_v24, %v4772_v26  ;;  %v4786_v9 = vld [vmem:[#allocation6 + $0x580] sm:$0xff] }
 0x52f   : > { %v5876_v27 = vpack.i.bf16 %v4521_v57, %v4537_v41  ;;  %v4741_v57 = vld [vmem:[#allocation6 + $0x418] sm:$0xff]  ;;  %v5666_v34 = vpack.c.bf16 %v4732_v45, %v4724_v20  ;;  %v5680_v59 = vpack.c.bf16 %v4797_v28, %v4789_v63  ;;  %v4796_v20 = vld [vmem:[#allocation6 + $0x5d0] sm:$0xff]  ;;  %v4523_v45 = vmax.f32 %v4401_v51, 0.0  ;;  %v4842_v24 = vld [vmem:[#allocation6 + $0x740] sm:$0xff] }
 0x530   : > { %v5874_v36 = vpack.i.bf16 %v4520_v13, %v4536_v11  ;;  %v4749_v41 = vld [vmem:[#allocation6 + $0x458] sm:$0xff]  ;;  %v4738_v13 = vld [vmem:[#allocation6 + $0x400] sm:$0xff]  ;;  %5665 = vmatprep.subr.bf16.mxu1 %v5664_v31  ;;  %v4803_v31 = vld [vmem:[#allocation6 + $0x608] sm:$0xff] }
 0x531   : > { %v4746_v11 = vld [vmem:[#allocation6 + $0x440] sm:$0xff]  ;;  %v4844_v51 = vld [vmem:[#allocation6 + $0x750] sm:$0xff]  ;;  %v4851_v63 = vld [vmem:[#allocation6 + $0x788] sm:$0xff] }
 0x532   : > { %5875 = vxpose.xlu0.b32.cont [7/16] (narrow) %v5874_v36, 8  ;;  %v5606_v36 = vpack.c.bf16 %v4746_v11, %v4738_v13  ;;  %5667 = vmatpush1.bf16.msra.mxu1 %v5666_v34  ;;  %v5618_v34 = vpack.c.bf16 %v4794_v5, %v4786_v9  ;;  %v5682_v13 = vpack.c.bf16 %v4796_v20, %v4788_v56  ;;  %v4859_v28 = vld [vmem:[#allocation6 + $0x7c8] sm:$0xff]  ;;  %v4852_v5 = vld [vmem:[#allocation6 + $0x790] sm:$0xff] }
 0x533   : > { %v5620_v11 = vpack.c.bf16 %v4811_v19, %v4803_v31  ;;  %v4860_v56 = vld [vmem:[#allocation6 + $0x7d0] sm:$0xff]  ;;  %v4615_v20 = vld [vmem:[#allocation6 + $0x28] sm:$0xff]  ;;  %v4617_v19 = vld [vmem:[#allocation6 + $0x38] sm:$0xff] }
 0x534   : > { %5607 = vmatpush1.bf16.msra.mxu0 %v5606_v36  ;;  %v4827_v36 = vld [vmem:[#allocation6 + $0x6c8] sm:$0xff] }
 0x535   : > { %5609 = vmatprep.subr.bf16.mxu0 %v5608_v43  ;;  %v4829_v43 = vld [vmem:[#allocation6 + $0x6d8] sm:$0xff]  ;;  %v5624_v8 = vpack.c.bf16 %v4827_v36, %v4819_v35  ;;  %v4623_v31 = vld [vmem:[#allocation6 + $0x68] sm:$0xff] }
 0x536   : > { %5877 = vxpose.xlu0.b32.cont [8/16] (narrow) %v5876_v27, 8  ;;  %v5668_v27 = vpack.c.bf16 %v4749_v41, %v4741_v57  ;;  %v4813_v57 = vld [vmem:[#allocation6 + $0x658] sm:$0xff]  ;;  %v4522_v41 = vmax.f32 %v4396_v48, 0.0 }
 0x537   : > { %v5684_v7 = vpack.c.bf16 %v4813_v57, %v4805_v32  ;;  %v4853_v48 = vld [vmem:[#allocation6 + $0x798] sm:$0xff]  ;;  %v4411_v32 = vadd.f32 %v7962_v1, %v8025_v17  ;;  %v4421_v1 = vadd.f32 %v7984_v14, %v8025_v17  ;;  %v4431_v14 = vadd.f32 %v8006_v15, %v8025_v17  ;;  %v4616_v15 = vld [vmem:[#allocation6 + $0x30] sm:$0xff] }
 0x538   : > { %5669 = vmatprep.subr.bf16.mxu1 %v5668_v27  ;;  %5611 = vmatpush1.bf16.msra.mxu0 %v5610_v54  ;;  %v4810_v27 = vld [vmem:[#allocation6 + $0x640] sm:$0xff]  ;;  %v4843_v54 = vld [vmem:[#allocation6 + $0x748] sm:$0xff] }
 0x539   : > { %5671 = vmatpush1.bf16.msra.mxu1 %v5670_v40  ;;  %5613 = vmatprep.subr.bf16.mxu0 %v5612_v62  ;;  %v4821_v40 = vld [vmem:[#allocation6 + $0x698] sm:$0xff]  ;;  %v5622_v52 = vpack.c.bf16 %v4810_v27, %v4802_v18  ;;  %v5628_v26 = vpack.c.bf16 %v4843_v54, %v4835_v46  ;;  %v4529_v54 = vmax.f32 %v4431_v14, 0.0 }
 0x53a   : > { %5673 = vmatprep.subr.bf16.mxu1 %v5672_v12  ;;  %v4818_v12 = vld [vmem:[#allocation6 + $0x680] sm:$0xff]  ;;  %v5688_v47 = vpack.c.bf16 %v4829_v43, %v4821_v40  ;;  %v4845_v62 = vld [vmem:[#allocation6 + $0x758] sm:$0xff]  ;;  %v4527_v43 = vmax.f32 %v4421_v1, 0.0 }
 0x53b   : > { %v5626_v3 = vpack.c.bf16 %v4826_v49, %v4818_v12 }
 0x53c   : > { %5615 = vmatpush1.bf16.msra.mxu0 %v5614_v0 }
 0x53d   : > { %5675 = vmatpush1.bf16.msra.mxu1 %v5674_v53  ;;  %5617 = vmatprep.subr.bf16.mxu0 %v5616_v2  ;;  %v4837_v53 = vld [vmem:[#allocation6 + $0x718] sm:$0xff]  ;;  %v4858_v2 = vld [vmem:[#allocation6 + $0x7c0] sm:$0xff] }
 0x53e   : > { %5677 = vmatprep.subr.bf16.mxu1 %v5676_v60  ;;  %v4834_v60 = vld [vmem:[#allocation6 + $0x700] sm:$0xff]  ;;  %v5692_v30 = vpack.c.bf16 %v4845_v62, %v4837_v53 }
 0x53f   : > { %v5630_v0 = vpack.c.bf16 %v4842_v24, %v4834_v60  ;;  %v4614_v60 = vld [vmem:[#allocation6 + $0x20] sm:$0xff] }
 0x540   : > { %5619 = vmatpush1.bf16.msra.mxu0 %v5618_v34  ;;  %v4622_v24 = vld [vmem:[#allocation6 + $0x60] sm:$0xff] }
 0x541   : > { %5679 = vmatpush1.bf16.msra.mxu1 %v5678_v37  ;;  %5621 = vmatprep.subr.bf16.mxu0 %v5620_v11  ;;  %v4850_v37 = vld [vmem:[#allocation6 + $0x780] sm:$0xff]  ;;  %v4525_v11 = vmax.f32 %v4411_v32, 0.0 }
 0x542   : > { %5681 = vmatprep.subr.bf16.mxu1 %v5680_v59  ;;  %v5698_v59 = vpack.c.bf16 %v4860_v56, %v4852_v5 }
 0x544   : > { %5623 = vmatpush1.bf16.msra.mxu0 %v5622_v52 }
 0x545   : > { %5683 = vmatpush1.bf16.msra.mxu1 %v5682_v13  ;;  %5625 = vmatprep.subr.bf16.mxu0 %v5624_v8 }
 0x546   : > { %5685 = vmatprep.subr.bf16.mxu1 %v5684_v7 }
 0x548   : > { %5627 = vmatpush1.bf16.msra.mxu0 %v5626_v3 }
 0x549   : > { %5687 = vmatpush1.bf16.msra.mxu1 %v5686_v39  ;;  %5629 = vmatprep.subr.bf16.mxu0 %v5628_v26 }
 0x54a   : > { %v5538_v58 = vpop.f32.mrb[24].mxu1  ;;  %5689 = vmatprep.subr.bf16.mxu1 %v5688_v47 }
 0x54b   : > { %v4481_v16 = vadd.f32 %v5538_v58, %v8025_v17  ;;  %v4475_v25 = vpop.f32.mrb[25].mxu1  ;;  %v4861_v58 = vld [vmem:[#allocation6 + $0x7d8] sm:$0xff] }
 0x54c   : > { %v4476_v33 = vadd.f32 %v8025_v17, %v4475_v25  ;;  %v5632_v25 = vpack.c.bf16 %v4859_v28, %v4851_v63  ;;  %v5696_v9 = vpack.c.bf16 %v4861_v58, %v4853_v48  ;;  %5631 = vmatpush1.bf16.msra.mxu0 %v5630_v0  ;;  %v4639_v28 = vld [vmem:[#allocation6 + $0xe8] sm:$0xff]  ;;  %v4633_v48 = vld [vmem:[#allocation6 + $0xb8] sm:$0xff] }
 0x54d   : > { %v4539_v21 = vmax.f32 %v4481_v16, 0.0  ;;  %5691 = vmatpush1.bf16.msra.mxu1 %v5690_v44  ;;  %v5694_v16 = vpack.c.bf16 %v4844_v51, %v4836_v29  ;;  %v4624_v29 = vld [vmem:[#allocation6 + $0x70] sm:$0xff]  ;;  %v5702_v51 = vpack.c.bf16 %v4622_v24, %v4614_v60  ;;  %v4641_v58 = vld [vmem:[#allocation6 + $0xf8] sm:$0xff] }
 0x54e   : > { %v4538_v38 = vmax.f32 %v4476_v33, 0.0  ;;  %5693 = vmatprep.subr.bf16.mxu1 %v5692_v30  ;;  %v5634_v33 = vpack.c.bf16 %v4858_v2, %v4850_v37  ;;  %5633 = vmatprep.subr.bf16.mxu0 %v5632_v25  ;;  %v4631_v30 = vld [vmem:[#allocation6 + $0xa8] sm:$0xff]  ;;  %v5766_v63 = vpack.c.bf16 %v4624_v29, %v4616_v15  ;;  %v4638_v25 = vld [vmem:[#allocation6 + $0xe0] sm:$0xff]  ;;  %v4632_v37 = vld [vmem:[#allocation6 + $0xb0] sm:$0xff]  ;;  %v5768_v56 = vpack.c.bf16 %v4641_v58, %v4633_v48 }
 0x54f   : > { %v5880_v22 = vpack.i.bf16 %v4523_v45, %v4539_v21  ;;  %v5700_v45 = vpack.c.bf16 %v4623_v31, %v4615_v20  ;;  %v4625_v21 = vld [vmem:[#allocation6 + $0x78] sm:$0xff]  ;;  %v4640_v2 = vld [vmem:[#allocation6 + $0xf0] sm:$0xff]  ;;  %v5704_v5 = vpack.c.bf16 %v4639_v28, %v4631_v30  ;;  %v4711_v29 = vld [vmem:[#allocation6 + $0x328] sm:$0xff] }
 0x550   : > { %v5878_v4 = vpack.i.bf16 %v4522_v41, %v4538_v38  ;;  %5635 = vmatpush1.bf16.msra.mxu0 %v5634_v33  ;;  %v5764_v57 = vpack.c.bf16 %v4625_v21, %v4617_v19  ;;  %v4406_v41 = vadd.f32 %v8025_v17, %v7965_v50  ;;  %v4416_v50 = vadd.f32 %v8025_v17, %v7987_v23  ;;  %v4655_v33 = vld [vmem:[#allocation6 + $0x168] sm:$0xff]  ;;  %v4657_v20 = vld [vmem:[#allocation6 + $0x178] sm:$0xff]  ;;  %v4654_v21 = vld [vmem:[#allocation6 + $0x160] sm:$0xff] }
 0x551   : > { %5695 = vmatpush1.bf16.msra.mxu1 %v5694_v16  ;;  %5701 = vmatprep.subr.bf16.mxu0 %v5700_v45  ;;  %v4426_v23 = vadd.f32 %v8025_v17, %v8009_v55  ;;  %v4630_v16 = vld [vmem:[#allocation6 + $0xa0] sm:$0xff]  ;;  %v5770_v19 = vpack.c.bf16 %v4640_v2, %v4632_v37  ;;  %v4696_v24 = vld [vmem:[#allocation6 + $0x2b0] sm:$0xff]  ;;  %v4719_v30 = vld [vmem:[#allocation6 + $0x368] sm:$0xff] }
 0x552   : > { %5879 = vxpose.xlu0.b32.cont [9/16] (narrow) %v5878_v4, 8  ;;  %5697 = vmatprep.subr.bf16.mxu1 %v5696_v9  ;;  %v4524_v27 = vmax.f32 %v4406_v41, 0.0  ;;  %v4526_v39 = vmax.f32 %v4416_v50, 0.0  ;;  %v4647_v9 = vld [vmem:[#allocation6 + $0x128] sm:$0xff]  ;;  %v5706_v31 = vpack.c.bf16 %v4638_v25, %v4630_v16  ;;  %v4646_v45 = vld [vmem:[#allocation6 + $0x120] sm:$0xff]  ;;  %v4648_v41 = vld [vmem:[#allocation6 + $0x130] sm:$0xff] }
 0x553   : > { %v4528_v62 = vmax.f32 %v4426_v23, 0.0  ;;  %v5708_v32 = vpack.c.bf16 %v4655_v33, %v4647_v9  ;;  %v4664_v50 = vld [vmem:[#allocation6 + $0x1b0] sm:$0xff]  ;;  %v4710_v48 = vld [vmem:[#allocation6 + $0x320] sm:$0xff]  ;;  %v4727_v2 = vld [vmem:[#allocation6 + $0x3a8] sm:$0xff] }
 0x554   : > { %v4680_v23 = vld [vmem:[#allocation6 + $0x230] sm:$0xff]  ;;  %v4718_v58 = vld [vmem:[#allocation6 + $0x360] sm:$0xff]  ;;  %v4735_v9 = vld [vmem:[#allocation6 + $0x3e8] sm:$0xff] }
 0x555   : > { %5699 = vmatpush1.bf16.msra.mxu1 %v5698_v59  ;;  %v4649_v59 = vld [vmem:[#allocation6 + $0x138] sm:$0xff]  ;;  %v4704_v15 = vld [vmem:[#allocation6 + $0x2f0] sm:$0xff]  ;;  %v5726_v33 = vpack.c.bf16 %v4718_v58, %v4710_v48 }
 0x556   : > { %5881 = vxpose.xlu0.b32.cont [10/16] (narrow) %v5880_v22, 8  ;;  %5765 = vmatprep.subr.bf16.mxu1 %v5764_v57  ;;  %v5772_v57 = vpack.c.bf16 %v4657_v20, %v4649_v59  ;;  %v5786_v28 = vpack.c.bf16 %v4704_v15, %v4696_v24  ;;  %v4712_v25 = vld [vmem:[#allocation6 + $0x330] sm:$0xff]  ;;  %v4726_v20 = vld [vmem:[#allocation6 + $0x3a0] sm:$0xff]  ;;  %v4799_v24 = vld [vmem:[#allocation6 + $0x5e8] sm:$0xff] }
 0x557   : > { %v4720_v37 = vld [vmem:[#allocation6 + $0x370] sm:$0xff]  ;;  %v4793_v15 = vld [vmem:[#allocation6 + $0x5b8] sm:$0xff] }
 0x558   : > { %v5790_v59 = vpack.c.bf16 %v4720_v37, %v4712_v25  ;;  %v4792_v58 = vld [vmem:[#allocation6 + $0x5b0] sm:$0xff]  ;;  %v4815_v25 = vld [vmem:[#allocation6 + $0x668] sm:$0xff]  ;;  %v4809_v37 = vld [vmem:[#allocation6 + $0x638] sm:$0xff] }
 0x56a   : > { %v5541_v38 = vpop.f32.mrb[26].mxu1 }
 0x56b   : > { %v4491_v34 = vadd.f32 %v5541_v38, %v8025_v17  ;;  %v4485_v22 = vpop.f32.mrb[27].mxu1  ;;  %v4656_v38 = vld [vmem:[#allocation6 + $0x170] sm:$0xff] }
 0x56c   : > { %v4486_v13 = vadd.f32 %v8025_v17, %v4485_v22  ;;  %v4671_v22 = vld [vmem:[#allocation6 + $0x1e8] sm:$0xff] }
 0x56d   : > { %v4541_v18 = vmax.f32 %v4491_v34, 0.0  ;;  %v4663_v34 = vld [vmem:[#allocation6 + $0x1a8] sm:$0xff] }
 0x56e   : > { %v4540_v10 = vmax.f32 %v4486_v13, 0.0  ;;  %v4665_v13 = vld [vmem:[#allocation6 + $0x1b8] sm:$0xff] }
 0x56f   : > { %v5884_v4 = vpack.i.bf16 %v4525_v11, %v4541_v18  ;;  %v4673_v11 = vld [vmem:[#allocation6 + $0x1f8] sm:$0xff]  ;;  %v5710_v18 = vpack.c.bf16 %v4654_v21, %v4646_v45  ;;  %v4728_v21 = vld [vmem:[#allocation6 + $0x3b0] sm:$0xff] }
 0x570   : > { %v5882_v7 = vpack.i.bf16 %v4524_v27, %v4540_v10  ;;  %v5774_v27 = vpack.c.bf16 %v4656_v38, %v4648_v41  ;;  %v4662_v10 = vld [vmem:[#allocation6 + $0x1a0] sm:$0xff]  ;;  %v5776_v1 = vpack.c.bf16 %v4673_v11, %v4665_v13  ;;  %v4751_v41 = vld [vmem:[#allocation6 + $0x468] sm:$0xff]  ;;  %v4745_v38 = vld [vmem:[#allocation6 + $0x438] sm:$0xff] }
 0x571   : > { %v4742_v11 = vld [vmem:[#allocation6 + $0x420] sm:$0xff] }
 0x572   : > { %5883 = vxpose.xlu0.b32.cont [11/16] (narrow) %v5882_v7, 8  ;;  %v5712_v7 = vpack.c.bf16 %v4671_v22, %v4663_v34  ;;  %v4753_v34 = vld [vmem:[#allocation6 + $0x478] sm:$0xff] }
 0x576   : > { %5885 = vxpose.xlu0.b32.cont [12/16] (narrow) %v5884_v4, 8  ;;  %v4670_v4 = vld [vmem:[#allocation6 + $0x1e0] sm:$0xff] }
 0x585   : > { %v5544_v61 = vpop.f32.mrb[28].mxu1 }
 0x586   : > { %v4501_v35 = vadd.f32 %v5544_v61, %v8025_v17  ;;  %v4495_v36 = vpop.f32.mrb[29].mxu1  ;;  %v4672_v61 = vld [vmem:[#allocation6 + $0x1f0] sm:$0xff] }
 0x587   : > { %v4496_v40 = vadd.f32 %v8025_v17, %v4495_v36  ;;  %v4687_v36 = vld [vmem:[#allocation6 + $0x268] sm:$0xff] }
 0x588   : > { %v4543_v52 = vmax.f32 %v4501_v35, 0.0  ;;  %v4679_v35 = vld [vmem:[#allocation6 + $0x228] sm:$0xff] }
 0x589   : > { %v4542_v8 = vmax.f32 %v4496_v40, 0.0  ;;  %v4681_v40 = vld [vmem:[#allocation6 + $0x238] sm:$0xff] }
 0x58a   : > { %v5888_v12 = vpack.i.bf16 %v4527_v43, %v4543_v52  ;;  %v4689_v43 = vld [vmem:[#allocation6 + $0x278] sm:$0xff]  ;;  %v5714_v52 = vpack.c.bf16 %v4670_v4, %v4662_v10  ;;  %v5796_v10 = vpack.c.bf16 %v4753_v34, %v4745_v38  ;;  %v4744_v4 = vld [vmem:[#allocation6 + $0x430] sm:$0xff]  ;;  %v4822_v34 = vld [vmem:[#allocation6 + $0x6a0] sm:$0xff] }
 0x58b   : > { %v5886_v49 = vpack.i.bf16 %v4526_v39, %v4542_v8  ;;  %v5778_v39 = vpack.c.bf16 %v4672_v61, %v4664_v50  ;;  %v4678_v8 = vld [vmem:[#allocation6 + $0x220] sm:$0xff]  ;;  %v5780_v14 = vpack.c.bf16 %v4689_v43, %v4681_v40  ;;  %v4767_v50 = vld [vmem:[#allocation6 + $0x4e8] sm:$0xff]  ;;  %v4761_v61 = vld [vmem:[#allocation6 + $0x4b8] sm:$0xff] }
 0x58c   : > { %v4758_v43 = vld [vmem:[#allocation6 + $0x4a0] sm:$0xff] }
 0x58d   : > { %5887 = vxpose.xlu0.b32.cont [13/16] (narrow) %v5886_v49, 8  ;;  %v5716_v49 = vpack.c.bf16 %v4687_v36, %v4679_v35  ;;  %v4769_v35 = vld [vmem:[#allocation6 + $0x4f8] sm:$0xff] }
 0x591   : > { %5889 = vxpose.xlu0.b32.cont [14/16] (narrow) %v5888_v12, 8  ;;  %v4686_v12 = vld [vmem:[#allocation6 + $0x260] sm:$0xff] }
 0x596   : > { %v5547_v42 = vpop.f32.mrb[30].mxu1 }
 0x597   : > { %v4511_v47 = vadd.f32 %v5547_v42, %v8025_v17  ;;  %v4505_v6 = vpop.f32.mrb[31].mxu1  ;;  %v4688_v42 = vld [vmem:[#allocation6 + $0x270] sm:$0xff] }
 0x598   : > { %v4506_v46 = vadd.f32 %v8025_v17, %v4505_v6  ;;  %v4703_v6 = vld [vmem:[#allocation6 + $0x2e8] sm:$0xff] }
 0x599   : > { %v4545_v53 = vmax.f32 %v4511_v47, 0.0  ;;  %v4695_v47 = vld [vmem:[#allocation6 + $0x2a8] sm:$0xff] }
 0x59a   : > { %v4544_v3 = vmax.f32 %v4506_v46, 0.0  ;;  %v4697_v46 = vld [vmem:[#allocation6 + $0x2b8] sm:$0xff] }
 0x59b   : > { %v5892_v44 = vpack.i.bf16 %v4529_v54, %v4545_v53  ;;  %v4705_v54 = vld [vmem:[#allocation6 + $0x2f8] sm:$0xff]  ;;  %v5718_v53 = vpack.c.bf16 %v4686_v12, %v4678_v8  ;;  %v5800_v8 = vpack.c.bf16 %v4769_v35, %v4761_v61  ;;  %v4760_v12 = vld [vmem:[#allocation6 + $0x4b0] sm:$0xff]  ;;  %v4838_v35 = vld [vmem:[#allocation6 + $0x720] sm:$0xff] }
 0x59c   : > { %v5890_v26 = vpack.i.bf16 %v4528_v62, %v4544_v3  ;;  %v5782_v62 = vpack.c.bf16 %v4688_v42, %v4680_v23  ;;  %v4694_v3 = vld [vmem:[#allocation6 + $0x2a0] sm:$0xff]  ;;  %v5784_v60 = vpack.c.bf16 %v4705_v54, %v4697_v46  ;;  %v4783_v23 = vld [vmem:[#allocation6 + $0x568] sm:$0xff]  ;;  %v4777_v42 = vld [vmem:[#allocation6 + $0x538] sm:$0xff] }
 0x59d   : > { %v4774_v54 = vld [vmem:[#allocation6 + $0x520] sm:$0xff] }
 0x59e   : > { %5891 = vxpose.xlu0.b32.cont [15/16] (narrow) %v5890_v26, 8  ;;  %v5720_v26 = vpack.c.bf16 %v4703_v6, %v4695_v47  ;;  %v4785_v47 = vld [vmem:[#allocation6 + $0x578] sm:$0xff] }
 0x5a2   : > { %5893 = vxpose.xlu0.b32.end [16/16] (narrow) %v5892_v44, 8  ;;  %v4702_v44 = vld [vmem:[#allocation6 + $0x2e0] sm:$0xff] }
 0x5e6   : > { %v5894_v55 = vpop.trf.xlu0 }
 0x5e7   : > { %v8075_v17 = vunpack.i.h.bf16 %v5894_v55  ;;  %v5895_v0 = vunpack.i.l.bf16 %v5894_v55  ;;  %v4713_v55 = vld [vmem:[#allocation6 + $0x338] sm:$0xff] }
 0x5e9   : > { %4930 = vmatprep.mubr.f32.mxu0 %v5895_v0  ;;  %5001 = vmatprep.mubr.f32.mxu1 %v5895_v0 }
 0x5ea   : > { %4931 = vmatmul.mubr.f32.vlgmr.msra.gmra.mrb[32].mxu0 %v8075_v17  ;;  %5002 = vmatmul.mubr.f32.vlgmr.msra.gmra.mrb[32].mxu1 %v8075_v17 }
 0x5eb   : > { %5703 = vmatpush1.bf16.msra.mxu0 %v5702_v51  ;;  %5767 = vmatpush1.bf16.msra.mxu1 %v5766_v63  ;;  %v4721_v51 = vld [vmem:[#allocation6 + $0x378] sm:$0xff]  ;;  %v5722_v63 = vpack.c.bf16 %v4702_v44, %v4694_v3  ;;  %v5804_v3 = vpack.c.bf16 %v4785_v47, %v4777_v42  ;;  %v4776_v44 = vld [vmem:[#allocation6 + $0x530] sm:$0xff]  ;;  %v4854_v47 = vld [vmem:[#allocation6 + $0x7a0] sm:$0xff] }
 0x5ec   : > { %5072 = vmatprep.mubr.f32.mxu0 %v5895_v0  ;;  %5143 = vmatprep.mubr.f32.mxu1 %v5895_v0  ;;  %v5724_v0 = vpack.c.bf16 %v4719_v30, %v4711_v29  ;;  %v5788_v16 = vpack.c.bf16 %v4721_v51, %v4713_v55  ;;  %v4801_v29 = vld [vmem:[#allocation6 + $0x5f8] sm:$0xff]  ;;  %v4790_v51 = vld [vmem:[#allocation6 + $0x5a0] sm:$0xff] }
 0x5ed   : > { %5705 = vmatprep.subr.bf16.mxu0 %v5704_v5  ;;  %5769 = vmatprep.subr.bf16.mxu1 %v5768_v56  ;;  %v4729_v5 = vld [vmem:[#allocation6 + $0x3b8] sm:$0xff]  ;;  %v5808_v48 = vpack.c.bf16 %v4801_v29, %v4793_v15 }
 0x5ee   : > { %v4737_v56 = vld [vmem:[#allocation6 + $0x3f8] sm:$0xff] }
 0x5ef   : > { %5707 = vmatpush1.bf16.msra.mxu0 %v5706_v31  ;;  %5771 = vmatpush1.bf16.msra.mxu1 %v5770_v19  ;;  %v4734_v31 = vld [vmem:[#allocation6 + $0x3e0] sm:$0xff]  ;;  %v5728_v19 = vpack.c.bf16 %v4735_v9, %v4727_v2  ;;  %v5792_v45 = vpack.c.bf16 %v4737_v56, %v4729_v5  ;;  %v4817_v2 = vld [vmem:[#allocation6 + $0x678] sm:$0xff] }
 0x5f0   : > { %5709 = vmatprep.subr.bf16.mxu0 %v5708_v32  ;;  %5773 = vmatprep.subr.bf16.mxu1 %v5772_v57  ;;  %v4736_v32 = vld [vmem:[#allocation6 + $0x3f0] sm:$0xff]  ;;  %v4743_v57 = vld [vmem:[#allocation6 + $0x428] sm:$0xff]  ;;  %v5730_v22 = vpack.c.bf16 %v4734_v31, %v4726_v20  ;;  %v4806_v56 = vld [vmem:[#allocation6 + $0x620] sm:$0xff]  ;;  %v5812_v20 = vpack.c.bf16 %v4817_v2, %v4809_v37 }
 0x5f1   : > { %v5794_v13 = vpack.c.bf16 %v4736_v32, %v4728_v21  ;;  %v4808_v31 = vld [vmem:[#allocation6 + $0x630] sm:$0xff]  ;;  %v4831_v21 = vld [vmem:[#allocation6 + $0x6e8] sm:$0xff]  ;;  %v4825_v32 = vld [vmem:[#allocation6 + $0x6b8] sm:$0xff] }
 0x5f3   : > { %5711 = vmatpush1.bf16.msra.mxu0 %v5710_v18  ;;  %5775 = vmatpush1.bf16.msra.mxu1 %v5774_v27  ;;  %v4750_v18 = vld [vmem:[#allocation6 + $0x460] sm:$0xff]  ;;  %v5732_v27 = vpack.c.bf16 %v4751_v41, %v4743_v57  ;;  %v4833_v57 = vld [vmem:[#allocation6 + $0x6f8] sm:$0xff] }
 0x5f4   : > { %5713 = vmatprep.subr.bf16.mxu0 %v5712_v7  ;;  %5777 = vmatprep.subr.bf16.mxu1 %v5776_v1  ;;  %v4752_v7 = vld [vmem:[#allocation6 + $0x470] sm:$0xff]  ;;  %v4759_v1 = vld [vmem:[#allocation6 + $0x4a8] sm:$0xff]  ;;  %v5734_v36 = vpack.c.bf16 %v4750_v18, %v4742_v11  ;;  %v5816_v11 = vpack.c.bf16 %v4833_v57, %v4825_v32 }
 0x5f5   : > { %v5798_v40 = vpack.c.bf16 %v4752_v7, %v4744_v4  ;;  %v4824_v18 = vld [vmem:[#allocation6 + $0x6b0] sm:$0xff]  ;;  %v4847_v4 = vld [vmem:[#allocation6 + $0x768] sm:$0xff]  ;;  %v4841_v7 = vld [vmem:[#allocation6 + $0x738] sm:$0xff] }
 0x5f7   : > { %5715 = vmatpush1.bf16.msra.mxu0 %v5714_v52  ;;  %5779 = vmatpush1.bf16.msra.mxu1 %v5778_v39  ;;  %v4766_v52 = vld [vmem:[#allocation6 + $0x4e0] sm:$0xff]  ;;  %v5736_v39 = vpack.c.bf16 %v4767_v50, %v4759_v1  ;;  %v4849_v1 = vld [vmem:[#allocation6 + $0x778] sm:$0xff] }
 0x5f8   : > { %5717 = vmatprep.subr.bf16.mxu0 %v5716_v49  ;;  %5781 = vmatprep.subr.bf16.mxu1 %v5780_v14  ;;  %v4768_v49 = vld [vmem:[#allocation6 + $0x4f0] sm:$0xff]  ;;  %v4775_v14 = vld [vmem:[#allocation6 + $0x528] sm:$0xff]  ;;  %v5738_v6 = vpack.c.bf16 %v4766_v52, %v4758_v43  ;;  %v5820_v43 = vpack.c.bf16 %v4849_v1, %v4841_v7 }
 0x5f9   : > { %v5802_v46 = vpack.c.bf16 %v4768_v49, %v4760_v12  ;;  %v4840_v52 = vld [vmem:[#allocation6 + $0x730] sm:$0xff]  ;;  %v4863_v12 = vld [vmem:[#allocation6 + $0x7e8] sm:$0xff]  ;;  %v4857_v49 = vld [vmem:[#allocation6 + $0x7b8] sm:$0xff] }
 0x5fb   : > { %5719 = vmatpush1.bf16.msra.mxu0 %v5718_v53  ;;  %5783 = vmatpush1.bf16.msra.mxu1 %v5782_v62  ;;  %v4782_v53 = vld [vmem:[#allocation6 + $0x560] sm:$0xff]  ;;  %v5740_v62 = vpack.c.bf16 %v4783_v23, %v4775_v14  ;;  %v4865_v14 = vld [vmem:[#allocation6 + $0x7f8] sm:$0xff] }
 0x5fc   : > { %5721 = vmatprep.subr.bf16.mxu0 %v5720_v26  ;;  %5785 = vmatprep.subr.bf16.mxu1 %v5784_v60  ;;  %v4784_v26 = vld [vmem:[#allocation6 + $0x570] sm:$0xff]  ;;  %v4791_v60 = vld [vmem:[#allocation6 + $0x5a8] sm:$0xff]  ;;  %v5742_v30 = vpack.c.bf16 %v4782_v53, %v4774_v54  ;;  %v4862_v54 = vld [vmem:[#allocation6 + $0x7e0] sm:$0xff] }
 0x5fd   : > { %v5806_v55 = vpack.c.bf16 %v4784_v26, %v4776_v44  ;;  %v4856_v53 = vld [vmem:[#allocation6 + $0x7b0] sm:$0xff]  ;;  %v5159_v26 = vld [vmem:[%s308_s9 + $0x8] sm:$0xff] }
 0x5fe   : > { %v5167_v29 = vcombine.high %v5159_v26, %v5159_v26  ;;  %5176 = vst [vmem:[%s8089_s16 + $0x50] sm:$0xf] %v5159_v26 }
 0x5ff   : > { %5723 = vmatpush1.bf16.msra.mxu0 %v5722_v63  ;;  %5787 = vmatpush1.bf16.msra.mxu1 %v5786_v28  ;;  %v4798_v63 = vld [vmem:[#allocation6 + $0x5e0] sm:$0xff]  ;;  %v5744_v28 = vpack.c.bf16 %v4799_v24, %v4791_v60  ;;  %v5160_v60 = vld [vmem:[%s308_s9 + $0x10] sm:$0xff]  ;;  %v5161_v24 = vld [vmem:[%s308_s9 + $0x18] sm:$0xff] }
 0x600   : > { %5725 = vmatprep.subr.bf16.mxu0 %v5724_v0  ;;  %5789 = vmatprep.subr.bf16.mxu1 %v5788_v16  ;;  %v4800_v0 = vld [vmem:[#allocation6 + $0x5f0] sm:$0xff]  ;;  %v4807_v16 = vld [vmem:[#allocation6 + $0x628] sm:$0xff]  ;;  %v5746_v9 = vpack.c.bf16 %v4798_v63, %v4790_v51  ;;  %5178 = vst [vmem:[%s8089_s16 + $0x60] sm:$0xf] %v5160_v60  ;;  %5180 = vst [vmem:[%s8089_s16 + $0x70] sm:$0xf] %v5161_v24 }
 0x601   : > { %v5810_v5 = vpack.c.bf16 %v4800_v0, %v4792_v58  ;;  %5177 = vst [vmem:[%s8089_s16 + $0x58] sm:$0xf] %v5167_v29 }
 0x603   : > { %5727 = vmatpush1.bf16.msra.mxu0 %v5726_v33  ;;  %5791 = vmatpush1.bf16.msra.mxu1 %v5790_v59  ;;  %v4814_v33 = vld [vmem:[#allocation6 + $0x660] sm:$0xff]  ;;  %v5748_v59 = vpack.c.bf16 %v4815_v25, %v4807_v16 }
 0x604   : > { %5729 = vmatprep.subr.bf16.mxu0 %v5728_v19  ;;  %5793 = vmatprep.subr.bf16.mxu1 %v5792_v45  ;;  %v4816_v19 = vld [vmem:[#allocation6 + $0x670] sm:$0xff]  ;;  %v4823_v45 = vld [vmem:[#allocation6 + $0x6a8] sm:$0xff]  ;;  %v5750_v41 = vpack.c.bf16 %v4814_v33, %v4806_v56 }
 0x605   : > { %v5814_v38 = vpack.c.bf16 %v4816_v19, %v4808_v31 }
 0x607   : > { %5731 = vmatpush1.bf16.msra.mxu0 %v5730_v22  ;;  %5795 = vmatpush1.bf16.msra.mxu1 %v5794_v13  ;;  %v4830_v22 = vld [vmem:[#allocation6 + $0x6e0] sm:$0xff]  ;;  %v5752_v13 = vpack.c.bf16 %v4831_v21, %v4823_v45 }
 0x608   : > { %5733 = vmatprep.subr.bf16.mxu0 %v5732_v27  ;;  %5797 = vmatprep.subr.bf16.mxu1 %v5796_v10  ;;  %v4832_v27 = vld [vmem:[#allocation6 + $0x6f0] sm:$0xff]  ;;  %v4839_v10 = vld [vmem:[#allocation6 + $0x728] sm:$0xff]  ;;  %v5754_v50 = vpack.c.bf16 %v4830_v22, %v4822_v34 }
 0x609   : > { %v5818_v61 = vpack.c.bf16 %v4832_v27, %v4824_v18 }
 0x60b   : > { %5735 = vmatpush1.bf16.msra.mxu0 %v5734_v36  ;;  %5799 = vmatpush1.bf16.msra.mxu1 %v5798_v40  ;;  %v4846_v36 = vld [vmem:[#allocation6 + $0x760] sm:$0xff]  ;;  %v5756_v40 = vpack.c.bf16 %v4847_v4, %v4839_v10 }
 0x60c   : > { %5737 = vmatprep.subr.bf16.mxu0 %v5736_v39  ;;  %5801 = vmatprep.subr.bf16.mxu1 %v5800_v8  ;;  %v4848_v39 = vld [vmem:[#allocation6 + $0x770] sm:$0xff]  ;;  %v4855_v8 = vld [vmem:[#allocation6 + $0x7a8] sm:$0xff]  ;;  %v5758_v23 = vpack.c.bf16 %v4846_v36, %v4838_v35 }
 0x60d   : > { %v5822_v42 = vpack.c.bf16 %v4848_v39, %v4840_v52 }
 0x60f   : > { %5739 = vmatpush1.bf16.msra.mxu0 %v5738_v6  ;;  %5803 = vmatpush1.bf16.msra.mxu1 %v5802_v46  ;;  %v5760_v6 = vpack.c.bf16 %v4863_v12, %v4855_v8  ;;  %v5824_v46 = vpack.c.bf16 %v4865_v14, %v4857_v49 }
 0x610   : > { %5741 = vmatprep.subr.bf16.mxu0 %v5740_v62  ;;  %5805 = vmatprep.subr.bf16.mxu1 %v5804_v3  ;;  %v4864_v62 = vld [vmem:[#allocation6 + $0x7f0] sm:$0xff]  ;;  %v5762_v3 = vpack.c.bf16 %v4862_v54, %v4854_v47 }
 0x611   : > { %v5826_v44 = vpack.c.bf16 %v4864_v62, %v4856_v53 }
 0x613   : > { %5743 = vmatpush1.bf16.msra.mxu0 %v5742_v30  ;;  %5807 = vmatpush1.bf16.msra.mxu1 %v5806_v55  ;;  %v5168_v30 = vcombine.high %v5160_v60, %v5160_v60  ;;  %v5169_v55 = vcombine.high %v5161_v24, %v5161_v24 }
 0x614   : > { %5745 = vmatprep.subr.bf16.mxu0 %v5744_v28  ;;  %5809 = vmatprep.subr.bf16.mxu1 %v5808_v48 }
 0x615   : > { %5179 = vst [vmem:[%s8089_s16 + $0x68] sm:$0xf] %v5168_v30  ;;  %5181 = vst [vmem:[%s8089_s16 + $0x78] sm:$0xf] %v5169_v55 }
 0x617   : > { %5747 = vmatpush1.bf16.msra.mxu0 %v5746_v9  ;;  %5811 = vmatpush1.bf16.msra.mxu1 %v5810_v5 }
 0x618   : > { %5749 = vmatprep.subr.bf16.mxu0 %v5748_v59  ;;  %5813 = vmatprep.subr.bf16.mxu1 %v5812_v20 }
 0x61b   : > { %5751 = vmatpush1.bf16.msra.mxu0 %v5750_v41  ;;  %5815 = vmatpush1.bf16.msra.mxu1 %v5814_v38 }
 0x61c   : > { %5753 = vmatprep.subr.bf16.mxu0 %v5752_v13  ;;  %5817 = vmatprep.subr.bf16.mxu1 %v5816_v11 }
 0x61f   : > { %5755 = vmatpush1.bf16.msra.mxu0 %v5754_v50  ;;  %5819 = vmatpush1.bf16.msra.mxu1 %v5818_v61 }
 0x620   : > { %5757 = vmatprep.subr.bf16.mxu0 %v5756_v40  ;;  %5821 = vmatprep.subr.bf16.mxu1 %v5820_v43 }
 0x623   : > { %5759 = vmatpush1.bf16.msra.mxu0 %v5758_v23  ;;  %5823 = vmatpush1.bf16.msra.mxu1 %v5822_v42 }
 0x624   : > { %5761 = vmatprep.subr.bf16.mxu0 %v5760_v6  ;;  %5825 = vmatprep.subr.bf16.mxu1 %v5824_v46 }
 0x627   : > { %5763 = vmatpush1.bf16.msra.mxu0 %v5762_v3  ;;  %5827 = vmatpush1.bf16.msra.mxu1 %v5826_v44 }
 0x62a   : > { %5073 = vmatmul.mubr.f32.vlgmr.msra.gmra.mrb[34].mxu0 %v8075_v17  ;;  %5144 = vmatmul.mubr.f32.vlgmr.msra.gmra.mrb[34].mxu1 %v8075_v17  ;;  %v5158_v17 = vld [vmem:[%s308_s9] sm:$0xff] }
 0x62b   : > { %v5166_v15 = vcombine.high %v5158_v17, %v5158_v17  ;;  %5174 = vst [vmem:[%s8089_s16 + $0x40] sm:$0xf] %v5158_v17 }
 0x62d   : > { %5175 = vst [vmem:[%s8089_s16 + $0x48] sm:$0xf] %v5166_v15 }
 0x6bd   : > { %v4932_v51 = vpop.f32.mrb[32].mxu0  ;;  %v5003_v63 = vpop.f32.mrb[32].mxu1 }
 0x6be   : > { %5150 = vst [vmem:[%s8089_s16] sm:$0xff] %v4932_v51  ;;  %5152 = vst [vmem:[%s8089_s16 + $0x10] sm:$0xff] %v5003_v63  ;;  %v4934_v28 = vpop.f32.mrb[33].mxu0  ;;  %v5005_v48 = vpop.f32.mrb[33].mxu1 }
 0x6bf   : > { %5151 = vst [vmem:[%s8089_s16 + $0x8] sm:$0xff] %v4934_v28  ;;  %5153 = vst [vmem:[%s8089_s16 + $0x18] sm:$0xff] %v5005_v48 }
 0x6fd   : > { %v5074_v58 = vpop.f32.mrb[34].mxu0  ;;  %v5145_v0 = vpop.f32.mrb[34].mxu1 }
 0x6fe   : > { %5154 = vst [vmem:[%s8089_s16 + $0x20] sm:$0xff] %v5074_v58  ;;  %5156 = vst [vmem:[%s8089_s16 + $0x30] sm:$0xff] %v5145_v0  ;;  %v5076_v16 = vpop.f32.mrb[35].mxu0  ;;  %v5147_v25 = vpop.f32.mrb[35].mxu1 }
 0x6ff   : > { %5155 = vst [vmem:[%s8089_s16 + $0x28] sm:$0xff] %v5076_v16  ;;  %5157 = vst [vmem:[%s8089_s16 + $0x38] sm:$0xff] %v5147_v25 }
 0x700 PF: > { %s18_s24 = sadd.s32 1, %s5942_s24  }
 0x701   : > { %p15_p3 = scmp.ge.s32.totalorder %s18_s24, 4  }
 0x703   :  { %17 = sbr.rel (!%p15_p3) target bundleno = 1 (0x1), region = 90 }
 0x70a   :  { %5203 = vsyncpa [#allocation7], 1 }
 0x70b   :  { %5205 = vsyncpa [#allocation7 + $0x1], 1 }

</bundles_post_ra>
